<compile_context>
chip_gen: v6e
topology: v6e:2x2x1
jax: 0.10.0
libtpu: 0.0.40
codegen_flags: <defaults>
</compile_context>

<pallas_src>
import functools

import jax
import jax.numpy as jnp
from jax import lax
from jax.experimental import pallas as pl
from jax.experimental.pallas import tpu as pltpu

EPS = 1e-5    # BatchNorm epsilon (PyTorch default)
LANE = 128    # TPU vreg lane width


def _round_up(n, m=LANE):
    return ((n + m - 1) // m) * m


def _zero_border(xp):
    # Zero only the 1-element halo ring of a padded (Hp, Wp, C) scratch.
    Hp, Wp, C = xp.shape
    xp[pl.ds(0, 1), :, :] = jnp.zeros((1, Wp, C), xp.dtype)
    xp[pl.ds(Hp - 1, 1), :, :] = jnp.zeros((1, Wp, C), xp.dtype)
    xp[:, pl.ds(0, 1), :] = jnp.zeros((Hp, 1, C), xp.dtype)
    xp[:, pl.ds(Wp - 1, 1), :] = jnp.zeros((Hp, 1, C), xp.dtype)


def _conv3x3_bn_relu(xp, w_ref, s_ref, b_ref, mxu_dtype):
    # 3x3 "same" conv on the zero-padded scratch as a single im2col
    # contraction (H*W, 9*C) @ (9*C, Cout_pad), f32 accumulation on the MXU,
    # then folded-BN scale/shift + ReLU in f32 on the VPU.
    Hp, Wp, C = xp.shape
    H, W = Hp - 2, Wp - 2
    taps = [xp[pl.ds(kh, H), pl.ds(kw, W), :]
            for kh in range(3) for kw in range(3)]            # 9 x (H, W, C)
    cols = jnp.concatenate(taps, axis=-1).reshape(H * W, 9 * C)
    y = jnp.dot(cols.astype(mxu_dtype), w_ref[...].astype(mxu_dtype),
                preferred_element_type=jnp.float32)           # (H*W, Cout_pad)
    y = jnp.maximum(y * s_ref[...] + b_ref[...], 0.0)
    return y.reshape(H, W, -1)


def _double_conv_kernel(x_ref, w1_ref, s1_ref, b1_ref, w2_ref, s2_ref, b2_ref,
                        o_ref, xp1, xp2, *, mxu_dtype):
    # x_ref : (1, H, W, Cin)        one image (NHWC)
    # w*_ref: (9*Cin_prev, Cpad)    im2col-reshaped HWIO weights (bias=False)
    # s*/b* : (1, Cpad)             folded BatchNorm scale / shift
    # o_ref : (1, H, W, Cout_pad)   lane-dense output
    # xp1   : VMEM (H+2, W+2, Cin)      zero-halo input scratch
    # xp2   : VMEM (H+2, W+2, Cmid_pad) zero-halo intermediate scratch
    H, W = x_ref.shape[1], x_ref.shape[2]
    Cout_p = o_ref.shape[3]

    # ---- stage 1: in-kernel halo (border-only zero) + conv1 + BN1 + ReLU ---
    _zero_border(xp1)
    xp1[pl.ds(1, H), pl.ds(1, W), :] = x_ref[0].astype(xp1.dtype)
    y = _conv3x3_bn_relu(xp1, w1_ref, s1_ref, b1_ref, mxu_dtype)

    # ---- stage 2: intermediate never leaves VMEM ---------------------------
    _zero_border(xp2)
    xp2[pl.ds(1, H), pl.ds(1, W), :] = y.astype(xp2.dtype)
    z = _conv3x3_bn_relu(xp2, w2_ref, s2_ref, b2_ref, mxu_dtype)

    o_ref[...] = z.reshape(1, H, W, Cout_p).astype(o_ref.dtype)


def _fold_bn(bn, cpad):
    # Inference-mode BatchNorm folded into per-channel scale/shift, zero-padded
    # to the lane-dense channel width:
    #   y_hat = (y - mean)/sqrt(var+eps)*gamma + beta = y*scale + shift
    inv = lax.rsqrt(bn["var"] + EPS)
    scale = bn["gamma"] * inv
    shift = bn["beta"] - bn["mean"] * scale
    pad = cpad - scale.shape[0]
    return jnp.pad(scale, (0, pad))[None, :], jnp.pad(shift, (0, pad))[None, :]


@functools.partial(jax.jit, static_argnames=("mxu_dtype",))
def double_conv_nhwc(x, params, mxu_dtype=jnp.float32):
    """Fused DoubleConv on NHWC input. Set mxu_dtype=jnp.bfloat16 on v6e/v7x."""
    N, H, W, Cin = x.shape
    Cmid = params["w1"].shape[0]
    Cout = params["w2"].shape[0]
    Cmid_p, Cout_p = _round_up(Cmid), _round_up(Cout)

    # torch (Cout, Cin, kh, kw) -> HWIO, zero-pad channels to the lane width,
    # pre-reshape to the im2col K layout (kh, kw, cin) x cout.
    w1 = jnp.transpose(params["w1"], (2, 3, 1, 0))                 # (3,3,Cin,Cmid)
    w1 = jnp.pad(w1, ((0, 0), (0, 0), (0, 0), (0, Cmid_p - Cmid)))
    w1 = w1.reshape(9 * Cin, Cmid_p)
    w2 = jnp.transpose(params["w2"], (2, 3, 1, 0))                 # (3,3,Cmid,Cout)
    w2 = jnp.pad(w2, ((0, 0), (0, 0), (0, Cmid_p - Cmid), (0, Cout_p - Cout)))
    w2 = w2.reshape(9 * Cmid_p, Cout_p)

    s1, b1 = _fold_bn(params["bn1"], Cmid_p)
    s2, b2 = _fold_bn(params["bn2"], Cout_p)

    kernel = functools.partial(_double_conv_kernel, mxu_dtype=mxu_dtype)
    out = pl.pallas_call(
        kernel,
        out_shape=jax.ShapeDtypeStruct((N, H, W, Cout_p), x.dtype),
        grid=(N,),
        in_specs=[
            pl.BlockSpec((1, H, W, Cin), lambda n: (n, 0, 0, 0)),
            pl.BlockSpec((9 * Cin, Cmid_p), lambda n: (0, 0)),     # resident
            pl.BlockSpec((1, Cmid_p), lambda n: (0, 0)),
            pl.BlockSpec((1, Cmid_p), lambda n: (0, 0)),
            pl.BlockSpec((9 * Cmid_p, Cout_p), lambda n: (0, 0)),  # resident
            pl.BlockSpec((1, Cout_p), lambda n: (0, 0)),
            pl.BlockSpec((1, Cout_p), lambda n: (0, 0)),
        ],
        out_specs=pl.BlockSpec((1, H, W, Cout_p), lambda n: (n, 0, 0, 0)),
        scratch_shapes=[
            pltpu.VMEM((H + 2, W + 2, Cin), jnp.float32),    # padded input
            pltpu.VMEM((H + 2, W + 2, Cmid_p), jnp.float32), # padded intermediate
        ],
        compiler_params=pltpu.CompilerParams(
            dimension_semantics=("parallel",)),
    )(x, w1, s1, b1, w2, s2, b2)

    return out[..., :Cout]   # drop lane padding (fuses with the consumer)


@functools.partial(jax.jit, static_argnames=("mxu_dtype",))
def double_conv(x_nchw, params, mxu_dtype=jnp.float32):
    # TODO(synk): at real sizes keep activations NHWC across the whole network
    #   (call double_conv_nhwc directly) so these two boundary transposes --
    #   each a full extra HBM read+write -- disappear.
    x = jnp.transpose(x_nchw, (0, 2, 3, 1))           # NCHW -> NHWC
    out = double_conv_nhwc(x, params, mxu_dtype=mxu_dtype)
    return jnp.transpose(out, (0, 3, 1, 2))           # NHWC -> NCHW


def ref_double_conv(x_nchw, params):
    # Pure-JAX reference with identical (inference-mode BN) semantics.
    x = jnp.transpose(x_nchw, (0, 2, 3, 1))

    def block(h, w_torch, bn):
        w = jnp.transpose(w_torch, (2, 3, 1, 0))      # HWIO
        y = lax.conv_general_dilated(
            h, w, window_strides=(1, 1), padding=((1, 1), (1, 1)),
            dimension_numbers=("NHWC", "HWIO", "NHWC"))
        y = (y - bn["mean"]) * lax.rsqrt(bn["var"] + EPS) * bn["gamma"] + bn["beta"]
        return jnp.maximum(y, 0.0)

    y = block(x, params["w1"], params["bn1"])
    y = block(y, params["w2"], params["bn2"])
    return jnp.transpose(y, (0, 3, 1, 2))


if __name__ == "__main__":
    N, Cin, Cout, H, W = 2, 4, 8, 16, 16

    key = jax.random.PRNGKey(0)
    ks = jax.random.split(key, 11)

    x = jax.random.normal(ks[0], (N, Cin, H, W), dtype=jnp.float32)
    params = {
        # Conv2d weights in torch layout (out_channels, in_channels, 3, 3), bias=False
        "w1": 0.1 * jax.random.normal(ks[1], (Cout, Cin, 3, 3), dtype=jnp.float32),
        "bn1": {
            "gamma": 1.0 + 0.1 * jax.random.normal(ks[2], (Cout,), dtype=jnp.float32),
            "beta": 0.1 * jax.random.normal(ks[3], (Cout,), dtype=jnp.float32),
            "mean": 0.1 * jax.random.normal(ks[4], (Cout,), dtype=jnp.float32),
            "var": jnp.abs(jax.random.normal(ks[5], (Cout,), dtype=jnp.float32)) + 0.5,
        },
        "w2": 0.1 * jax.random.normal(ks[6], (Cout, Cout, 3, 3), dtype=jnp.float32),
        "bn2": {
            "gamma": 1.0 + 0.1 * jax.random.normal(ks[7], (Cout,), dtype=jnp.float32),
            "beta": 0.1 * jax.random.normal(ks[8], (Cout,), dtype=jnp.float32),
            "mean": 0.1 * jax.random.normal(ks[9], (Cout,), dtype=jnp.float32),
            "var": jnp.abs(jax.random.normal(ks[10], (Cout,), dtype=jnp.float32)) + 0.5,
        },
    }

    out = jax.block_until_ready(double_conv(x, params))
    ref = jax.block_until_ready(ref_double_conv(x, params))

    assert out.shape == (N, Cout, H, W), out.shape
    assert jnp.all(jnp.isfinite(out))
    max_err = float(jnp.max(jnp.abs(out - ref)))
    assert jnp.allclose(out, ref, atol=1e-4, rtol=1e-4), max_err

    print("KERNEL_OK")
</pallas_src>

<mosaic_0001>
module attributes {stable_mosaic.version = 11 : i64} {
  func.func @_double_conv_kernel(%arg0: i32, %arg1: memref<1x16x16x4xf32, #tpu.memory_space<vmem>>, %arg2: memref<36x128xf32, #tpu.memory_space<vmem>>, %arg3: memref<1x128xf32, #tpu.memory_space<vmem>>, %arg4: memref<1x128xf32, #tpu.memory_space<vmem>>, %arg5: memref<1152x128xf32, #tpu.memory_space<vmem>>, %arg6: memref<1x128xf32, #tpu.memory_space<vmem>>, %arg7: memref<1x128xf32, #tpu.memory_space<vmem>>, %arg8: memref<1x16x16x128xf32, #tpu.memory_space<vmem>>, %arg9: memref<18x18x4xf32, #tpu.memory_space<vmem>>, %arg10: memref<18x18x128xf32, #tpu.memory_space<vmem>>) attributes {dimension_semantics = [#tpu.dimension_semantics<parallel>], iteration_bounds = array<i64: 2>, scalar_prefetch = 0 : i64, scratch_operands = 2 : i64, tpu.core_type = #tpu.core_type<tc>, window_params = [{transform_indices = @transform_0, window_bounds = array<i64: 1, 16, 16, 4>}, {pipeline_mode = #tpu.pipeline_mode<synchronous>, transform_indices = @transform_1, window_bounds = array<i64: 36, 128>}, {pipeline_mode = #tpu.pipeline_mode<synchronous>, transform_indices = @transform_2, window_bounds = array<i64: 1, 128>}, {pipeline_mode = #tpu.pipeline_mode<synchronous>, transform_indices = @transform_3, window_bounds = array<i64: 1, 128>}, {pipeline_mode = #tpu.pipeline_mode<synchronous>, transform_indices = @transform_4, window_bounds = array<i64: 1152, 128>}, {pipeline_mode = #tpu.pipeline_mode<synchronous>, transform_indices = @transform_5, window_bounds = array<i64: 1, 128>}, {pipeline_mode = #tpu.pipeline_mode<synchronous>, transform_indices = @transform_6, window_bounds = array<i64: 1, 128>}, {transform_indices = @transform_7, window_bounds = array<i64: 1, 16, 16, 128>}]} {
    %cst = arith.constant 0.000000e+00 : f32
    %0 = vector.broadcast %cst : f32 to vector<1x18x4xf32>
    %c0 = arith.constant 0 : index
    %c0_0 = arith.constant 0 : index
    %c0_1 = arith.constant 0 : index
    %1 = vector.load %arg9[%c0, %c0_0, %c0_1] : memref<18x18x4xf32, #tpu.memory_space<vmem>>, vector<1x18x4xf32>
    tpu.vector_store %arg9[%c0, %c0_0, %c0_1], %0 {strides = array<i32>} : memref<18x18x4xf32, #tpu.memory_space<vmem>>, vector<1x18x4xf32>,
    %cst_2 = arith.constant 0.000000e+00 : f32
    %2 = vector.broadcast %cst_2 : f32 to vector<1x18x4xf32>
    %c17 = arith.constant 17 : index
    %c0_3 = arith.constant 0 : index
    %c0_4 = arith.constant 0 : index
    %3 = vector.load %arg9[%c17, %c0_3, %c0_4] : memref<18x18x4xf32, #tpu.memory_space<vmem>>, vector<1x18x4xf32>
    tpu.vector_store %arg9[%c17, %c0_3, %c0_4], %2 {strides = array<i32>} : memref<18x18x4xf32, #tpu.memory_space<vmem>>, vector<1x18x4xf32>,
    %cst_5 = arith.constant 0.000000e+00 : f32
    %4 = vector.broadcast %cst_5 : f32 to vector<18x1x4xf32>
    %c0_6 = arith.constant 0 : index
    %c0_7 = arith.constant 0 : index
    %c0_8 = arith.constant 0 : index
    %5 = vector.load %arg9[%c0_6, %c0_7, %c0_8] : memref<18x18x4xf32, #tpu.memory_space<vmem>>, vector<18x1x4xf32>
    tpu.vector_store %arg9[%c0_6, %c0_7, %c0_8], %4 {strides = array<i32>} : memref<18x18x4xf32, #tpu.memory_space<vmem>>, vector<18x1x4xf32>,
    %cst_9 = arith.constant 0.000000e+00 : f32
    %6 = vector.broadcast %cst_9 : f32 to vector<18x1x4xf32>
    %c0_10 = arith.constant 0 : index
    %c17_11 = arith.constant 17 : index
    %c0_12 = arith.constant 0 : index
    %7 = vector.load %arg9[%c0_10, %c17_11, %c0_12] : memref<18x18x4xf32, #tpu.memory_space<vmem>>, vector<18x1x4xf32>
    tpu.vector_store %arg9[%c0_10, %c17_11, %c0_12], %6 {strides = array<i32>} : memref<18x18x4xf32, #tpu.memory_space<vmem>>, vector<18x1x4xf32>,
    %c0_13 = arith.constant 0 : index
    %c0_14 = arith.constant 0 : index
    %c0_15 = arith.constant 0 : index
    %c0_16 = arith.constant 0 : index
    %8 = vector.load %arg1[%c0_13, %c0_14, %c0_15, %c0_16] : memref<1x16x16x4xf32, #tpu.memory_space<vmem>>, vector<1x16x16x4xf32>
    %9 = vector.shape_cast %8 : vector<1x16x16x4xf32> to vector<16x16x4xf32>
    %c1 = arith.constant 1 : index
    %c1_17 = arith.constant 1 : index
    %c0_18 = arith.constant 0 : index
    %10 = vector.load %arg9[%c1, %c1_17, %c0_18] : memref<18x18x4xf32, #tpu.memory_space<vmem>>, vector<16x16x4xf32>
    tpu.vector_store %arg9[%c1, %c1_17, %c0_18], %9 {strides = array<i32>} : memref<18x18x4xf32, #tpu.memory_space<vmem>>, vector<16x16x4xf32>,
    %c0_19 = arith.constant 0 : index
    %c0_20 = arith.constant 0 : index
    %c0_21 = arith.constant 0 : index
    %11 = vector.load %arg9[%c0_19, %c0_20, %c0_21] : memref<18x18x4xf32, #tpu.memory_space<vmem>>, vector<16x16x4xf32>
    %c0_22 = arith.constant 0 : index
    %c1_23 = arith.constant 1 : index
    %c0_24 = arith.constant 0 : index
    %12 = vector.load %arg9[%c0_22, %c1_23, %c0_24] : memref<18x18x4xf32, #tpu.memory_space<vmem>>, vector<16x16x4xf32>
    %c0_25 = arith.constant 0 : index
    %c2 = arith.constant 2 : index
    %c0_26 = arith.constant 0 : index
    %13 = vector.load %arg9[%c0_25, %c2, %c0_26] : memref<18x18x4xf32, #tpu.memory_space<vmem>>, vector<16x16x4xf32>
    %c1_27 = arith.constant 1 : index
    %c0_28 = arith.constant 0 : index
    %c0_29 = arith.constant 0 : index
    %14 = vector.load %arg9[%c1_27, %c0_28, %c0_29] : memref<18x18x4xf32, #tpu.memory_space<vmem>>, vector<16x16x4xf32>
    %c1_30 = arith.constant 1 : index
    %c1_31 = arith.constant 1 : index
    %c0_32 = arith.constant 0 : index
    %15 = vector.load %arg9[%c1_30, %c1_31, %c0_32] : memref<18x18x4xf32, #tpu.memory_space<vmem>>, vector<16x16x4xf32>
    %c1_33 = arith.constant 1 : index
    %c2_34 = arith.constant 2 : index
    %c0_35 = arith.constant 0 : index
    %16 = vector.load %arg9[%c1_33, %c2_34, %c0_35] : memref<18x18x4xf32, #tpu.memory_space<vmem>>, vector<16x16x4xf32>
    %c2_36 = arith.constant 2 : index
    %c0_37 = arith.constant 0 : index
    %c0_38 = arith.constant 0 : index
    %17 = vector.load %arg9[%c2_36, %c0_37, %c0_38] : memref<18x18x4xf32, #tpu.memory_space<vmem>>, vector<16x16x4xf32>
    %c2_39 = arith.constant 2 : index
    %c1_40 = arith.constant 1 : index
    %c0_41 = arith.constant 0 : index
    %18 = vector.load %arg9[%c2_39, %c1_40, %c0_41] : memref<18x18x4xf32, #tpu.memory_space<vmem>>, vector<16x16x4xf32>
    %c2_42 = arith.constant 2 : index
    %c2_43 = arith.constant 2 : index
    %c0_44 = arith.constant 0 : index
    %19 = vector.load %arg9[%c2_42, %c2_43, %c0_44] : memref<18x18x4xf32, #tpu.memory_space<vmem>>, vector<16x16x4xf32>
    %20 = tpu.concatenate %11, %12, %13, %14, %15, %16, %17, %18, %19 in 2 : vector<16x16x4xf32>, vector<16x16x4xf32>, vector<16x16x4xf32>, vector<16x16x4xf32>, vector<16x16x4xf32>, vector<16x16x4xf32>, vector<16x16x4xf32>, vector<16x16x4xf32>, vector<16x16x4xf32> -> vector<16x16x36xf32>
    %21 = vector.shape_cast %20 : vector<16x16x36xf32> to vector<256x36xf32>
    %c0_45 = arith.constant 0 : index
    %c0_46 = arith.constant 0 : index
    %22 = vector.load %arg2[%c0_45, %c0_46] : memref<36x128xf32, #tpu.memory_space<vmem>>, vector<36x128xf32>
    %cst_47 = arith.constant dense<0.000000e+00> : vector<256x128xf32>
    %23 = tpu.matmul %21, %22, %cst_47 {dimension_numbers = #tpu.dot_dimension_numbers<[1], [0], [0], [1], [0, 0, 1, 1], [], []>} : vector<256x36xf32>, vector<36x128xf32>, vector<256x128xf32> -> vector<256x128xf32>
    %c0_48 = arith.constant 0 : index
    %c0_49 = arith.constant 0 : index
    %24 = vector.load %arg3[%c0_48, %c0_49] : memref<1x128xf32, #tpu.memory_space<vmem>>, vector<1x128xf32>
    %25 = vector.broadcast %24 : vector<1x128xf32> to vector<256x128xf32>
    %26 = arith.mulf %23, %25 : vector<256x128xf32>
    %c0_50 = arith.constant 0 : index
    %c0_51 = arith.constant 0 : index
    %27 = vector.load %arg4[%c0_50, %c0_51] : memref<1x128xf32, #tpu.memory_space<vmem>>, vector<1x128xf32>
    %28 = vector.broadcast %27 : vector<1x128xf32> to vector<256x128xf32>
    %29 = arith.addf %26, %28 : vector<256x128xf32>
    %cst_52 = arith.constant 0.000000e+00 : f32
    %30 = vector.broadcast %cst_52 : f32 to vector<256x128xf32>
    %31 = arith.maximumf %29, %30 : vector<256x128xf32>
    %32 = vector.shape_cast %31 : vector<256x128xf32> to vector<16x16x128xf32>
    %cst_53 = arith.constant 0.000000e+00 : f32
    %33 = vector.broadcast %cst_53 : f32 to vector<1x18x128xf32>
    %c0_54 = arith.constant 0 : index
    %c0_55 = arith.constant 0 : index
    %c0_56 = arith.constant 0 : index
    %34 = vector.load %arg10[%c0_54, %c0_55, %c0_56] : memref<18x18x128xf32, #tpu.memory_space<vmem>>, vector<1x18x128xf32>
    tpu.vector_store %arg10[%c0_54, %c0_55, %c0_56], %33 {strides = array<i32>} : memref<18x18x128xf32, #tpu.memory_space<vmem>>, vector<1x18x128xf32>,
    %cst_57 = arith.constant 0.000000e+00 : f32
    %35 = vector.broadcast %cst_57 : f32 to vector<1x18x128xf32>
    %c17_58 = arith.constant 17 : index
    %c0_59 = arith.constant 0 : index
    %c0_60 = arith.constant 0 : index
    %36 = vector.load %arg10[%c17_58, %c0_59, %c0_60] : memref<18x18x128xf32, #tpu.memory_space<vmem>>, vector<1x18x128xf32>
    tpu.vector_store %arg10[%c17_58, %c0_59, %c0_60], %35 {strides = array<i32>} : memref<18x18x128xf32, #tpu.memory_space<vmem>>, vector<1x18x128xf32>,
    %cst_61 = arith.constant 0.000000e+00 : f32
    %37 = vector.broadcast %cst_61 : f32 to vector<18x1x128xf32>
    %c0_62 = arith.constant 0 : index
    %c0_63 = arith.constant 0 : index
    %c0_64 = arith.constant 0 : index
    %38 = vector.load %arg10[%c0_62, %c0_63, %c0_64] : memref<18x18x128xf32, #tpu.memory_space<vmem>>, vector<18x1x128xf32>
    tpu.vector_store %arg10[%c0_62, %c0_63, %c0_64], %37 {strides = array<i32>} : memref<18x18x128xf32, #tpu.memory_space<vmem>>, vector<18x1x128xf32>,
    %cst_65 = arith.constant 0.000000e+00 : f32
    %39 = vector.broadcast %cst_65 : f32 to vector<18x1x128xf32>
    %c0_66 = arith.constant 0 : index
    %c17_67 = arith.constant 17 : index
    %c0_68 = arith.constant 0 : index
    %40 = vector.load %arg10[%c0_66, %c17_67, %c0_68] : memref<18x18x128xf32, #tpu.memory_space<vmem>>, vector<18x1x128xf32>
    tpu.vector_store %arg10[%c0_66, %c17_67, %c0_68], %39 {strides = array<i32>} : memref<18x18x128xf32, #tpu.memory_space<vmem>>, vector<18x1x128xf32>,
    %c1_69 = arith.constant 1 : index
    %c1_70 = arith.constant 1 : index
    %c0_71 = arith.constant 0 : index
    %41 = vector.load %arg10[%c1_69, %c1_70, %c0_71] : memref<18x18x128xf32, #tpu.memory_space<vmem>>, vector<16x16x128xf32>
    tpu.vector_store %arg10[%c1_69, %c1_70, %c0_71], %32 {strides = array<i32>} : memref<18x18x128xf32, #tpu.memory_space<vmem>>, vector<16x16x128xf32>,
    %c0_72 = arith.constant 0 : index
    %c0_73 = arith.constant 0 : index
    %c0_74 = arith.constant 0 : index
    %42 = vector.load %arg10[%c0_72, %c0_73, %c0_74] : memref<18x18x128xf32, #tpu.memory_space<vmem>>, vector<16x16x128xf32>
    %c0_75 = arith.constant 0 : index
    %c1_76 = arith.constant 1 : index
    %c0_77 = arith.constant 0 : index
    %43 = vector.load %arg10[%c0_75, %c1_76, %c0_77] : memref<18x18x128xf32, #tpu.memory_space<vmem>>, vector<16x16x128xf32>
    %c0_78 = arith.constant 0 : index
    %c2_79 = arith.constant 2 : index
    %c0_80 = arith.constant 0 : index
    %44 = vector.load %arg10[%c0_78, %c2_79, %c0_80] : memref<18x18x128xf32, #tpu.memory_space<vmem>>, vector<16x16x128xf32>
    %c1_81 = arith.constant 1 : index
    %c0_82 = arith.constant 0 : index
    %c0_83 = arith.constant 0 : index
    %45 = vector.load %arg10[%c1_81, %c0_82, %c0_83] : memref<18x18x128xf32, #tpu.memory_space<vmem>>, vector<16x16x128xf32>
    %c1_84 = arith.constant 1 : index
    %c1_85 = arith.constant 1 : index
    %c0_86 = arith.constant 0 : index
    %46 = vector.load %arg10[%c1_84, %c1_85, %c0_86] : memref<18x18x128xf32, #tpu.memory_space<vmem>>, vector<16x16x128xf32>
    %c1_87 = arith.constant 1 : index
    %c2_88 = arith.constant 2 : index
    %c0_89 = arith.constant 0 : index
    %47 = vector.load %arg10[%c1_87, %c2_88, %c0_89] : memref<18x18x128xf32, #tpu.memory_space<vmem>>, vector<16x16x128xf32>
    %c2_90 = arith.constant 2 : index
    %c0_91 = arith.constant 0 : index
    %c0_92 = arith.constant 0 : index
    %48 = vector.load %arg10[%c2_90, %c0_91, %c0_92] : memref<18x18x128xf32, #tpu.memory_space<vmem>>, vector<16x16x128xf32>
    %c2_93 = arith.constant 2 : index
    %c1_94 = arith.constant 1 : index
    %c0_95 = arith.constant 0 : index
    %49 = vector.load %arg10[%c2_93, %c1_94, %c0_95] : memref<18x18x128xf32, #tpu.memory_space<vmem>>, vector<16x16x128xf32>
    %c2_96 = arith.constant 2 : index
    %c2_97 = arith.constant 2 : index
    %c0_98 = arith.constant 0 : index
    %50 = vector.load %arg10[%c2_96, %c2_97, %c0_98] : memref<18x18x128xf32, #tpu.memory_space<vmem>>, vector<16x16x128xf32>
    %51 = tpu.concatenate %42, %43, %44, %45, %46, %47, %48, %49, %50 in 2 : vector<16x16x128xf32>, vector<16x16x128xf32>, vector<16x16x128xf32>, vector<16x16x128xf32>, vector<16x16x128xf32>, vector<16x16x128xf32>, vector<16x16x128xf32>, vector<16x16x128xf32>, vector<16x16x128xf32> -> vector<16x16x1152xf32>
    %52 = vector.shape_cast %51 : vector<16x16x1152xf32> to vector<256x1152xf32>
    %c0_99 = arith.constant 0 : index
    %c0_100 = arith.constant 0 : index
    %53 = vector.load %arg5[%c0_99, %c0_100] : memref<1152x128xf32, #tpu.memory_space<vmem>>, vector<1152x128xf32>
    %cst_101 = arith.constant dense<0.000000e+00> : vector<256x128xf32>
    %54 = tpu.matmul %52, %53, %cst_101 {dimension_numbers = #tpu.dot_dimension_numbers<[1], [0], [0], [1], [0, 0, 1, 1], [], []>} : vector<256x1152xf32>, vector<1152x128xf32>, vector<256x128xf32> -> vector<256x128xf32>
    %c0_102 = arith.constant 0 : index
    %c0_103 = arith.constant 0 : index
    %55 = vector.load %arg6[%c0_102, %c0_103] : memref<1x128xf32, #tpu.memory_space<vmem>>, vector<1x128xf32>
    %56 = vector.broadcast %55 : vector<1x128xf32> to vector<256x128xf32>
    %57 = arith.mulf %54, %56 : vector<256x128xf32>
    %c0_104 = arith.constant 0 : index
    %c0_105 = arith.constant 0 : index
    %58 = vector.load %arg7[%c0_104, %c0_105] : memref<1x128xf32, #tpu.memory_space<vmem>>, vector<1x128xf32>
    %59 = vector.broadcast %58 : vector<1x128xf32> to vector<256x128xf32>
    %60 = arith.addf %57, %59 : vector<256x128xf32>
    %cst_106 = arith.constant 0.000000e+00 : f32
    %61 = vector.broadcast %cst_106 : f32 to vector<256x128xf32>
    %62 = arith.maximumf %60, %61 : vector<256x128xf32>
    %63 = vector.shape_cast %62 : vector<256x128xf32> to vector<16x16x128xf32>
    %64 = vector.shape_cast %63 : vector<16x16x128xf32> to vector<1x16x16x128xf32>
    %c0_107 = arith.constant 0 : index
    %c0_108 = arith.constant 0 : index
    %c0_109 = arith.constant 0 : index
    %c0_110 = arith.constant 0 : index
    %65 = vector.load %arg8[%c0_107, %c0_108, %c0_109, %c0_110] : memref<1x16x16x128xf32, #tpu.memory_space<vmem>>, vector<1x16x16x128xf32>
    tpu.vector_store %arg8[%c0_107, %c0_108, %c0_109, %c0_110], %64 {strides = array<i32>} : memref<1x16x16x128xf32, #tpu.memory_space<vmem>>, vector<1x16x16x128xf32>,
    return
  }
  func.func @transform_0(%arg0: i32) -> (i32, i32, i32, i32) {
    %c0_i32 = arith.constant 0 : i32
    %c0_i32_0 = arith.constant 0 : i32
    %c0_i32_1 = arith.constant 0 : i32
    %c0_i32_2 = arith.constant 0 : i32
    return %arg0, %c0_i32, %c0_i32_0, %c0_i32_1 : i32, i32, i32, i32
  }
  func.func @transform_1(%arg0: i32) -> (i32, i32) {
    %c0_i32 = arith.constant 0 : i32
    %c0_i32_0 = arith.constant 0 : i32
    %c0_i32_1 = arith.constant 0 : i32
    return %c0_i32, %c0_i32_0 : i32, i32
  }
  func.func @transform_2(%arg0: i32) -> (i32, i32) {
    %c0_i32 = arith.constant 0 : i32
    %c0_i32_0 = arith.constant 0 : i32
    %c0_i32_1 = arith.constant 0 : i32
    return %c0_i32, %c0_i32_0 : i32, i32
  }
  func.func @transform_3(%arg0: i32) -> (i32, i32) {
    %c0_i32 = arith.constant 0 : i32
    %c0_i32_0 = arith.constant 0 : i32
    %c0_i32_1 = arith.constant 0 : i32
    return %c0_i32, %c0_i32_0 : i32, i32
  }
  func.func @transform_4(%arg0: i32) -> (i32, i32) {
    %c0_i32 = arith.constant 0 : i32
    %c0_i32_0 = arith.constant 0 : i32
    %c0_i32_1 = arith.constant 0 : i32
    return %c0_i32, %c0_i32_0 : i32, i32
  }
  func.func @transform_5(%arg0: i32) -> (i32, i32) {
    %c0_i32 = arith.constant 0 : i32
    %c0_i32_0 = arith.constant 0 : i32
    %c0_i32_1 = arith.constant 0 : i32
    return %c0_i32, %c0_i32_0 : i32, i32
  }
  func.func @transform_6(%arg0: i32) -> (i32, i32) {
    %c0_i32 = arith.constant 0 : i32
    %c0_i32_0 = arith.constant 0 : i32
    %c0_i32_1 = arith.constant 0 : i32
    return %c0_i32, %c0_i32_0 : i32, i32
  }
  func.func @transform_7(%arg0: i32) -> (i32, i32, i32, i32) {
    %c0_i32 = arith.constant 0 : i32
    %c0_i32_0 = arith.constant 0 : i32
    %c0_i32_1 = arith.constant 0 : i32
    %c0_i32_2 = arith.constant 0 : i32
    return %arg0, %c0_i32, %c0_i32_0, %c0_i32_1 : i32, i32, i32, i32
  }
}

</mosaic_0001>

<bundles_post_ra>
// kernel: double_conv_nhwc.1
= control target key start
LH: loop header
LB: loop body
LE: loop exit
PB: predicated region body
PF: predicated region fallthrough
CT: control target
= control target key end

     0   :  { %s4627_s24 = smov 0   ;;  %s7300_s0 = inlined_call_operand.vmem [shape: f32[2,16,16,4], index: 0, kind: input, shape index: {}]   ;;  %s7301_s1 = inlined_call_operand.vmem [shape: f32[36,128], index: 1, kind: input, shape index: {}]   ;;  %s7302_s2 = inlined_call_operand.vmem [shape: f32[1,128], index: 2, kind: input, shape index: {}]   ;;  %s7303_s3 = inlined_call_operand.vmem [shape: f32[1,128], index: 3, kind: input, shape index: {}]   ;;  %s7304_s4 = inlined_call_operand.vmem [shape: f32[1152,128], index: 4, kind: input, shape index: {}]   ;;  %s7305_s5 = inlined_call_operand.vmem [shape: f32[1,128], index: 5, kind: input, shape index: {}]   ;;  %s7306_s6 = inlined_call_operand.vmem [shape: f32[1,128], index: 6, kind: input, shape index: {}]   ;;  %s7307_s7 = inlined_call_operand.vmem [shape: f32[2,16,16,128], index: 7, kind: output, shape index: {}]  }
   0x1 LB: > { %s4238_s25 = sadd.s32 4294967295, %s4576_s24   ;;  %p4242_p0 = scmp.ge.s32.totalorder %s4576_s24, 1  ;;  %s4576_s24 = sphi %s4627_s24, %s17_s24  }
   0x2   : > { %p237_p1 = scmp.lt.s32.totalorder %s4576_s24, 3 }
   0x4   : > { %p238_p2 = pnand %p4242_p0, %p237_p1 }
   0x6   : > { %241 = sbr.rel (%p238_p2) target bundleno = 1250 (0x4e2), region = 48 }
   0xb   : > { %vm279_vm0 = vcmask 31744   ;;  %vm282_vm1 = vcmask 25600   ;;  %vm288_vm2 = vcmask 24576   ;;  %v4578_v0 = vmov 0.0   ;;  %p269_p3 = scmp.lt.s32.totalorder %s4238_s25, 1  ;;  %s4579_s30 = smov 8  }
   0xc   : > { %280 = vst.msk [vmem:[#allocation2] sm:$0xff] %vm279_vm0, %v4578_v0  ;;  %281 = vst.msk [vmem:[#allocation2 + $0x8] sm:$0xff] %vm279_vm0, %v4578_v0  ;;  %2916 = vmatprep.subr.mxu1 %v4578_v0  ;;  %s4580_s8 = smov 4   ;;  %s4581_s9 = smov 12   ;;  %vm2068_vm3 = vcmask 1043456   ;;  %v1969_v22 = vld [vmem:[%s7301_s1 + $0x18] sm:$0xff] }
   0xd   : > { %285 = vst.msk [vmem:[#allocation2 + $0x198] sm:$0xff] %vm279_vm0, %v4578_v0  ;;  %286 = vst.msk [vmem:[#allocation2 + $0x1a0] sm:$0xff] %vm279_vm0, %v4578_v0  ;;  %s7361_s25 = smov (!%p269_p3, %s4238_s25), 1  ;;  %s4582_s10 = smov 16   ;;  %v1970_v21 = vld [vmem:[%s7301_s1 + $0x20] sm:$0xf] }
   0xe   : > { %2407 = vst [vmem:[#allocation3] sm:$0xff] %v4578_v0  ;;  %2408 = vst [vmem:[#allocation3 + $0x8] sm:$0xff] %v4578_v0  ;;  %s4286_s26 = sshll.u32 %s7361_s25, 8  ;;  %s4583_s11 = smov 20   ;;  %4373 = vmatprep.subr.msk.mxu0 %vm2068_vm3, %v1970_v21  ;;  %v1968_v27 = vld [vmem:[%s7301_s1 + $0x10] sm:$0xff]  ;;  %v1967_v30 = vld [vmem:[%s7301_s1 + $0x8] sm:$0xff] }
   0xf   : > { %2409 = vst [vmem:[#allocation3 + $0x10] sm:$0x3] %v4578_v0  ;;  %2411 = vst [vmem:[#allocation3 + $0x198] sm:$0xff] %v4578_v0  ;;  %s4774_s29 = scalar_lea.vmem %s7300_s0, %s4286_s26  ;;  %4374 = vmatpush3.msk.msra.mxu0 %vm2068_vm3, %v1970_v21  ;;  %s4584_s18 = smov 24   ;;  %v1966_v31 = vld [vmem:[%s7301_s1] sm:$0xff]  ;;  %vm1735_vm4 = vcmask 64512  }
  0x10   : > { %2412 = vst [vmem:[#allocation3 + $0x1a0] sm:$0xff] %v4578_v0  ;;  %2413 = vst [vmem:[#allocation3 + $0x1a8] sm:$0x3] %v4578_v0  ;;  %v325_v1 = vld [vmem:[%s4774_s29] sm:$0xff]  ;;  %v326_v2 = vld [vmem:[%s4774_s29 + $0x8] sm:$0xff]  ;;  %4375 = vmatprep.subr.mxu0 %v1969_v22  ;;  %s4585_s21 = smov 28  }
  0x11   : > { %2415 = vst [vmem:[#allocation3 + $0x18] sm:$0x1] %v4578_v0  ;;  %2416 = vst [vmem:[#allocation3 + $0x30] sm:$0x1] %v4578_v0  ;;  %v327_v3 = vld [vmem:[%s4774_s29 + $0x10] sm:$0xff]  ;;  %v328_v8 = vld [vmem:[%s4774_s29 + $0x18] sm:$0xff]  ;;  %4376 = vmatpush3.msra.mxu0 %v1969_v22 }
  0x12   : > { %2417 = vst [vmem:[#allocation3 + $0x48] sm:$0x1] %v4578_v0  ;;  %2418 = vst [vmem:[#allocation3 + $0x60] sm:$0x1] %v4578_v0  ;;  %v329_v9 = vld [vmem:[%s4774_s29 + $0x20] sm:$0xff]  ;;  %v330_v10 = vld [vmem:[%s4774_s29 + $0x28] sm:$0xff]  ;;  %4377 = vmatprep.subr.mxu0 %v1968_v27 }
  0x13   : > { %2419 = vst [vmem:[#allocation3 + $0x78] sm:$0x1] %v4578_v0  ;;  %2420 = vst [vmem:[#allocation3 + $0x90] sm:$0x1] %v4578_v0  ;;  %v454_v4 = vld [vmem:[#allocation2 + $0x2] sm:$0xff]  ;;  %v331_v11 = vld [vmem:[%s4774_s29 + $0x30] sm:$0xff]  ;;  %4378 = vmatpush3.msra.mxu0 %v1968_v27 }
  0x14   : > { %2421 = vst [vmem:[#allocation3 + $0xa8] sm:$0x1] %v4578_v0  ;;  %2422 = vst [vmem:[#allocation3 + $0xc0] sm:$0x1] %v4578_v0  ;;  %v422_v5 = vld [vmem:[#allocation2 + $0x1] sm:$0xff]  ;;  %839 = vrot.lane.b32.xlu1 %v454_v4, %s4579_s30  ;;  %v332_v12 = vld [vmem:[%s4774_s29 + $0x38] sm:$0xff]  ;;  %4379 = vmatprep.subr.mxu0 %v1967_v30 }
  0x15   : > { %2423 = vst [vmem:[#allocation3 + $0xd8] sm:$0x1] %v4578_v0  ;;  %2424 = vst [vmem:[#allocation3 + $0xf0] sm:$0x1] %v4578_v0  ;;  %711 = vrot.lane.b32.xlu0 %v422_v5, %s4580_s8  ;;  %v333_v13 = vld [vmem:[%s4774_s29 + $0x40] sm:$0xff]  ;;  %v334_v14 = vld [vmem:[%s4774_s29 + $0x48] sm:$0xff]  ;;  %4380 = vmatpush3.msra.mxu0 %v1967_v30 }
  0x16   : > { %2425 = vst [vmem:[#allocation3 + $0x108] sm:$0x1] %v4578_v0  ;;  %2426 = vst [vmem:[#allocation3 + $0x120] sm:$0x1] %v4578_v0  ;;  %v335_v25 = vld [vmem:[%s4774_s29 + $0x50] sm:$0xff]  ;;  %v336_v26 = vld [vmem:[%s4774_s29 + $0x58] sm:$0xff]  ;;  %4381 = vmatprep.subr.mxu0 %v1966_v31 }
  0x17   : > { %2427 = vst [vmem:[#allocation3 + $0x138] sm:$0x1] %v4578_v0  ;;  %2428 = vst [vmem:[#allocation3 + $0x150] sm:$0x1] %v4578_v0  ;;  %s4586_s27 = smov 32   ;;  %4382 = vmatpush3.msra.mxu0 %v1966_v31  ;;  %v337_v34 = vld [vmem:[%s4774_s29 + $0x60] sm:$0xff] }
  0x18   : > { %2429 = vst [vmem:[#allocation3 + $0x168] sm:$0x1] %v4578_v0  ;;  %2430 = vst [vmem:[#allocation3 + $0x180] sm:$0x1] %v4578_v0  ;;  %3141 = vmatprep.subr.mxu0 %v4578_v0  ;;  %v338_v35 = vld [vmem:[%s4774_s29 + $0x68] sm:$0xff]  ;;  %v339_v42 = vld [vmem:[%s4774_s29 + $0x70] sm:$0xff] }
  0x19   : > { %2433 = vst [vmem:[#allocation3 + $0x29] sm:$0x1] %v4578_v0  ;;  %2434 = vst [vmem:[#allocation3 + $0x41] sm:$0x1] %v4578_v0  ;;  %v340_v43 = vld [vmem:[%s4774_s29 + $0x78] sm:$0xff]  ;;  %v341_v50 = vld [vmem:[%s4774_s29 + $0x80] sm:$0xff] }
  0x1a   : > { %2435 = vst [vmem:[#allocation3 + $0x59] sm:$0x1] %v4578_v0  ;;  %2436 = vst [vmem:[#allocation3 + $0x71] sm:$0x1] %v4578_v0  ;;  %v342_v51 = vld [vmem:[%s4774_s29 + $0x88] sm:$0xff]  ;;  %vm1768_vm5 = vcmask 97280  }
  0x1b   : > { %2437 = vst [vmem:[#allocation3 + $0x89] sm:$0x1] %v4578_v0  ;;  %2438 = vst [vmem:[#allocation3 + $0xa1] sm:$0x1] %v4578_v0  ;;  %vm1801_vm6 = vcmask 130048   ;;  %vm1834_vm7 = vcmask 162816  }
  0x1c   : > { %2439 = vst [vmem:[#allocation3 + $0xb9] sm:$0x1] %v4578_v0  ;;  %2440 = vst [vmem:[#allocation3 + $0xd1] sm:$0x1] %v4578_v0  ;;  %vm1867_vm8 = vcmask 195584   ;;  %vm1900_vm9 = vcmask 228352  }
  0x1d   : > { %2441 = vst [vmem:[#allocation3 + $0xe9] sm:$0x1] %v4578_v0  ;;  %2442 = vst [vmem:[#allocation3 + $0x101] sm:$0x1] %v4578_v0  ;;  %vm1933_vm10 = vcmask 261120   ;;  %vm1971_vm11 = vcmask 293888  }
  0x1e   : > { %2443 = vst [vmem:[#allocation3 + $0x119] sm:$0x1] %v4578_v0  ;;  %2444 = vst [vmem:[#allocation3 + $0x131] sm:$0x1] %v4578_v0 }
  0x1f   : > { %2445 = vst [vmem:[#allocation3 + $0x149] sm:$0x1] %v4578_v0  ;;  %2446 = vst [vmem:[#allocation3 + $0x161] sm:$0x1] %v4578_v0 }
  0x20   : > { %2447 = vst [vmem:[#allocation3 + $0x179] sm:$0x1] %v4578_v0  ;;  %2448 = vst [vmem:[#allocation3 + $0x191] sm:$0x1] %v4578_v0 }
  0x21   : > { %283 = vst.msk [vmem:[#allocation2 + $0x10] sm:$0x3] %vm282_vm1, %v4578_v0  ;;  %287 = vst.msk [vmem:[#allocation2 + $0x1a8] sm:$0x3] %vm282_vm1, %v4578_v0 }
  0x22   : > { %290 = vst.msk [vmem:[#allocation2 + $0x18] sm:$0x1] %vm288_vm2, %v4578_v0  ;;  %291 = vst.msk [vmem:[#allocation2 + $0x30] sm:$0x1] %vm288_vm2, %v4578_v0 }
  0x23   : > { %292 = vst.msk [vmem:[#allocation2 + $0x48] sm:$0x1] %vm288_vm2, %v4578_v0  ;;  %293 = vst.msk [vmem:[#allocation2 + $0x60] sm:$0x1] %vm288_vm2, %v4578_v0 }
  0x24   : > { %294 = vst.msk [vmem:[#allocation2 + $0x78] sm:$0x1] %vm288_vm2, %v4578_v0  ;;  %295 = vst.msk [vmem:[#allocation2 + $0x90] sm:$0x1] %vm288_vm2, %v4578_v0 }
  0x25   : > { %296 = vst.msk [vmem:[#allocation2 + $0xa8] sm:$0x1] %vm288_vm2, %v4578_v0  ;;  %297 = vst.msk [vmem:[#allocation2 + $0xc0] sm:$0x1] %vm288_vm2, %v4578_v0 }
  0x26   : > { %298 = vst.msk [vmem:[#allocation2 + $0xd8] sm:$0x1] %vm288_vm2, %v4578_v0  ;;  %299 = vst.msk [vmem:[#allocation2 + $0xf0] sm:$0x1] %vm288_vm2, %v4578_v0 }
  0x27   : > { %300 = vst.msk [vmem:[#allocation2 + $0x108] sm:$0x1] %vm288_vm2, %v4578_v0  ;;  %301 = vst.msk [vmem:[#allocation2 + $0x120] sm:$0x1] %vm288_vm2, %v4578_v0 }
  0x28   : > { %302 = vst.msk [vmem:[#allocation2 + $0x138] sm:$0x1] %vm288_vm2, %v4578_v0  ;;  %303 = vst.msk [vmem:[#allocation2 + $0x150] sm:$0x1] %vm288_vm2, %v4578_v0  ;;  %v423_v6 = vld [vmem:[#allocation2 + $0x9] sm:$0xff] }
  0x29   : > { %304 = vst.msk [vmem:[#allocation2 + $0x168] sm:$0x1] %vm288_vm2, %v4578_v0  ;;  %305 = vst.msk [vmem:[#allocation2 + $0x180] sm:$0x1] %vm288_vm2, %v4578_v0  ;;  %713 = vrot.lane.b32.xlu0 %v423_v6, %s4580_s8 }
  0x2a   : > { %308 = vst.msk [vmem:[#allocation2 + $0x29] sm:$0x1] %vm288_vm2, %v4578_v0  ;;  %309 = vst.msk [vmem:[#allocation2 + $0x41] sm:$0x1] %vm288_vm2, %v4578_v0 }
  0x2b   : > { %310 = vst.msk [vmem:[#allocation2 + $0x59] sm:$0x1] %vm288_vm2, %v4578_v0  ;;  %311 = vst.msk [vmem:[#allocation2 + $0x71] sm:$0x1] %vm288_vm2, %v4578_v0 }
  0x2c   : > { %312 = vst.msk [vmem:[#allocation2 + $0x89] sm:$0x1] %vm288_vm2, %v4578_v0  ;;  %313 = vst.msk [vmem:[#allocation2 + $0xa1] sm:$0x1] %vm288_vm2, %v4578_v0 }
  0x2d   : > { %314 = vst.msk [vmem:[#allocation2 + $0xb9] sm:$0x1] %vm288_vm2, %v4578_v0  ;;  %315 = vst.msk [vmem:[#allocation2 + $0xd1] sm:$0x1] %vm288_vm2, %v4578_v0 }
  0x2e   : > { %316 = vst.msk [vmem:[#allocation2 + $0xe9] sm:$0x1] %vm288_vm2, %v4578_v0  ;;  %317 = vst.msk [vmem:[#allocation2 + $0x101] sm:$0x1] %vm288_vm2, %v4578_v0 }
  0x2f   : > { %318 = vst.msk [vmem:[#allocation2 + $0x119] sm:$0x1] %vm288_vm2, %v4578_v0  ;;  %319 = vst.msk [vmem:[#allocation2 + $0x131] sm:$0x1] %vm288_vm2, %v4578_v0 }
  0x30   : > { %320 = vst.msk [vmem:[#allocation2 + $0x149] sm:$0x1] %vm288_vm2, %v4578_v0  ;;  %321 = vst.msk [vmem:[#allocation2 + $0x161] sm:$0x1] %vm288_vm2, %v4578_v0 }
  0x31   : > { %322 = vst.msk [vmem:[#allocation2 + $0x179] sm:$0x1] %vm288_vm2, %v4578_v0  ;;  %323 = vst.msk [vmem:[#allocation2 + $0x191] sm:$0x1] %vm288_vm2, %v4578_v0 }
  0x32   : > { %2414 = vst [vmem:[#allocation3] sm:$0x1] %v4578_v0  ;;  %2431 = vst [vmem:[#allocation3 + $0x198] sm:$0x1] %v4578_v0 }
  0x33   : > { %2432 = vst [vmem:[#allocation3 + $0x11] sm:$0x1] %v4578_v0  ;;  %2449 = vst [vmem:[#allocation3 + $0x1a9] sm:$0x1] %v4578_v0 }
  0x34   : > { %307 = vst.msk [vmem:[#allocation2 + $0x11] sm:$0x1] %vm288_vm2, %v4578_v0  ;;  %289 = vst.msk [vmem:[#allocation2] sm:$0x1] %vm288_vm2, %v4578_v0 }
  0x35   : > { %306 = vst.msk [vmem:[#allocation2 + $0x198] sm:$0x1] %vm288_vm2, %v4578_v0  ;;  %324 = vst.msk [vmem:[#allocation2 + $0x1a9] sm:$0x1] %vm288_vm2, %v4578_v0 }
  0x36   : > { %358 = vst.msk [vmem:[#allocation2 + $0x19] sm:$0xff] %vm279_vm0, %v325_v1  ;;  %359 = vst.msk [vmem:[#allocation2 + $0x21] sm:$0xff] %vm279_vm0, %v326_v2 }
  0x37   : > { %360 = vst.msk [vmem:[#allocation2 + $0x31] sm:$0xff] %vm279_vm0, %v327_v3  ;;  %361 = vst.msk [vmem:[#allocation2 + $0x39] sm:$0xff] %vm279_vm0, %v328_v8 }
  0x38   : > { %362 = vst.msk [vmem:[#allocation2 + $0x49] sm:$0xff] %vm279_vm0, %v329_v9  ;;  %363 = vst.msk [vmem:[#allocation2 + $0x51] sm:$0xff] %vm279_vm0, %v330_v10  ;;  %v391_v9 = vld [vmem:[#allocation2 + $0x8] sm:$0xff] }
  0x39   : > { %364 = vst.msk [vmem:[#allocation2 + $0x61] sm:$0xff] %vm279_vm0, %v331_v11  ;;  %365 = vst.msk [vmem:[#allocation2 + $0x69] sm:$0xff] %vm279_vm0, %v332_v12 }
  0x3a   : > { %366 = vst.msk [vmem:[#allocation2 + $0x79] sm:$0xff] %vm279_vm0, %v333_v13  ;;  %367 = vst.msk [vmem:[#allocation2 + $0x81] sm:$0xff] %vm279_vm0, %v334_v14 }
  0x3b   : > { %v455_v7 = vld [vmem:[#allocation2 + $0xa] sm:$0xff]  ;;  %368 = vst.msk [vmem:[#allocation2 + $0x91] sm:$0xff] %vm279_vm0, %v335_v25  ;;  %369 = vst.msk [vmem:[#allocation2 + $0x99] sm:$0xff] %vm279_vm0, %v336_v26  ;;  %v390_v5 = vld [vmem:[#allocation2] sm:$0xff] }
  0x3c   : > { %841 = vrot.lane.b32.xlu1 %v455_v7, %s4579_s30  ;;  %370 = vst.msk [vmem:[#allocation2 + $0xa9] sm:$0xff] %vm279_vm0, %v337_v34  ;;  %371 = vst.msk [vmem:[#allocation2 + $0xb1] sm:$0xff] %vm279_vm0, %v338_v35 }
  0x3d   : > { %v4800_v15 = vld [vmem:[#allocation2 + $0x20] sm:$0xff]  ;;  %v4802_v16 = vld [vmem:[#allocation2 + $0x18] sm:$0xff]  ;;  %372 = vst.msk [vmem:[#allocation2 + $0xc1] sm:$0xff] %vm279_vm0, %v339_v42  ;;  %373 = vst.msk [vmem:[#allocation2 + $0xc9] sm:$0xff] %vm279_vm0, %v340_v43 }
  0x3e   : > { %967 = vrot.lane.b32.xlu0 %v4802_v16, %s4581_s9  ;;  %v519_v17 = vld [vmem:[#allocation2 + $0x21] sm:$0xff]  ;;  %v518_v18 = vld [vmem:[#allocation2 + $0x19] sm:$0xff]  ;;  %v4820_v24 = vld [vmem:[#allocation2 + $0x30] sm:$0xff]  ;;  %374 = vst.msk [vmem:[#allocation2 + $0xd9] sm:$0xff] %vm279_vm0, %v341_v50 }
  0x3f   : > { %v551_v19 = vld [vmem:[#allocation2 + $0x22] sm:$0xff]  ;;  %v550_v20 = vld [vmem:[#allocation2 + $0x1a] sm:$0xff]  ;;  %v615_v29 = vld [vmem:[#allocation2 + $0x31] sm:$0xff]  ;;  %375 = vst.msk [vmem:[#allocation2 + $0xe1] sm:$0xff] %vm279_vm0, %v342_v51 }
  0x40   : > { %969 = vrot.lane.b32.xlu1 %v4800_v15, %s4581_s9  ;;  %v4818_v23 = vld [vmem:[#allocation2 + $0x38] sm:$0xff]  ;;  %v4860_v36 = vld [vmem:[#allocation2 + $0x48] sm:$0xff]  ;;  %v4862_v37 = vld [vmem:[#allocation2 + $0x50] sm:$0xff] }
  0x41   : > { %v616_v28 = vld [vmem:[#allocation2 + $0x39] sm:$0xff]  ;;  %v617_v38 = vld [vmem:[#allocation2 + $0x49] sm:$0xff]  ;;  %v618_v39 = vld [vmem:[#allocation2 + $0x51] sm:$0xff] }
  0x42   : > { %1095 = vrot.lane.b32.xlu0 %v518_v18, %s4582_s10  ;;  %v647_v32 = vld [vmem:[#allocation2 + $0x32] sm:$0xff]  ;;  %v648_v33 = vld [vmem:[#allocation2 + $0x3a] sm:$0xff]  ;;  %v649_v40 = vld [vmem:[#allocation2 + $0x4a] sm:$0xff] }
  0x43   : > { %v650_v41 = vld [vmem:[#allocation2 + $0x52] sm:$0xff]  ;;  %v4888_v44 = vld [vmem:[#allocation2 + $0x60] sm:$0xff]  ;;  %v4890_v45 = vld [vmem:[#allocation2 + $0x68] sm:$0xff] }
  0x44   : > { %1097 = vrot.lane.b32.xlu1 %v519_v17, %s4582_s10  ;;  %v619_v46 = vld [vmem:[#allocation2 + $0x61] sm:$0xff]  ;;  %v620_v47 = vld [vmem:[#allocation2 + $0x69] sm:$0xff]  ;;  %v4916_v52 = vld [vmem:[#allocation2 + $0x78] sm:$0xff] }
  0x45   : > { %v651_v48 = vld [vmem:[#allocation2 + $0x62] sm:$0xff]  ;;  %v652_v49 = vld [vmem:[#allocation2 + $0x6a] sm:$0xff]  ;;  %v4924_v56 = vld [vmem:[#allocation2 + $0x79] sm:$0xff] }
  0x46   : > { %1223 = vrot.lane.b32.xlu0 %v550_v20, %s4583_s11  ;;  %v4918_v53 = vld [vmem:[#allocation2 + $0x80] sm:$0xff]  ;;  %v2786_v51 = vld [vmem:[%s7304_s4 + $0x70] sm:$0xff] }
  0x47   : > { %v4926_v57 = vld [vmem:[#allocation2 + $0x81] sm:$0xff] }
  0x48   : > { %1225 = vrot.lane.b32.xlu1 %v551_v19, %s4583_s11  ;;  %v4932_v60 = vld [vmem:[#allocation2 + $0x7a] sm:$0xff]  ;;  %v4937_v63 = vld [vmem:[#allocation2 + $0x82] sm:$0xff] }
  0x4a   : > { %1351 = vrot.lane.b32.xlu0 %v4820_v24, %s4584_s18 }
  0x4c   : > { %1353 = vrot.lane.b32.xlu1 %v4818_v23, %s4584_s18 }
  0x4e   : > { %1479 = vrot.lane.b32.xlu0 %v615_v29, %s4585_s21 }
  0x50   : > { %1481 = vrot.lane.b32.xlu1 %v616_v28, %s4585_s21 }
  0x52   : > { %1607 = vrot.lane.b32.xlu0 %v647_v32, %s4586_s27 }
  0x54   : > { %715 = vrot.lane.b32.xlu1 %v518_v18, %s4580_s8 }
  0x56   : > { %1609 = vrot.lane.b32.xlu0 %v648_v33, %s4586_s27 }
  0x58   : > { %717 = vrot.lane.b32.xlu1 %v519_v17, %s4580_s8 }
  0x5a   : > { %843 = vrot.lane.b32.xlu0 %v550_v20, %s4579_s30  ;;  %v344_v20 = vld [vmem:[%s4774_s29 + $0x98] sm:$0xff] }
  0x5b   : > { %377 = vst.msk [vmem:[#allocation2 + $0xf9] sm:$0xff] %vm279_vm0, %v344_v20 }
  0x5c   : > { %845 = vrot.lane.b32.xlu1 %v551_v19, %s4579_s30  ;;  %v343_v19 = vld [vmem:[%s4774_s29 + $0x90] sm:$0xff] }
  0x5d   : > { %376 = vst.msk [vmem:[#allocation2 + $0xf1] sm:$0xff] %vm279_vm0, %v343_v19 }
  0x5e   : > { %971 = vrot.lane.b32.xlu0 %v4820_v24, %s4581_s9 }
  0x60   : > { %973 = vrot.lane.b32.xlu1 %v4818_v23, %s4581_s9 }
  0x62   : > { %1099 = vrot.lane.b32.xlu0 %v615_v29, %s4582_s10 }
  0x64   : > { %1101 = vrot.lane.b32.xlu1 %v616_v28, %s4582_s10 }
  0x66   : > { %1227 = vrot.lane.b32.xlu0 %v647_v32, %s4583_s11 }
  0x68   : > { %1229 = vrot.lane.b32.xlu1 %v648_v33, %s4583_s11 }
  0x6a   : > { %1355 = vrot.lane.b32.xlu0 %v4860_v36, %s4584_s18 }
  0x6c   : > { %1357 = vrot.lane.b32.xlu1 %v4862_v37, %s4584_s18 }
  0x6e   : > { %1483 = vrot.lane.b32.xlu0 %v617_v38, %s4585_s21 }
  0x70   : > { %1485 = vrot.lane.b32.xlu1 %v618_v39, %s4585_s21 }
  0x72   : > { %1611 = vrot.lane.b32.xlu0 %v649_v40, %s4586_s27 }
  0x74   : > { %719 = vrot.lane.b32.xlu1 %v615_v29, %s4580_s8 }
  0x76   : > { %1613 = vrot.lane.b32.xlu0 %v650_v41, %s4586_s27 }
  0x78   : > { %721 = vrot.lane.b32.xlu1 %v616_v28, %s4580_s8 }
  0x7a   : > { %847 = vrot.lane.b32.xlu0 %v647_v32, %s4579_s30 }
  0x7c   : > { %849 = vrot.lane.b32.xlu1 %v648_v33, %s4579_s30  ;;  %v4975_v33 = vld [vmem:[#allocation2 + $0x90] sm:$0xff] }
  0x7e   : > { %975 = vrot.lane.b32.xlu0 %v4860_v36, %s4581_s9 }
  0x80   : > { %977 = vrot.lane.b32.xlu1 %v4862_v37, %s4581_s9 }
  0x82   : > { %1103 = vrot.lane.b32.xlu0 %v617_v38, %s4582_s10 }
  0x84   : > { %1105 = vrot.lane.b32.xlu1 %v618_v39, %s4582_s10 }
  0x86   : > { %1231 = vrot.lane.b32.xlu0 %v649_v40, %s4583_s11  ;;  %v840_v54 = vpop.permute.xlu1 %839 }
  0x87   : > { %v712_v55 = vpop.permute.xlu0 %711 }
  0x88   : > { %1233 = vrot.lane.b32.xlu1 %v650_v41, %s4583_s11  ;;  %v1703_v6 = vsel %vm279_vm0, %v390_v5, %v712_v55  ;;  %v2785_v55 = vld [vmem:[%s7304_s4 + $0x68] sm:$0xff]  ;;  %v2780_v5 = vld [vmem:[%s7304_s4 + $0x40] sm:$0xff] }
  0x89   : > { %v1736_v10 = vsel %vm1735_vm4, %v1703_v6, %v840_v54  ;;  %v5013_v54 = vld [vmem:[#allocation2 + $0x9a] sm:$0xff] }
  0x8a   : > { %1359 = vrot.lane.b32.xlu0 %v4888_v44, %s4584_s18  ;;  %v2779_v6 = vld [vmem:[%s7304_s4 + $0x38] sm:$0xff] }
  0x8c   : > { %1361 = vrot.lane.b32.xlu1 %v4890_v45, %s4584_s18 }
  0x8e   : > { %1487 = vrot.lane.b32.xlu0 %v619_v46, %s4585_s21 }
  0x90   : > { %1489 = vrot.lane.b32.xlu1 %v620_v47, %s4585_s21 }
  0x92   : > { %1615 = vrot.lane.b32.xlu0 %v651_v48, %s4586_s27 }
  0x94   : > { %723 = vrot.lane.b32.xlu1 %v617_v38, %s4580_s8 }
  0x96   : > { %1617 = vrot.lane.b32.xlu0 %v652_v49, %s4586_s27 }
  0x98   : > { %725 = vrot.lane.b32.xlu1 %v618_v39, %s4580_s8  ;;  %v4980_v39 = vld [vmem:[#allocation2 + $0x98] sm:$0xff] }
  0x9a   : > { %851 = vrot.lane.b32.xlu0 %v649_v40, %s4579_s30 }
  0x9b   : > { %v714_v59 = vpop.permute.xlu0 %713 }
  0x9c   : > { %853 = vrot.lane.b32.xlu1 %v650_v41, %s4579_s30  ;;  %v1704_v11 = vsel %vm279_vm0, %v391_v9, %v714_v59  ;;  %v4988_v41 = vld [vmem:[#allocation2 + $0x91] sm:$0xff] }
  0x9e   : > { %979 = vrot.lane.b32.xlu0 %v4888_v44, %s4581_s9 }
  0xa0   : > { %981 = vrot.lane.b32.xlu1 %v4890_v45, %s4581_s9 }
  0xa2   : > { %1107 = vrot.lane.b32.xlu0 %v619_v46, %s4582_s10 }
  0xa4   : > { %1109 = vrot.lane.b32.xlu1 %v620_v47, %s4582_s10 }
  0xa6   : > { %1235 = vrot.lane.b32.xlu0 %v651_v48, %s4583_s11 }
  0xa8   : > { %1237 = vrot.lane.b32.xlu1 %v652_v49, %s4583_s11 }
  0xaa   : > { %1363 = vrot.lane.b32.xlu0 %v4916_v52, %s4584_s18 }
  0xac   : > { %1365 = vrot.lane.b32.xlu1 %v4918_v53, %s4584_s18 }
  0xae   : > { %v842_v58 = vpop.permute.xlu1 %841  ;;  %1491 = vrot.lane.b32.xlu0 %v4924_v56, %s4585_s21 }
  0xaf   : > { %v1737_v21 = vsel %vm1735_vm4, %v1704_v11, %v842_v58 }
  0xb0   : > { %1493 = vrot.lane.b32.xlu1 %v4926_v57, %s4585_s21  ;;  %v968_v62 = vpop.permute.xlu0 %967 }
  0xb1   : > { %v1769_v12 = vsel %vm1768_vm5, %v1736_v10, %v968_v62  ;;  %v2778_v10 = vld [vmem:[%s7304_s4 + $0x30] sm:$0xff] }
  0xb2   : > { %v970_v61 = vpop.permute.xlu1 %969  ;;  %1619 = vrot.lane.b32.xlu0 %v4932_v60, %s4586_s27 }
  0xb3   : > { %v1770_v25 = vsel %vm1768_vm5, %v1737_v21, %v970_v61  ;;  %v2784_v61 = vld [vmem:[%s7304_s4 + $0x60] sm:$0xff] }
  0xb4   : > { %727 = vrot.lane.b32.xlu1 %v619_v46, %s4580_s8  ;;  %v1096_v2 = vpop.permute.xlu0 %1095  ;;  %v4992_v46 = vld [vmem:[#allocation2 + $0x99] sm:$0xff] }
  0xb5   : > { %v1802_v17 = vsel %vm1801_vm6, %v1769_v12, %v1096_v2  ;;  %v2782_v2 = vld [vmem:[%s7304_s4 + $0x50] sm:$0xff] }
  0xb6   : > { %v1098_v1 = vpop.permute.xlu1 %1097  ;;  %1621 = vrot.lane.b32.xlu0 %v4937_v63, %s4586_s27 }
  0xb7   : > { %v1803_v29 = vsel %vm1801_vm6, %v1770_v25, %v1098_v1 }
  0xb8   : > { %729 = vrot.lane.b32.xlu1 %v620_v47, %s4580_s8  ;;  %v1224_v4 = vpop.permute.xlu0 %1223  ;;  %v4998_v47 = vld [vmem:[#allocation2 + $0x92] sm:$0xff] }
  0xb9   : > { %v1835_v18 = vsel %vm1834_vm7, %v1802_v17, %v1224_v4 }
  0xba   : > { %v1226_v3 = vpop.permute.xlu1 %1225  ;;  %855 = vrot.lane.b32.xlu0 %v651_v48, %s4579_s30  ;;  %v2787_v48 = vld [vmem:[%s7304_s4 + $0x78] sm:$0xff] }
  0xbb   : > { %v1836_v31 = vsel %vm1834_vm7, %v1803_v29, %v1226_v3  ;;  %2917 = vmatpush1.msra.mxu1 %v2787_v48  ;;  %v2773_v48 = vld [vmem:[%s7304_s4 + $0x8] sm:$0xff] }
  0xbc   : > { %857 = vrot.lane.b32.xlu1 %v652_v49, %s4579_s30  ;;  %v1352_v8 = vpop.permute.xlu0 %1351  ;;  %2918 = vmatprep.subr.mxu1 %v4578_v0 }
  0xbd   : > { %v1868_v22 = vsel %vm1867_vm8, %v1835_v18, %v1352_v8  ;;  %2919 = vmatpush1.msra.mxu1 %v2786_v51  ;;  %v5129_v51 = vld [vmem:[#allocation2 + $0xb1] sm:$0xff] }
  0xbe   : > { %v1354_v7 = vpop.permute.xlu1 %1353  ;;  %983 = vrot.lane.b32.xlu0 %v4916_v52, %s4581_s9  ;;  %2920 = vmatprep.subr.mxu1 %v4578_v0 }
  0xbf   : > { %v1869_v32 = vsel %vm1867_vm8, %v1836_v31, %v1354_v7  ;;  %2921 = vmatpush1.msra.mxu1 %v2785_v55  ;;  %v2775_v31 = vld [vmem:[%s7304_s4 + $0x18] sm:$0xff]  ;;  %v2772_v55 = vld [vmem:[%s7304_s4] sm:$0xff] }
  0xc0   : > { %985 = vrot.lane.b32.xlu1 %v4918_v53, %s4581_s9  ;;  %v1480_v14 = vpop.permute.xlu0 %1479  ;;  %2922 = vmatprep.subr.mxu1 %v4578_v0 }
  0xc1   : > { %v1901_v26 = vsel %vm1900_vm9, %v1868_v22, %v1480_v14  ;;  %2923 = vmatpush1.msra.mxu1 %v2784_v61  ;;  %v346_v14 = vld [vmem:[%s4774_s29 + $0xa8] sm:$0xff] }
  0xc2   : > { %v1482_v13 = vpop.permute.xlu1 %1481  ;;  %1111 = vrot.lane.b32.xlu0 %v4924_v56, %s4582_s10  ;;  %2924 = vmatprep.subr.mxu1 %v4578_v0  ;;  %379 = vst.msk [vmem:[#allocation2 + $0x111] sm:$0xff] %vm279_vm0, %v346_v14 }
  0xc3   : > { %v1902_v34 = vsel %vm1900_vm9, %v1869_v32, %v1482_v13  ;;  %v345_v13 = vld [vmem:[%s4774_s29 + $0xa0] sm:$0xff] }
  0xc4   : > { %1113 = vrot.lane.b32.xlu1 %v4926_v57, %s4582_s10  ;;  %v1608_v27 = vpop.permute.xlu0 %1607  ;;  %378 = vst.msk [vmem:[#allocation2 + $0x109] sm:$0xff] %vm279_vm0, %v345_v13 }
  0xc5   : > { %v1934_v30 = vsel %vm1933_vm10, %v1901_v26, %v1608_v27  ;;  %v2776_v27 = vld [vmem:[%s7304_s4 + $0x20] sm:$0xff] }
  0xc6   : > { %v716_v28 = vpop.permute.xlu1 %715  ;;  %4383 = vmatprep.mubr.msk.f32.mxu0 %vm1971_vm11, %v1934_v30  ;;  %1239 = vrot.lane.b32.xlu0 %v4932_v60, %s4583_s11  ;;  %v5101_v30 = vld [vmem:[#allocation2 + $0xa8] sm:$0xff] }
  0xc8   : > { %1241 = vrot.lane.b32.xlu1 %v4937_v63, %s4583_s11  ;;  %v1610_v35 = vpop.permute.xlu0 %1609 }
  0xc9   : > { %v1935_v40 = vsel %vm1933_vm10, %v1902_v34, %v1610_v35 }
  0xca   : > { %v4978_v38 = vpop.permute.xlu1 %717  ;;  %4384 = vmatmul.mubr.msk.f32.vlgmr.msra.gmra.mxu0 %vm1971_vm11, %v1935_v40  ;;  %1367 = vrot.lane.b32.xlu0 %v4975_v33, %s4584_s18 }
  0xcb   : > { %v1706_v11 = vsel %vm279_vm0, %v4800_v15, %v4978_v38  ;;  %v2777_v15 = vld [vmem:[%s7304_s4 + $0x28] sm:$0xff]  ;;  %v5109_v38 = vld [vmem:[#allocation2 + $0xb0] sm:$0xff] }
  0xcc   : > { %1369 = vrot.lane.b32.xlu1 %v4980_v39, %s4584_s18  ;;  %v844_v42 = vpop.permute.xlu0 %843 }
  0xce   : > { %v4990_v43 = vpop.permute.xlu1 %845  ;;  %1495 = vrot.lane.b32.xlu0 %v4988_v41, %s4585_s21 }
  0xcf   : > { %v1739_v17 = vsel %vm1735_vm4, %v1706_v11, %v4990_v43  ;;  %v5121_v43 = vld [vmem:[#allocation2 + $0xa9] sm:$0xff] }
  0xd0   : > { %1497 = vrot.lane.b32.xlu1 %v4992_v46, %s4585_s21  ;;  %v972_v49 = vpop.permute.xlu0 %971 }
  0xd2   : > { %v5003_v50 = vpop.permute.xlu1 %973  ;;  %1623 = vrot.lane.b32.xlu0 %v4998_v47, %s4586_s27 }
  0xd3   : > { %v1772_v19 = vsel %vm1768_vm5, %v1739_v17, %v5003_v50  ;;  %v347_v17 = vld [vmem:[%s4774_s29 + $0xb0] sm:$0xff] }
  0xd4   : > { %731 = vrot.lane.b32.xlu1 %v4924_v56, %s4580_s8  ;;  %v1100_v58 = vpop.permute.xlu0 %1099  ;;  %v2783_v56 = vld [vmem:[%s7304_s4 + $0x58] sm:$0xff]  ;;  %380 = vst.msk [vmem:[#allocation2 + $0x121] sm:$0xff] %vm279_vm0, %v347_v17 }
  0xd5   : > { %2925 = vmatpush1.msra.mxu1 %v2783_v56 }
  0xd6   : > { %v1102_v59 = vpop.permute.xlu1 %1101  ;;  %1625 = vrot.lane.b32.xlu0 %v5013_v54, %s4586_s27  ;;  %2926 = vmatprep.subr.mxu1 %v4578_v0 }
  0xd7   : > { %2927 = vmatpush1.msra.mxu1 %v2782_v2  ;;  %v1805_v25 = vsel %vm1801_vm6, %v1772_v19, %v1102_v59  ;;  %v2803_v59 = vld [vmem:[%s7304_s4 + $0xf8] sm:$0xff]  ;;  %v2801_v2 = vld [vmem:[%s7304_s4 + $0xe8] sm:$0xff] }
  0xd8   : > { %733 = vrot.lane.b32.xlu1 %v4926_v57, %s4580_s8  ;;  %v1228_v62 = vpop.permute.xlu0 %1227  ;;  %2928 = vmatprep.subr.mxu1 %v4578_v0  ;;  %v2781_v57 = vld [vmem:[%s7304_s4 + $0x48] sm:$0xff] }
  0xd9   : > { %2929 = vmatpush1.msra.mxu1 %v2781_v57 }
  0xda   : > { %v1230_v1 = vpop.permute.xlu1 %1229  ;;  %859 = vrot.lane.b32.xlu0 %v4932_v60, %s4579_s30  ;;  %2930 = vmatprep.subr.mxu1 %v4578_v0  ;;  %v1705_v60 = vsel %vm279_vm0, %v4802_v16, %v716_v28 }
  0xdb   : > { %2931 = vmatpush1.msra.mxu1 %v2780_v5  ;;  %v1838_v28 = vsel %vm1834_vm7, %v1805_v25, %v1230_v1  ;;  %v5153_v1 = vld [vmem:[#allocation2 + $0xb2] sm:$0xff]  ;;  %v2793_v25 = vld [vmem:[%s7304_s4 + $0xa8] sm:$0xff] }
  0xdc   : > { %861 = vrot.lane.b32.xlu1 %v4937_v63, %s4579_s30  ;;  %v1356_v3 = vpop.permute.xlu0 %1355  ;;  %v1738_v63 = vsel %vm1735_vm4, %v1705_v60, %v844_v42  ;;  %2932 = vmatprep.subr.mxu1 %v4578_v0  ;;  %v2774_v42 = vld [vmem:[%s7304_s4 + $0x10] sm:$0xff] }
  0xdd   : > { %v1771_v7 = vsel %vm1768_vm5, %v1738_v63, %v972_v49  ;;  %2933 = vmatpush1.msra.mxu1 %v2779_v6  ;;  %v2798_v63 = vld [vmem:[%s7304_s4 + $0xd0] sm:$0xff] }
  0xde   : > { %v1358_v4 = vpop.permute.xlu1 %1357  ;;  %987 = vrot.lane.b32.xlu0 %v4975_v33, %s4581_s9  ;;  %v1804_v9 = vsel %vm1801_vm6, %v1771_v7, %v1100_v58  ;;  %2934 = vmatprep.subr.mxu1 %v4578_v0  ;;  %v5139_v58 = vld [vmem:[#allocation2 + $0xaa] sm:$0xff] }
  0xdf   : > { %v1837_v12 = vsel %vm1834_vm7, %v1804_v9, %v1228_v62  ;;  %2935 = vmatpush1.msra.mxu1 %v2778_v10  ;;  %v1871_v29 = vsel %vm1867_vm8, %v1838_v28, %v1358_v4  ;;  %v2802_v62 = vld [vmem:[%s7304_s4 + $0xf0] sm:$0xff]  ;;  %v2800_v4 = vld [vmem:[%s7304_s4 + $0xe0] sm:$0xff] }
  0xe0   : > { %989 = vrot.lane.b32.xlu1 %v4980_v39, %s4581_s9  ;;  %v1484_v16 = vpop.permute.xlu0 %1483  ;;  %v1870_v18 = vsel %vm1867_vm8, %v1837_v12, %v1356_v3  ;;  %2936 = vmatprep.subr.mxu1 %v4578_v0  ;;  %v2794_v12 = vld [vmem:[%s7304_s4 + $0xb0] sm:$0xff] }
  0xe1   : > { %v1903_v20 = vsel %vm1900_vm9, %v1870_v18, %v1484_v16  ;;  %2937 = vmatpush1.msra.mxu1 %v2777_v15  ;;  %v2796_v16 = vld [vmem:[%s7304_s4 + $0xc0] sm:$0xff]  ;;  %v348_v18 = vld [vmem:[%s4774_s29 + $0xb8] sm:$0xff] }
  0xe2   : > { %v1486_v8 = vpop.permute.xlu1 %1485  ;;  %1115 = vrot.lane.b32.xlu0 %v4988_v41, %s4582_s10  ;;  %2938 = vmatprep.subr.mxu1 %v4578_v0  ;;  %381 = vst.msk [vmem:[#allocation2 + $0x129] sm:$0xff] %vm279_vm0, %v348_v18 }
  0xe3   : > { %2939 = vmatpush1.msra.mxu1 %v2776_v27  ;;  %v1904_v32 = vsel %vm1900_vm9, %v1871_v29, %v1486_v8  ;;  %v2795_v8 = vld [vmem:[%s7304_s4 + $0xb8] sm:$0xff]  ;;  %v2792_v29 = vld [vmem:[%s7304_s4 + $0xa0] sm:$0xff] }
  0xe4   : > { %1117 = vrot.lane.b32.xlu1 %v4992_v46, %s4582_s10  ;;  %v1612_v21 = vpop.permute.xlu0 %1611  ;;  %2940 = vmatprep.subr.mxu1 %v4578_v0 }
  0xe5   : > { %v1936_v26 = vsel %vm1933_vm10, %v1903_v20, %v1612_v21  ;;  %2941 = vmatpush1.msra.mxu1 %v2775_v31 }
  0xe6   : > { %v5086_v22 = vpop.permute.xlu1 %719  ;;  %1243 = vrot.lane.b32.xlu0 %v4998_v47, %s4583_s11  ;;  %4386 = vmatprep.mubr.msk.f32.mxu0 %vm1971_vm11, %v1936_v26 }
  0xe7   : > { %2942 = vmatprep.subr.mxu1 %v4578_v0 }
  0xe8   : > { %1245 = vrot.lane.b32.xlu1 %v5013_v54, %s4583_s11  ;;  %v1614_v34 = vpop.permute.xlu0 %1613  ;;  %2943 = vmatpush1.msra.mxu1 %v2774_v42  ;;  %v5244_v42 = vld [vmem:[#allocation2 + $0xc8] sm:$0xff] }
  0xe9   : > { %v1937_v40 = vsel %vm1933_vm10, %v1904_v32, %v1614_v34  ;;  %2944 = vmatprep.subr.mxu1 %v4578_v0  ;;  %v5241_v32 = vld [vmem:[#allocation2 + $0xc0] sm:$0xff] }
  0xea   : > { %v5107_v35 = vpop.permute.xlu1 %721  ;;  %1371 = vrot.lane.b32.xlu0 %v5101_v30, %s4584_s18  ;;  %4387 = vmatmul.mubr.msk.f32.gmra.mxu0 %vm1971_vm11, %v1937_v40 }
  0xeb   : > { %2945 = vmatpush1.msra.mxu1 %v2773_v48  ;;  %v1708_v13 = vsel %vm279_vm0, %v4818_v23, %v5107_v35 }
  0xec   : > { %1373 = vrot.lane.b32.xlu1 %v5109_v38, %s4584_s18  ;;  %v848_v49 = vpop.permute.xlu0 %847  ;;  %2946 = vmatprep.subr.mxu1 %v4578_v0 }
  0xed   : > { %2947 = vmatpush1.msra.mxu1 %v2772_v55  ;;  %v5258_v55 = vld [vmem:[#allocation3 + $0x8] sm:$0xff] }
  0xee   : > { %v5127_v50 = vpop.permute.xlu1 %849  ;;  %1499 = vrot.lane.b32.xlu0 %v5121_v43, %s4585_s21  ;;  %2948 = vmatprep.subr.mxu1 %v4578_v0 }
  0xef   : > { %2949 = vmatpush2.msra.mxu1 %v2803_v59  ;;  %v1741_v15 = vsel %vm1735_vm4, %v1708_v13, %v5127_v50  ;;  %v5256_v50 = vld [vmem:[#allocation2 + $0xc1] sm:$0xff] }
  0xf0   : > { %1501 = vrot.lane.b32.xlu1 %v5129_v51, %s4585_s21  ;;  %v976_v61 = vpop.permute.xlu0 %975  ;;  %2950 = vmatprep.subr.mxu1 %v4578_v0 }
  0xf1   : > { %2951 = vmatpush2.msra.mxu1 %v2802_v62  ;;  %v2789_v62 = vld [vmem:[%s7304_s4 + $0x88] sm:$0xff] }
  0xf2   : > { %v978_v56 = vpop.permute.xlu1 %977  ;;  %1627 = vrot.lane.b32.xlu0 %v5139_v58, %s4586_s27  ;;  %2952 = vmatprep.subr.mxu1 %v4578_v0 }
  0xf3   : > { %2953 = vmatpush2.msra.mxu1 %v2801_v2  ;;  %v1774_v23 = vsel %vm1768_vm5, %v1741_v15, %v978_v56  ;;  %v5264_v56 = vld [vmem:[#allocation2 + $0xc9] sm:$0xff]  ;;  %v2515_v2 = vld [vmem:[#allocation3 + $0x1] sm:$0xff] }
  0xf4   : > { %735 = vrot.lane.b32.xlu1 %v4988_v41, %s4580_s8  ;;  %v1104_v57 = vpop.permute.xlu0 %1103  ;;  %2954 = vmatprep.subr.mxu1 %v4578_v0  ;;  %v2799_v41 = vld [vmem:[%s7304_s4 + $0xd8] sm:$0xff] }
  0xf5   : > { %2955 = vmatpush2.msra.mxu1 %v2800_v4  ;;  %2980 = vmatprep.mubr.f32.mxu1 %v2515_v2 }
  0xf6   : > { %v1106_v3 = vpop.permute.xlu1 %1105  ;;  %1629 = vrot.lane.b32.xlu0 %v5153_v1, %s4586_s27  ;;  %2956 = vmatprep.subr.mxu1 %v4578_v0 }
  0xf7   : > { %2957 = vmatpush2.msra.mxu1 %v2799_v41  ;;  %v1807_v26 = vsel %vm1801_vm6, %v1774_v23, %v1106_v3  ;;  %v2788_v3 = vld [vmem:[%s7304_s4 + $0x80] sm:$0xff] }
  0xf8   : > { %737 = vrot.lane.b32.xlu1 %v4992_v46, %s4580_s8  ;;  %v1232_v5 = vpop.permute.xlu0 %1231  ;;  %2958 = vmatprep.subr.mxu1 %v4578_v0  ;;  %v2797_v46 = vld [vmem:[%s7304_s4 + $0xc8] sm:$0xff] }
  0xf9   : > { %2959 = vmatpush2.msra.mxu1 %v2798_v63  ;;  %v5285_v63 = vld [vmem:[#allocation2 + $0xca] sm:$0xff] }
  0xfa   : > { %v1234_v60 = vpop.permute.xlu1 %1233  ;;  %863 = vrot.lane.b32.xlu0 %v4998_v47, %s4579_s30  ;;  %2960 = vmatprep.subr.mxu1 %v4578_v0  ;;  %v1707_v47 = vsel %vm279_vm0, %v4820_v24, %v5086_v22 }
  0xfb   : > { %2961 = vmatpush2.msra.mxu1 %v2797_v46  ;;  %v1840_v28 = vsel %vm1834_vm7, %v1807_v26, %v1234_v60  ;;  %v2516_v60 = vld [vmem:[#allocation3 + $0x9] sm:$0xff] }
  0xfc   : > { %865 = vrot.lane.b32.xlu1 %v5013_v54, %s4579_s30  ;;  %v1360_v6 = vpop.permute.xlu0 %1359  ;;  %v1740_v54 = vsel %vm1735_vm4, %v1707_v47, %v848_v49  ;;  %2962 = vmatprep.subr.mxu1 %v4578_v0  ;;  %v2791_v49 = vld [vmem:[%s7304_s4 + $0x98] sm:$0xff] }
  0xfd   : > { %v1773_v9 = vsel %vm1768_vm5, %v1740_v54, %v976_v61  ;;  %2963 = vmatpush2.msra.mxu1 %v2796_v16 }
  0xfe   : > { %v1362_v7 = vpop.permute.xlu1 %1361  ;;  %991 = vrot.lane.b32.xlu0 %v5101_v30, %s4581_s9  ;;  %v1806_v11 = vsel %vm1801_vm6, %v1773_v9, %v1104_v57  ;;  %2964 = vmatprep.subr.mxu1 %v4578_v0  ;;  %v5274_v57 = vld [vmem:[#allocation2 + $0xc2] sm:$0xff] }
  0xff   : > { %v1839_v14 = vsel %vm1834_vm7, %v1806_v11, %v1232_v5  ;;  %2965 = vmatpush2.msra.mxu1 %v2795_v8  ;;  %v1873_v31 = vsel %vm1867_vm8, %v1840_v28, %v1362_v7  ;;  %v2483_v5 = vld [vmem:[#allocation3] sm:$0xff]  ;;  %v350_v11 = vld [vmem:[%s4774_s29 + $0xc8] sm:$0xff] }
 0x100   : > { %993 = vrot.lane.b32.xlu1 %v5109_v38, %s4581_s9  ;;  %v1488_v24 = vpop.permute.xlu0 %1487  ;;  %v1872_v19 = vsel %vm1867_vm8, %v1839_v14, %v1360_v6  ;;  %2966 = vmatprep.subr.mxu1 %v4578_v0  ;;  %383 = vst.msk [vmem:[#allocation2 + $0x141] sm:$0xff] %vm279_vm0, %v350_v11 }
 0x101   : > { %v1905_v20 = vsel %vm1900_vm9, %v1872_v19, %v1488_v24  ;;  %2967 = vmatpush2.msra.mxu1 %v2794_v12 }
 0x102   : > { %v1490_v10 = vpop.permute.xlu1 %1489  ;;  %1119 = vrot.lane.b32.xlu0 %v5121_v43, %s4582_s10  ;;  %2968 = vmatprep.subr.mxu1 %v4578_v0 }
 0x103   : > { %2969 = vmatpush2.msra.mxu1 %v2793_v25  ;;  %v1906_v34 = vsel %vm1900_vm9, %v1873_v31, %v1490_v10 }
 0x104   : > { %1121 = vrot.lane.b32.xlu1 %v5129_v51, %s4582_s10  ;;  %v1616_v21 = vpop.permute.xlu0 %1615  ;;  %2970 = vmatprep.subr.mxu1 %v4578_v0  ;;  %v2790_v0 = vld [vmem:[%s7304_s4 + $0x90] sm:$0xff] }
 0x105   : > { %v1938_v27 = vsel %vm1933_vm10, %v1905_v20, %v1616_v21  ;;  %2971 = vmatpush2.msra.mxu1 %v2792_v29  ;;  %v5331_v21 = vld [vmem:[#allocation2 + $0xd8] sm:$0xff] }
 0x106   : > { %v5223_v22 = vpop.permute.xlu1 %723  ;;  %1247 = vrot.lane.b32.xlu0 %v5139_v58, %s4583_s11  ;;  %4389 = vmatprep.mubr.msk.f32.mxu0 %vm1971_vm11, %v1938_v27  ;;  %v5334_v27 = vld [vmem:[#allocation2 + $0xe0] sm:$0xff] }
 0x107   : > { %2972 = vmatprep.subr.mxu1 %v5258_v55  ;;  %v1709_v54 = vsel %vm279_vm0, %v4860_v36, %v5223_v22  ;;  %v349_v36 = vld [vmem:[%s4774_s29 + $0xc0] sm:$0xff] }
 0x108   : > { %1249 = vrot.lane.b32.xlu1 %v5153_v1, %s4583_s11  ;;  %v1618_v35 = vpop.permute.xlu0 %1617  ;;  %2973 = vmatpush2.msra.mxu1 %v2791_v49  ;;  %382 = vst.msk [vmem:[#allocation2 + $0x139] sm:$0xff] %vm279_vm0, %v349_v36  ;;  %v5342_v29 = vld [vmem:[#allocation2 + $0xd9] sm:$0xff] }
 0x109   : > { %v1939_v48 = vsel %vm1933_vm10, %v1906_v34, %v1618_v35  ;;  %2974 = vmatprep.subr.mxu1 %v5258_v55  ;;  %v5344_v35 = vld [vmem:[#allocation2 + $0xe1] sm:$0xff]  ;;  %v5402_v36 = vld [vmem:[#allocation2 + $0xf8] sm:$0xff] }
 0x10a   : > { %v726_v40 = vpop.permute.xlu1 %725  ;;  %1375 = vrot.lane.b32.xlu0 %v5241_v32, %s4584_s18  ;;  %4390 = vmatmul.mubr.msk.f32.gmra.mxu0 %vm1971_vm11, %v1939_v48 }
 0x10b   : > { %2975 = vmatpush2.msra.mxu1 %v2790_v0  ;;  %v1710_v24 = vsel %vm279_vm0, %v4862_v37, %v726_v40  ;;  %v5350_v40 = vld [vmem:[#allocation2 + $0xda] sm:$0xff]  ;;  %v5356_v0 = vld [vmem:[#allocation2 + $0xe2] sm:$0xff] }
 0x10c   : > { %1377 = vrot.lane.b32.xlu1 %v5244_v42, %s4584_s18  ;;  %v852_v59 = vpop.permute.xlu0 %851  ;;  %2976 = vmatprep.subr.mxu1 %v5258_v55 }
 0x10d   : > { %2977 = vmatpush2.msra.mxu1 %v2789_v62 }
 0x10e   : > { %v854_v61 = vpop.permute.xlu1 %853  ;;  %1503 = vrot.lane.b32.xlu0 %v5256_v50, %s4585_s21  ;;  %2978 = vmatprep.subr.mxu1 %v5258_v55 }
 0x10f   : > { %2979 = vmatpush2.msra.mxu1 %v2788_v3  ;;  %v1743_v12 = vsel %vm1735_vm4, %v1710_v24, %v854_v61 }
 0x110   : > { %1505 = vrot.lane.b32.xlu1 %v5264_v56, %s4585_s21  ;;  %v980_v4 = vpop.permute.xlu0 %979  ;;  %2981 = vmatmul.mubr.f32.vlgmr.msra.gmra.mxu1 %v2483_v5 }
 0x111   : > { %2985 = vmatprep.mubr.f32.mxu1 %v2516_v60  ;;  %3366 = vmatprep.subr.mxu1 %v5258_v55 }
 0x112   : > { %v982_v41 = vpop.permute.xlu1 %981  ;;  %1631 = vrot.lane.b32.xlu0 %v5274_v57, %s4586_s27 }
 0x113   : > { %v1776_v37 = vsel %vm1768_vm5, %v1743_v12, %v982_v41 }
 0x114   : > { %739 = vrot.lane.b32.xlu1 %v5121_v43, %s4580_s8  ;;  %v1108_v46 = vpop.permute.xlu0 %1107  ;;  %2986 = vmatmul.mubr.f32.gmra.mxu1 %v5258_v55 }
 0x116   : > { %v1110_v6 = vpop.permute.xlu1 %1109  ;;  %1633 = vrot.lane.b32.xlu0 %v5285_v63, %s4586_s27 }
 0x117   : > { %v1809_v15 = vsel %vm1801_vm6, %v1776_v37, %v1110_v6  ;;  %v352_v6 = vld [vmem:[%s4774_s29 + $0xd8] sm:$0xff] }
 0x118   : > { %741 = vrot.lane.b32.xlu1 %v5129_v51, %s4580_s8  ;;  %v1236_v7 = vpop.permute.xlu0 %1235  ;;  %v1742_v51 = vsel %vm1735_vm4, %v1709_v54, %v852_v59  ;;  %385 = vst.msk [vmem:[#allocation2 + $0x159] sm:$0xff] %vm279_vm0, %v352_v6 }
 0x11a   : > { %v1238_v16 = vpop.permute.xlu1 %1237  ;;  %867 = vrot.lane.b32.xlu0 %v5139_v58, %s4579_s30  ;;  %v1775_v58 = vsel %vm1768_vm5, %v1742_v51, %v980_v4 }
 0x11b   : > { %v1842_v23 = vsel %vm1834_vm7, %v1809_v15, %v1238_v16 }
 0x11c   : > { %869 = vrot.lane.b32.xlu1 %v5153_v1, %s4579_s30  ;;  %v1364_v43 = vpop.permute.xlu0 %1363  ;;  %v1808_v1 = vsel %vm1801_vm6, %v1775_v58, %v1108_v46 }
 0x11d   : > { %v1841_v10 = vsel %vm1834_vm7, %v1808_v1, %v1236_v7  ;;  %v5399_v1 = vld [vmem:[#allocation2 + $0xf0] sm:$0xff] }
 0x11e   : > { %v1366_v47 = vpop.permute.xlu1 %1365  ;;  %995 = vrot.lane.b32.xlu0 %v5241_v32, %s4581_s9  ;;  %v1874_v13 = vsel %vm1867_vm8, %v1841_v10, %v1364_v43 }
 0x11f   : > { %v1875_v20 = vsel %vm1867_vm8, %v1842_v23, %v1366_v47  ;;  %v5424_v23 = vld [vmem:[#allocation2 + $0xfa] sm:$0xff] }
 0x120   : > { %997 = vrot.lane.b32.xlu1 %v5244_v42, %s4581_s9  ;;  %v1492_v8 = vpop.permute.xlu0 %1491 }
 0x121   : > { %v1907_v14 = vsel %vm1900_vm9, %v1874_v13, %v1492_v8  ;;  %v5410_v13 = vld [vmem:[#allocation2 + $0xf1] sm:$0xff] }
 0x122   : > { %v1494_v9 = vpop.permute.xlu1 %1493  ;;  %1123 = vrot.lane.b32.xlu0 %v5256_v50, %s4582_s10 }
 0x123   : > { %v1908_v22 = vsel %vm1900_vm9, %v1875_v20, %v1494_v9 }
 0x124   : > { %1125 = vrot.lane.b32.xlu1 %v5264_v56, %s4582_s10  ;;  %v1620_v17 = vpop.permute.xlu0 %1619 }
 0x125   : > { %v1940_v19 = vsel %vm1933_vm10, %v1907_v14, %v1620_v17  ;;  %v5412_v14 = vld [vmem:[#allocation2 + $0xf9] sm:$0xff] }
 0x126   : > { %v728_v18 = vpop.permute.xlu1 %727  ;;  %1251 = vrot.lane.b32.xlu0 %v5274_v57, %s4583_s11  ;;  %4392 = vmatprep.mubr.msk.f32.mxu0 %vm1971_vm11, %v1940_v19 }
 0x127   : > { %v1711_v4 = vsel %vm279_vm0, %v4888_v44, %v728_v18  ;;  %v351_v44 = vld [vmem:[%s4774_s29 + $0xd0] sm:$0xff] }
 0x128   : > { %1253 = vrot.lane.b32.xlu1 %v5285_v63, %s4583_s11  ;;  %v1622_v25 = vpop.permute.xlu0 %1621  ;;  %384 = vst.msk [vmem:[#allocation2 + $0x151] sm:$0xff] %vm279_vm0, %v351_v44  ;;  %v5418_v18 = vld [vmem:[#allocation2 + $0xf2] sm:$0xff] }
 0x129   : > { %v1941_v28 = vsel %vm1933_vm10, %v1908_v22, %v1622_v25  ;;  %v5470_v44 = vld [vmem:[#allocation2 + $0x110] sm:$0xff] }
 0x12a   : > { %v730_v26 = vpop.permute.xlu1 %729  ;;  %1379 = vrot.lane.b32.xlu0 %v5331_v21, %s4584_s18  ;;  %4393 = vmatmul.mubr.msk.f32.gmra.mxu0 %vm1971_vm11, %v1941_v28 }
 0x12c   : > { %1381 = vrot.lane.b32.xlu1 %v5334_v27, %s4584_s18  ;;  %v856_v31 = vpop.permute.xlu0 %855 }
 0x12e   : > { %v858_v34 = vpop.permute.xlu1 %857  ;;  %1507 = vrot.lane.b32.xlu0 %v5342_v29, %s4585_s21 }
 0x130   : > { %1509 = vrot.lane.b32.xlu1 %v5344_v35, %s4585_s21  ;;  %v984_v48 = vpop.permute.xlu0 %983 }
 0x132   : > { %v986_v49 = vpop.permute.xlu1 %985  ;;  %1635 = vrot.lane.b32.xlu0 %v5350_v40, %s4586_s27 }
 0x134   : > { %743 = vrot.lane.b32.xlu1 %v5256_v50, %s4580_s8  ;;  %v1112_v59 = vpop.permute.xlu0 %1111 }
 0x136   : > { %v1114_v61 = vpop.permute.xlu1 %1113  ;;  %1637 = vrot.lane.b32.xlu0 %v5356_v0, %s4586_s27 }
 0x138   : > { %745 = vrot.lane.b32.xlu1 %v5264_v56, %s4580_s8  ;;  %v1240_v62 = vpop.permute.xlu0 %1239  ;;  %v1744_v56 = vsel %vm1735_vm4, %v1711_v4, %v856_v31 }
 0x139   : > { %v1777_v41 = vsel %vm1768_vm5, %v1744_v56, %v984_v48 }
 0x13a   : > { %v1242_v2 = vpop.permute.xlu1 %1241  ;;  %871 = vrot.lane.b32.xlu0 %v5274_v57, %s4579_s30  ;;  %v1810_v5 = vsel %vm1801_vm6, %v1777_v41, %v1112_v59 }
 0x13b   : > { %v1843_v46 = vsel %vm1834_vm7, %v1810_v5, %v1240_v62 }
 0x13c   : > { %873 = vrot.lane.b32.xlu1 %v5285_v63, %s4579_s30  ;;  %v1368_v50 = vpop.permute.xlu0 %1367  ;;  %v1712_v63 = vsel %vm279_vm0, %v4890_v45, %v730_v26 }
 0x13d   : > { %v1745_v7 = vsel %vm1735_vm4, %v1712_v63, %v858_v34  ;;  %v1876_v16 = vsel %vm1867_vm8, %v1843_v46, %v1368_v50 }
 0x13e   : > { %v1370_v3 = vpop.permute.xlu1 %1369  ;;  %999 = vrot.lane.b32.xlu0 %v5331_v21, %s4581_s9  ;;  %v1778_v45 = vsel %vm1768_vm5, %v1745_v7, %v986_v49 }
 0x13f   : > { %v1811_v54 = vsel %vm1801_vm6, %v1778_v45, %v1114_v61  ;;  %v354_v61 = vld [vmem:[%s4774_s29 + $0xe8] sm:$0xff] }
 0x140   : > { %1001 = vrot.lane.b32.xlu1 %v5334_v27, %s4581_s9  ;;  %v1496_v57 = vpop.permute.xlu0 %1495  ;;  %v1844_v8 = vsel %vm1834_vm7, %v1811_v54, %v1242_v2  ;;  %387 = vst.msk [vmem:[#allocation2 + $0x171] sm:$0xff] %vm279_vm0, %v354_v61  ;;  %v5486_v54 = vld [vmem:[#allocation2 + $0x10a] sm:$0xff] }
 0x141   : > { %v1909_v43 = vsel %vm1900_vm9, %v1876_v16, %v1496_v57  ;;  %v1877_v9 = vsel %vm1867_vm8, %v1844_v8, %v1370_v3  ;;  %v5478_v16 = vld [vmem:[#allocation2 + $0x109] sm:$0xff]  ;;  %v5492_v8 = vld [vmem:[#allocation2 + $0x112] sm:$0xff] }
 0x142   : > { %v1498_v60 = vpop.permute.xlu1 %1497  ;;  %1127 = vrot.lane.b32.xlu0 %v5342_v29, %s4582_s10  ;;  %v5543_v61 = vld [vmem:[#allocation2 + $0x128] sm:$0xff] }
 0x143   : > { %v1910_v24 = vsel %vm1900_vm9, %v1877_v9, %v1498_v60  ;;  %v5467_v60 = vld [vmem:[#allocation2 + $0x108] sm:$0xff] }
 0x144   : > { %1129 = vrot.lane.b32.xlu1 %v5344_v35, %s4582_s10  ;;  %v1624_v47 = vpop.permute.xlu0 %1623 }
 0x145   : > { %v1942_v51 = vsel %vm1933_vm10, %v1909_v43, %v1624_v47  ;;  %v5480_v43 = vld [vmem:[#allocation2 + $0x111] sm:$0xff] }
 0x146   : > { %v732_v58 = vpop.permute.xlu1 %731  ;;  %1255 = vrot.lane.b32.xlu0 %v5350_v40, %s4583_s11  ;;  %4395 = vmatprep.mubr.msk.f32.mxu0 %vm1971_vm11, %v1942_v51 }
 0x147   : > { %v1713_v31 = vsel %vm279_vm0, %v4916_v52, %v732_v58  ;;  %v353_v52 = vld [vmem:[%s4774_s29 + $0xe0] sm:$0xff] }
 0x148   : > { %1257 = vrot.lane.b32.xlu1 %v5356_v0, %s4583_s11  ;;  %v1626_v10 = vpop.permute.xlu0 %1625  ;;  %386 = vst.msk [vmem:[#allocation2 + $0x169] sm:$0xff] %vm279_vm0, %v353_v52  ;;  %v5541_v52 = vld [vmem:[%s7302_s2] ss:$0 sm:$0xff] }
 0x149   : > { %v1943_v11 = vsel %vm1933_vm10, %v1910_v24, %v1626_v10 }
 0x14a   : > { %v734_v12 = vpop.permute.xlu1 %733  ;;  %1383 = vrot.lane.b32.xlu0 %v5399_v1, %s4584_s18  ;;  %4396 = vmatmul.mubr.msk.f32.gmra.mxu0 %vm1971_vm11, %v1943_v11 }
 0x14c   : > { %1385 = vrot.lane.b32.xlu1 %v5402_v36, %s4584_s18  ;;  %v860_v37 = vpop.permute.xlu0 %859 }
 0x14d   : > { %v1746_v34 = vsel %vm1735_vm4, %v1713_v31, %v860_v37 }
 0x14e   : > { %v862_v17 = vpop.permute.xlu1 %861  ;;  %1511 = vrot.lane.b32.xlu0 %v5410_v13, %s4585_s21 }
 0x150   : > { %1513 = vrot.lane.b32.xlu1 %v5412_v14, %s4585_s21  ;;  %v988_v15 = vpop.permute.xlu0 %987 }
 0x152   : > { %v990_v19 = vpop.permute.xlu1 %989  ;;  %1639 = vrot.lane.b32.xlu0 %v5418_v18, %s4586_s27 }
 0x154   : > { %747 = vrot.lane.b32.xlu1 %v5342_v29, %s4580_s8  ;;  %v1116_v20 = vpop.permute.xlu0 %1115 }
 0x156   : > { %v1118_v22 = vpop.permute.xlu1 %1117  ;;  %1641 = vrot.lane.b32.xlu0 %v5424_v23, %s4586_s27 }
 0x158   : > { %749 = vrot.lane.b32.xlu1 %v5344_v35, %s4580_s8  ;;  %v1244_v25 = vpop.permute.xlu0 %1243  ;;  %v1779_v35 = vsel %vm1768_vm5, %v1746_v34, %v988_v15 }
 0x159   : > { %v1812_v48 = vsel %vm1801_vm6, %v1779_v35, %v1116_v20 }
 0x15a   : > { %v1246_v26 = vpop.permute.xlu1 %1245  ;;  %875 = vrot.lane.b32.xlu0 %v5350_v40, %s4579_s30  ;;  %v1845_v59 = vsel %vm1834_vm7, %v1812_v48, %v1244_v25 }
 0x15c   : > { %877 = vrot.lane.b32.xlu1 %v5356_v0, %s4579_s30  ;;  %v1372_v28 = vpop.permute.xlu0 %1371  ;;  %v1714_v0 = vsel %vm279_vm0, %v4918_v53, %v734_v12 }
 0x15d   : > { %v1747_v62 = vsel %vm1735_vm4, %v1714_v0, %v862_v17  ;;  %v1878_v2 = vsel %vm1867_vm8, %v1845_v59, %v1372_v28 }
 0x15e   : > { %v1374_v29 = vpop.permute.xlu1 %1373  ;;  %1003 = vrot.lane.b32.xlu0 %v5399_v1, %s4581_s9  ;;  %v1780_v53 = vsel %vm1768_vm5, %v1747_v62, %v990_v19 }
 0x15f   : > { %v1813_v4 = vsel %vm1801_vm6, %v1780_v53, %v1118_v22  ;;  %v356_v22 = vld [vmem:[%s4774_s29 + $0xf8] sm:$0xff] }
 0x160   : > { %1005 = vrot.lane.b32.xlu1 %v5402_v36, %s4581_s9  ;;  %v1500_v40 = vpop.permute.xlu0 %1499  ;;  %v1846_v57 = vsel %vm1834_vm7, %v1813_v4, %v1246_v26  ;;  %389 = vst.msk [vmem:[#allocation2 + $0x189] sm:$0xff] %vm279_vm0, %v356_v22  ;;  %v5557_v4 = vld [vmem:[#allocation2 + $0x121] sm:$0xff] }
 0x161   : > { %v1911_v50 = vsel %vm1900_vm9, %v1878_v2, %v1500_v40  ;;  %v1879_v5 = vsel %vm1867_vm8, %v1846_v57, %v1374_v29  ;;  %v5559_v57 = vld [vmem:[#allocation2 + $0x129] sm:$0xff] }
 0x162   : > { %v1502_v49 = vpop.permute.xlu1 %1501  ;;  %1131 = vrot.lane.b32.xlu0 %v5410_v13, %s4582_s10 }
 0x163   : > { %v1912_v63 = vsel %vm1900_vm9, %v1879_v5, %v1502_v49  ;;  %v5535_v49 = vld [vmem:[#allocation2 + $0x120] sm:$0xff] }
 0x164   : > { %1133 = vrot.lane.b32.xlu1 %v5412_v14, %s4582_s10  ;;  %v1628_v3 = vpop.permute.xlu0 %1627 }
 0x165   : > { %v1944_v56 = vsel %vm1933_vm10, %v1911_v50, %v1628_v3  ;;  %v5549_v50 = vld [vmem:[%s7303_s3] ss:$0 sm:$0xff] }
 0x166   : > { %v736_v41 = vpop.permute.xlu1 %735  ;;  %1259 = vrot.lane.b32.xlu0 %v5418_v18, %s4583_s11  ;;  %4398 = vmatprep.mubr.msk.f32.mxu0 %vm1971_vm11, %v1944_v56 }
 0x167   : > { %v1715_v37 = vsel %vm279_vm0, %v4975_v33, %v736_v41  ;;  %v355_v33 = vld [vmem:[%s4774_s29 + $0xf0] sm:$0xff] }
 0x168   : > { %1261 = vrot.lane.b32.xlu1 %v5424_v23, %s4583_s11  ;;  %v1630_v46 = vpop.permute.xlu0 %1629  ;;  %388 = vst.msk [vmem:[#allocation2 + $0x181] sm:$0xff] %vm279_vm0, %v355_v33 }
 0x169   : > { %v1945_v6 = vsel %vm1933_vm10, %v1912_v63, %v1630_v46 }
 0x16a   : > { %v738_v7 = vpop.permute.xlu1 %737  ;;  %1387 = vrot.lane.b32.xlu0 %v5467_v60, %s4584_s18  ;;  %4399 = vmatmul.mubr.msk.f32.gmra.mxu0 %vm1971_vm11, %v1945_v6 }
 0x16c   : > { %1389 = vrot.lane.b32.xlu1 %v5470_v44, %s4584_s18  ;;  %v864_v45 = vpop.permute.xlu0 %863 }
 0x16e   : > { %v866_v47 = vpop.permute.xlu1 %865  ;;  %1515 = vrot.lane.b32.xlu0 %v5478_v16, %s4585_s21 }
 0x170   : > { %1517 = vrot.lane.b32.xlu1 %v5480_v43, %s4585_s21  ;;  %v992_v51 = vpop.permute.xlu0 %991 }
 0x172   : > { %v994_v58 = vpop.permute.xlu1 %993  ;;  %1643 = vrot.lane.b32.xlu0 %v5486_v54, %s4586_s27 }
 0x174   : > { %751 = vrot.lane.b32.xlu1 %v5410_v13, %s4580_s8  ;;  %v1120_v9 = vpop.permute.xlu0 %1119 }
 0x176   : > { %v1122_v24 = vpop.permute.xlu1 %1121  ;;  %1645 = vrot.lane.b32.xlu0 %v5492_v8, %s4586_s27 }
 0x178   : > { %753 = vrot.lane.b32.xlu1 %v5412_v14, %s4580_s8  ;;  %v1248_v10 = vpop.permute.xlu0 %1247  ;;  %v1748_v14 = vsel %vm1735_vm4, %v1715_v37, %v864_v45  ;;  %v5568_v45 = vld [vmem:[#allocation2 + $0x122] sm:$0xff] }
 0x179   : > { %v1781_v17 = vsel %vm1768_vm5, %v1748_v14, %v992_v51 }
 0x17a   : > { %v1250_v11 = vpop.permute.xlu1 %1249  ;;  %879 = vrot.lane.b32.xlu0 %v5418_v18, %s4579_s30  ;;  %v1814_v15 = vsel %vm1801_vm6, %v1781_v17, %v1120_v9  ;;  %v5574_v9 = vld [vmem:[#allocation2 + $0x12a] sm:$0xff] }
 0x17b   : > { %v1847_v20 = vsel %vm1834_vm7, %v1814_v15, %v1248_v10 }
 0x17c   : > { %881 = vrot.lane.b32.xlu1 %v5424_v23, %s4579_s30  ;;  %v1376_v12 = vpop.permute.xlu0 %1375  ;;  %v1716_v23 = vsel %vm279_vm0, %v4980_v39, %v738_v7 }
 0x17d   : > { %v1749_v25 = vsel %vm1735_vm4, %v1716_v23, %v866_v47  ;;  %v1880_v26 = vsel %vm1867_vm8, %v1847_v20, %v1376_v12 }
 0x17e   : > { %v1378_v13 = vpop.permute.xlu1 %1377  ;;  %1007 = vrot.lane.b32.xlu0 %v5467_v60, %s4581_s9  ;;  %v1782_v39 = vsel %vm1768_vm5, %v1749_v25, %v994_v58 }
 0x17f   : > { %v1815_v31 = vsel %vm1801_vm6, %v1782_v39, %v1122_v24 }
 0x180   : > { %1009 = vrot.lane.b32.xlu1 %v5470_v44, %s4581_s9  ;;  %v1504_v18 = vpop.permute.xlu0 %1503  ;;  %v1848_v40 = vsel %vm1834_vm7, %v1815_v31, %v1250_v11  ;;  %v5613_v31 = vld [vmem:[#allocation2 + $0x138] sm:$0xff] }
 0x181   : > { %v1913_v28 = vsel %vm1900_vm9, %v1880_v26, %v1504_v18  ;;  %v1881_v48 = vsel %vm1867_vm8, %v1848_v40, %v1378_v13  ;;  %v5616_v40 = vld [vmem:[#allocation2 + $0x140] sm:$0xff] }
 0x182   : > { %v1506_v19 = vpop.permute.xlu1 %1505  ;;  %1135 = vrot.lane.b32.xlu0 %v5478_v16, %s4582_s10 }
 0x183   : > { %v1914_v0 = vsel %vm1900_vm9, %v1881_v48, %v1506_v19 }
 0x184   : > { %1137 = vrot.lane.b32.xlu1 %v5480_v43, %s4582_s10  ;;  %v1632_v29 = vpop.permute.xlu0 %1631 }
 0x185   : > { %v1946_v34 = vsel %vm1933_vm10, %v1913_v28, %v1632_v29 }
 0x186   : > { %v740_v35 = vpop.permute.xlu1 %739  ;;  %1263 = vrot.lane.b32.xlu0 %v5486_v54, %s4583_s11  ;;  %4401 = vmatprep.mubr.msk.f32.mxu0 %vm1971_vm11, %v1946_v34 }
 0x187   : > { %v1717_v14 = vsel %vm279_vm0, %v5101_v30, %v740_v35 }
 0x188   : > { %1265 = vrot.lane.b32.xlu1 %v5492_v8, %s4583_s11  ;;  %v1634_v59 = vpop.permute.xlu0 %1633 }
 0x189   : > { %v1947_v62 = vsel %vm1933_vm10, %v1914_v0, %v1634_v59 }
 0x18a   : > { %v742_v2 = vpop.permute.xlu1 %741  ;;  %v4385_v53 = vpop.f32.mrf.mxu0  ;;  %1391 = vrot.lane.b32.xlu0 %v5535_v49, %s4584_s18  ;;  %4402 = vmatmul.mubr.msk.f32.gmra.mxu0 %vm1971_vm11, %v1947_v62 }
 0x18b   : > { %v2305_v3 = vmul.f32 %v4385_v53, %v5541_v52  ;;  %v1718_v19 = vsel %vm279_vm0, %v5109_v38, %v742_v2  ;;  %v5625_v2 = vld [vmem:[#allocation2 + $0x139] sm:$0xff] }
 0x18c   : > { %1393 = vrot.lane.b32.xlu1 %v5543_v61, %s4584_s18  ;;  %v2138_v56 = vpop.f32.mrf.mxu0  ;;  %v868_v41 = vpop.permute.xlu0 %867 }
 0x18d   : > { %v2344_v5 = vadd.f32 %v5549_v50, %v2305_v3  ;;  %v2304_v63 = vmul.f32 %v5541_v52, %v2138_v56  ;;  %v1750_v17 = vsel %vm1735_vm4, %v1717_v14, %v868_v41  ;;  %v5627_v56 = vld [vmem:[#allocation2 + $0x141] sm:$0xff] }
 0x18e   : > { %v870_v46 = vpop.permute.xlu1 %869  ;;  %1519 = vrot.lane.b32.xlu0 %v5557_v4, %s4585_s21 }
 0x18f   : > { %v2376_v6 = vmax.f32 %v2344_v5, 0.0  ;;  %v2343_v7 = vadd.f32 %v5549_v50, %v2304_v63  ;;  %v1751_v23 = vsel %vm1735_vm4, %v1718_v19, %v870_v46 }
 0x190   : > { %1521 = vrot.lane.b32.xlu1 %v5559_v57, %s4585_s21  ;;  %v996_v47 = vpop.permute.xlu0 %995 }
 0x191   : > { %2452 = vst [vmem:[#allocation3 + $0x21] sm:$0xff] %v2376_v6  ;;  %v2375_v51 = vmax.f32 %v2343_v7, 0.0  ;;  %v5636_v7 = vld [vmem:[#allocation2 + $0x13a] sm:$0xff] }
 0x192   : > { %v998_v58 = vpop.permute.xlu1 %997  ;;  %1647 = vrot.lane.b32.xlu0 %v5568_v45, %s4586_s27 }
 0x193   : > { %2451 = vst [vmem:[#allocation3 + $0x19] sm:$0xff] %v2375_v51  ;;  %2990 = vmatprep.mubr.f32.mxu1 %v2375_v51  ;;  %v1784_v33 = vsel %vm1768_vm5, %v1751_v23, %v998_v58 }
 0x194   : > { %755 = vrot.lane.b32.xlu1 %v5478_v16, %s4580_s8  ;;  %v1124_v24 = vpop.permute.xlu0 %1123 }
 0x196   : > { %v1126_v10 = vpop.permute.xlu1 %1125  ;;  %1649 = vrot.lane.b32.xlu0 %v5574_v9, %s4586_s27 }
 0x197   : > { %v1817_v26 = vsel %vm1801_vm6, %v1784_v33, %v1126_v10 }
 0x198   : > { %757 = vrot.lane.b32.xlu1 %v5480_v43, %s4580_s8  ;;  %v1252_v11 = vpop.permute.xlu0 %1251 }
 0x19a   : > { %v1254_v12 = vpop.permute.xlu1 %1253  ;;  %883 = vrot.lane.b32.xlu0 %v5486_v54, %s4579_s30  ;;  %v2485_v13 = vld [vmem:[#allocation3 + $0x18] sm:$0xff]  ;;  %v2486_v43 = vld [vmem:[#allocation3 + $0x20] sm:$0xff]  ;;  %v1783_v54 = vsel %vm1768_vm5, %v1750_v17, %v996_v47 }
 0x19b   : > { %2991 = vmatmul.mubr.f32.gmra.mxu1 %v2485_v13  ;;  %v1816_v18 = vsel %vm1801_vm6, %v1783_v54, %v1124_v24  ;;  %v1850_v28 = vsel %vm1834_vm7, %v1817_v26, %v1254_v12  ;;  %v5642_v24 = vld [vmem:[#allocation2 + $0x142] sm:$0xff]  ;;  %v5681_v26 = vld [vmem:[#allocation2 + $0x150] sm:$0xff] }
 0x19c   : > { %885 = vrot.lane.b32.xlu1 %v5492_v8, %s4579_s30  ;;  %v1380_v16 = vpop.permute.xlu0 %1379  ;;  %2995 = vmatprep.mubr.f32.mxu1 %v2376_v6  ;;  %v1849_v30 = vsel %vm1834_vm7, %v1816_v18, %v1252_v11 }
 0x19d   : > { %v1882_v20 = vsel %vm1867_vm8, %v1849_v30, %v1380_v16 }
 0x19e   : > { %v1382_v37 = vpop.permute.xlu1 %1381  ;;  %1011 = vrot.lane.b32.xlu0 %v5535_v49, %s4581_s9 }
 0x19f   : > { %2996 = vmatmul.mubr.f32.gmra.mxu1 %v2486_v43  ;;  %v1883_v29 = vsel %vm1867_vm8, %v1850_v28, %v1382_v37  ;;  %v5684_v28 = vld [vmem:[#allocation2 + $0x158] sm:$0xff] }
 0x1a0   : > { %1013 = vrot.lane.b32.xlu1 %v5543_v61, %s4581_s9  ;;  %v1508_v8 = vpop.permute.xlu0 %1507 }
 0x1a1   : > { %v1915_v22 = vsel %vm1900_vm9, %v1882_v20, %v1508_v8 }
 0x1a2   : > { %v1510_v15 = vpop.permute.xlu1 %1509  ;;  %1139 = vrot.lane.b32.xlu0 %v5557_v4, %s4582_s10 }
 0x1a3   : > { %v1916_v34 = vsel %vm1900_vm9, %v1883_v29, %v1510_v15 }
 0x1a4   : > { %1141 = vrot.lane.b32.xlu1 %v5559_v57, %s4582_s10  ;;  %v1636_v25 = vpop.permute.xlu0 %1635 }
 0x1a5   : > { %v1948_v38 = vsel %vm1933_vm10, %v1915_v22, %v1636_v25 }
 0x1a6   : > { %v744_v39 = vpop.permute.xlu1 %743  ;;  %1267 = vrot.lane.b32.xlu0 %v5568_v45, %s4583_s11  ;;  %4404 = vmatprep.mubr.msk.f32.mxu0 %vm1971_vm11, %v1948_v38 }
 0x1a7   : > { %v1719_v14 = vsel %vm279_vm0, %v5241_v32, %v744_v39 }
 0x1a8   : > { %1269 = vrot.lane.b32.xlu1 %v5574_v9, %s4583_s11  ;;  %v1638_v35 = vpop.permute.xlu0 %1637 }
 0x1a9   : > { %v1949_v48 = vsel %vm1933_vm10, %v1916_v34, %v1638_v35 }
 0x1aa   : > { %v746_v0 = vpop.permute.xlu1 %745  ;;  %1395 = vrot.lane.b32.xlu0 %v5613_v31, %s4584_s18  ;;  %v4388_v59 = vpop.f32.mrf.mxu0  ;;  %4405 = vmatmul.mubr.msk.f32.gmra.mxu0 %vm1971_vm11, %v1949_v48 }
 0x1ab   : > { %v2307_v62 = vmul.f32 %v4388_v59, %v5541_v52  ;;  %v1720_v8 = vsel %vm279_vm0, %v5244_v42, %v746_v0  ;;  %v5693_v0 = vld [vmem:[#allocation2 + $0x151] sm:$0xff] }
 0x1ac   : > { %1397 = vrot.lane.b32.xlu1 %v5616_v40, %s4584_s18  ;;  %v872_v53 = vpop.permute.xlu0 %871  ;;  %v2148_v3 = vpop.f32.mrf.mxu0 }
 0x1ad   : > { %v2346_v41 = vadd.f32 %v5549_v50, %v2307_v62  ;;  %v2306_v63 = vmul.f32 %v5541_v52, %v2148_v3  ;;  %v1752_v43 = vsel %vm1735_vm4, %v1719_v14, %v872_v53  ;;  %v5695_v53 = vld [vmem:[#allocation2 + $0x159] sm:$0xff] }
 0x1ae   : > { %v874_v5 = vpop.permute.xlu1 %873  ;;  %1523 = vrot.lane.b32.xlu0 %v5625_v2, %s4585_s21 }
 0x1af   : > { %v2378_v46 = vmax.f32 %v2346_v41, 0.0  ;;  %v2345_v6 = vadd.f32 %v5549_v50, %v2306_v63  ;;  %v1753_v18 = vsel %vm1735_vm4, %v1720_v8, %v874_v5 }
 0x1b0   : > { %1525 = vrot.lane.b32.xlu1 %v5627_v56, %s4585_s21  ;;  %v1000_v47 = vpop.permute.xlu0 %999 }
 0x1b1   : > { %2454 = vst [vmem:[#allocation3 + $0x39] sm:$0xff] %v2378_v46  ;;  %v2377_v51 = vmax.f32 %v2345_v6, 0.0  ;;  %v5704_v6 = vld [vmem:[#allocation2 + $0x152] sm:$0xff] }
 0x1b2   : > { %v1002_v58 = vpop.permute.xlu1 %1001  ;;  %1651 = vrot.lane.b32.xlu0 %v5636_v7, %s4586_s27 }
 0x1b3   : > { %2453 = vst [vmem:[#allocation3 + $0x31] sm:$0xff] %v2377_v51  ;;  %3000 = vmatprep.mubr.f32.mxu1 %v2377_v51  ;;  %v1786_v19 = vsel %vm1768_vm5, %v1753_v18, %v1002_v58 }
 0x1b4   : > { %759 = vrot.lane.b32.xlu1 %v5557_v4, %s4580_s8  ;;  %v1128_v10 = vpop.permute.xlu0 %1127 }
 0x1b6   : > { %v1130_v11 = vpop.permute.xlu1 %1129  ;;  %1653 = vrot.lane.b32.xlu0 %v5642_v24, %s4586_s27 }
 0x1b7   : > { %v1819_v20 = vsel %vm1801_vm6, %v1786_v19, %v1130_v11 }
 0x1b8   : > { %761 = vrot.lane.b32.xlu1 %v5559_v57, %s4580_s8  ;;  %v1256_v12 = vpop.permute.xlu0 %1255 }
 0x1ba   : > { %v1258_v13 = vpop.permute.xlu1 %1257  ;;  %887 = vrot.lane.b32.xlu0 %v5568_v45, %s4579_s30  ;;  %v2487_v16 = vld [vmem:[#allocation3 + $0x30] sm:$0xff]  ;;  %v2488_v57 = vld [vmem:[#allocation3 + $0x38] sm:$0xff]  ;;  %v1785_v45 = vsel %vm1768_vm5, %v1752_v43, %v1000_v47 }
 0x1bb   : > { %3001 = vmatmul.mubr.f32.gmra.mxu1 %v2487_v16  ;;  %v1818_v17 = vsel %vm1801_vm6, %v1785_v45, %v1128_v10  ;;  %v1852_v22 = vsel %vm1834_vm7, %v1819_v20, %v1258_v13  ;;  %v5710_v10 = vld [vmem:[#allocation2 + $0x15a] sm:$0xff] }
 0x1bc   : > { %889 = vrot.lane.b32.xlu1 %v5574_v9, %s4579_s30  ;;  %v1384_v4 = vpop.permute.xlu0 %1383  ;;  %3005 = vmatprep.mubr.f32.mxu1 %v2378_v46  ;;  %v1851_v32 = vsel %vm1834_vm7, %v1818_v17, %v1256_v12 }
 0x1bd   : > { %v1884_v15 = vsel %vm1867_vm8, %v1851_v32, %v1384_v4 }
 0x1be   : > { %v1386_v37 = vpop.permute.xlu1 %1385  ;;  %1015 = vrot.lane.b32.xlu0 %v5613_v31, %s4581_s9 }
 0x1bf   : > { %3006 = vmatmul.mubr.f32.gmra.mxu1 %v2488_v57  ;;  %v1885_v25 = vsel %vm1867_vm8, %v1852_v22, %v1386_v37 }
 0x1c0   : > { %1017 = vrot.lane.b32.xlu1 %v5616_v40, %s4581_s9  ;;  %v1512_v9 = vpop.permute.xlu0 %1511 }
 0x1c1   : > { %v1917_v30 = vsel %vm1900_vm9, %v1884_v15, %v1512_v9 }
 0x1c2   : > { %v1514_v54 = vpop.permute.xlu1 %1513  ;;  %1143 = vrot.lane.b32.xlu0 %v5625_v2, %s4582_s10 }
 0x1c3   : > { %v1918_v38 = vsel %vm1900_vm9, %v1885_v25, %v1514_v54  ;;  %v5755_v25 = vld [vmem:[#allocation2 + $0x168] sm:$0xff] }
 0x1c4   : > { %1145 = vrot.lane.b32.xlu1 %v5627_v56, %s4582_s10  ;;  %v1640_v23 = vpop.permute.xlu0 %1639 }
 0x1c5   : > { %v1950_v42 = vsel %vm1933_vm10, %v1917_v30, %v1640_v23 }
 0x1c6   : > { %v748_v33 = vpop.permute.xlu1 %747  ;;  %1271 = vrot.lane.b32.xlu0 %v5636_v7, %s4583_s11  ;;  %4407 = vmatprep.mubr.msk.f32.mxu0 %vm1971_vm11, %v1950_v42 }
 0x1c7   : > { %v1721_v9 = vsel %vm279_vm0, %v5331_v21, %v748_v33 }
 0x1c8   : > { %1273 = vrot.lane.b32.xlu1 %v5642_v24, %s4583_s11  ;;  %v1642_v39 = vpop.permute.xlu0 %1641 }
 0x1c9   : > { %v1951_v29 = vsel %vm1933_vm10, %v1918_v38, %v1642_v39 }
 0x1ca   : > { %v750_v34 = vpop.permute.xlu1 %749  ;;  %1399 = vrot.lane.b32.xlu0 %v5681_v26, %s4584_s18  ;;  %v4391_v35 = vpop.f32.mrf.mxu0  ;;  %4408 = vmatmul.mubr.msk.f32.gmra.mxu0 %vm1971_vm11, %v1951_v29  ;;  %v5758_v29 = vld [vmem:[#allocation2 + $0x170] sm:$0xff] }
 0x1cb   : > { %v2309_v48 = vmul.f32 %v4391_v35, %v5541_v52  ;;  %v1722_v32 = vsel %vm279_vm0, %v5334_v27, %v750_v34 }
 0x1cc   : > { %1401 = vrot.lane.b32.xlu1 %v5684_v28, %s4584_s18  ;;  %v876_v59 = vpop.permute.xlu0 %875  ;;  %v2158_v62 = vpop.f32.mrf.mxu0 }
 0x1cd   : > { %v2348_v3 = vadd.f32 %v5549_v50, %v2309_v48  ;;  %v2308_v5 = vmul.f32 %v5541_v52, %v2158_v62  ;;  %v1754_v17 = vsel %vm1735_vm4, %v1721_v9, %v876_v59  ;;  %v5769_v62 = vld [vmem:[#allocation2 + $0x169] sm:$0xff]  ;;  %v2815_v9 = vld [vmem:[%s7304_s4 + $0x158] sm:$0xff] }
 0x1ce   : > { %v878_v41 = vpop.permute.xlu1 %877  ;;  %1527 = vrot.lane.b32.xlu0 %v5693_v0, %s4585_s21 }
 0x1cf   : > { %v2380_v63 = vmax.f32 %v2348_v3, 0.0  ;;  %v2347_v46 = vadd.f32 %v5549_v50, %v2308_v5  ;;  %v1755_v18 = vsel %vm1735_vm4, %v1722_v32, %v878_v41  ;;  %v5773_v5 = vld [vmem:[#allocation2 + $0x171] sm:$0xff] }
 0x1d0   : > { %1529 = vrot.lane.b32.xlu1 %v5695_v53, %s4585_s21  ;;  %v1004_v47 = vpop.permute.xlu0 %1003  ;;  %v5712_v11 = vpop.f32.mrf.mxu1 }
 0x1d1   : > { %2456 = vst [vmem:[#allocation3 + $0x51] sm:$0xff] %v2380_v63  ;;  %v2379_v51 = vmax.f32 %v2347_v46, 0.0 }
 0x1d2   : > { %v1006_v58 = vpop.permute.xlu1 %1005  ;;  %1655 = vrot.lane.b32.xlu0 %v5704_v6, %s4586_s27  ;;  %v2984_v16 = vpop.f32.mrf.mxu1 }
 0x1d3   : > { %2455 = vst [vmem:[#allocation3 + $0x49] sm:$0xff] %v2379_v51  ;;  %3010 = vmatprep.mubr.f32.mxu1 %v2379_v51  ;;  %v1788_v19 = vsel %vm1768_vm5, %v1755_v18, %v1006_v58  ;;  %v2818_v58 = vld [vmem:[%s7304_s4 + $0x170] sm:$0xff] }
 0x1d4   : > { %763 = vrot.lane.b32.xlu1 %v5625_v2, %s4580_s8  ;;  %v1132_v12 = vpop.permute.xlu0 %1131  ;;  %v5718_v4 = vpop.f32.mrf.mxu1  ;;  %v5791_v16 = vld [vmem:[#allocation2 + $0x16a] sm:$0xff] }
 0x1d6   : > { %v1134_v13 = vpop.permute.xlu1 %1133  ;;  %1657 = vrot.lane.b32.xlu0 %v5710_v10, %s4586_s27  ;;  %v2989_v57 = vpop.f32.mrf.mxu1 }
 0x1d7   : > { %v1821_v20 = vsel %vm1801_vm6, %v1788_v19, %v1134_v13  ;;  %v2810_v19 = vld [vmem:[%s7304_s4 + $0x130] sm:$0xff] }
 0x1d8   : > { %765 = vrot.lane.b32.xlu1 %v5627_v56, %s4580_s8  ;;  %v1260_v37 = vpop.permute.xlu0 %1259 }
 0x1da   : > { %v1262_v14 = vpop.permute.xlu1 %1261  ;;  %891 = vrot.lane.b32.xlu0 %v5636_v7, %s4579_s30  ;;  %v2489_v2 = vld [vmem:[#allocation3 + $0x48] sm:$0xff]  ;;  %v2490_v56 = vld [vmem:[#allocation3 + $0x50] sm:$0xff]  ;;  %v1787_v7 = vsel %vm1768_vm5, %v1754_v17, %v1004_v47 }
 0x1db   : > { %3011 = vmatmul.mubr.f32.gmra.mxu1 %v2489_v2  ;;  %v1820_v54 = vsel %vm1801_vm6, %v1787_v7, %v1132_v12  ;;  %v1854_v33 = vsel %vm1834_vm7, %v1821_v20, %v1262_v14  ;;  %v2817_v14 = vld [vmem:[%s7304_s4 + $0x168] sm:$0xff]  ;;  %v5810_v7 = vld [vmem:[#allocation3 + $0x8] sm:$0xff] }
 0x1dc   : > { %893 = vrot.lane.b32.xlu1 %v5642_v24, %s4579_s30  ;;  %v1388_v43 = vpop.permute.xlu0 %1387  ;;  %3015 = vmatprep.mubr.f32.mxu1 %v2380_v63  ;;  %v1853_v21 = vsel %vm1834_vm7, %v1820_v54, %v1260_v37  ;;  %v2819_v63 = vld [vmem:[%s7304_s4 + $0x178] sm:$0xff] }
 0x1dd   : > { %v1886_v15 = vsel %vm1867_vm8, %v1853_v21, %v1388_v43  ;;  %3142 = vmatpush1.msra.mxu0 %v2819_v63  ;;  %v2816_v43 = vld [vmem:[%s7304_s4 + $0x160] sm:$0xff]  ;;  %v2807_v63 = vld [vmem:[%s7304_s4 + $0x118] sm:$0xff] }
 0x1de   : > { %v1390_v45 = vpop.permute.xlu1 %1389  ;;  %1019 = vrot.lane.b32.xlu0 %v5681_v26, %s4581_s9  ;;  %3143 = vmatprep.subr.mxu0 %v5258_v55 }
 0x1df   : > { %3016 = vmatmul.mubr.f32.gmra.mxu1 %v2490_v56  ;;  %v1887_v22 = vsel %vm1867_vm8, %v1854_v33, %v1390_v45  ;;  %3144 = vmatpush1.msra.mxu0 %v2818_v58  ;;  %v5805_v45 = vld [vmem:[#allocation2 + $0x172] sm:$0xff] }
 0x1e0   : > { %1021 = vrot.lane.b32.xlu1 %v5684_v28, %s4581_s9  ;;  %v1516_v24 = vpop.permute.xlu0 %1515  ;;  %3145 = vmatprep.subr.mxu0 %v5258_v55 }
 0x1e1   : > { %v1919_v30 = vsel %vm1900_vm9, %v1886_v15, %v1516_v24  ;;  %3146 = vmatpush1.msra.mxu0 %v2817_v14  ;;  %v2806_v14 = vld [vmem:[%s7304_s4 + $0x110] sm:$0xff] }
 0x1e2   : > { %v1518_v8 = vpop.permute.xlu1 %1517  ;;  %1147 = vrot.lane.b32.xlu0 %v5693_v0, %s4582_s10  ;;  %3147 = vmatprep.subr.mxu0 %v5258_v55  ;;  %v2814_v55 = vld [vmem:[%s7304_s4 + $0x150] sm:$0xff] }
 0x1e3   : > { %v1920_v38 = vsel %vm1900_vm9, %v1887_v22, %v1518_v8  ;;  %3148 = vmatpush1.msra.mxu0 %v2816_v43  ;;  %v5905_v43 = vld [vmem:[#allocation2 + $0x181] sm:$0xff] }
 0x1e4   : > { %1149 = vrot.lane.b32.xlu1 %v5695_v53, %s4582_s10  ;;  %v1644_v23 = vpop.permute.xlu0 %1643  ;;  %3149 = vmatprep.subr.mxu0 %v5810_v7 }
 0x1e5   : > { %v1952_v27 = vsel %vm1933_vm10, %v1919_v30, %v1644_v23  ;;  %3150 = vmatpush1.msra.mxu0 %v2815_v9  ;;  %v2805_v9 = vld [vmem:[%s7304_s4 + $0x108] sm:$0xff] }
 0x1e6   : > { %v5746_v42 = vpop.permute.xlu1 %751  ;;  %1275 = vrot.lane.b32.xlu0 %v5704_v6, %s4583_s11  ;;  %4410 = vmatprep.mubr.msk.f32.mxu0 %vm1971_vm11, %v1952_v27  ;;  %v2809_v27 = vld [vmem:[%s7304_s4 + $0x128] sm:$0xff] }
 0x1e7   : > { %3151 = vmatprep.subr.mxu0 %v5810_v7  ;;  %v1723_v18 = vsel %vm279_vm0, %v5399_v1, %v5746_v42 }
 0x1e8   : > { %1277 = vrot.lane.b32.xlu1 %v5710_v10, %s4583_s11  ;;  %v1646_v39 = vpop.permute.xlu0 %1645  ;;  %3152 = vmatpush1.msra.mxu0 %v2814_v55  ;;  %v5911_v55 = vld [vmem:[#allocation2 + $0x189] sm:$0xff] }
 0x1e9   : > { %v1953_v34 = vsel %vm1933_vm10, %v1920_v38, %v1646_v39  ;;  %3153 = vmatprep.subr.mxu0 %v5810_v7 }
 0x1ea   : > { %v5761_v35 = vpop.permute.xlu1 %753  ;;  %1403 = vrot.lane.b32.xlu0 %v5755_v25, %s4584_s18  ;;  %v4394_v48 = vpop.f32.mrf.mxu0  ;;  %4411 = vmatmul.mubr.msk.f32.gmra.mxu0 %vm1971_vm11, %v1953_v34 }
 0x1eb   : > { %v2311_v59 = vmul.f32 %v4394_v48, %v5541_v52  ;;  %v1724_v42 = vsel %vm279_vm0, %v5402_v36, %v5761_v35  ;;  %v2808_v35 = vld [vmem:[%s7304_s4 + $0x120] sm:$0xff] }
 0x1ec   : > { %1405 = vrot.lane.b32.xlu1 %v5758_v29, %s4584_s18  ;;  %v5771_v3 = vpop.permute.xlu0 %879  ;;  %v2168_v41 = vpop.f32.mrf.mxu0 }
 0x1ed   : > { %v2350_v46 = vadd.f32 %v5549_v50, %v2311_v59  ;;  %v2310_v51 = vmul.f32 %v5541_v52, %v2168_v41 }
 0x1ee   : > { %v5779_v47 = vpop.permute.xlu1 %881  ;;  %1531 = vrot.lane.b32.xlu0 %v5769_v62, %s4585_s21 }
 0x1ef   : > { %v2382_v12 = vmax.f32 %v2350_v46, 0.0  ;;  %v2349_v13 = vadd.f32 %v5549_v50, %v2310_v51  ;;  %v1757_v22 = vsel %vm1735_vm4, %v1724_v42, %v5779_v47  ;;  %v5887_v47 = vld [vmem:[#allocation2 + $0x180] sm:$0xff] }
 0x1f0   : > { %1533 = vrot.lane.b32.xlu1 %v5773_v5, %s4585_s21  ;;  %v1008_v37 = vpop.permute.xlu0 %1007 }
 0x1f1   : > { %2458 = vst [vmem:[#allocation3 + $0x69] sm:$0xff] %v2382_v12  ;;  %v2381_v57 = vmax.f32 %v2349_v13, 0.0 }
 0x1f2   : > { %v1010_v2 = vpop.permute.xlu1 %1009  ;;  %1659 = vrot.lane.b32.xlu0 %v5791_v16, %s4586_s27 }
 0x1f3   : > { %2457 = vst [vmem:[#allocation3 + $0x61] sm:$0xff] %v2381_v57  ;;  %3020 = vmatprep.mubr.f32.mxu1 %v2381_v57  ;;  %v1790_v39 = vsel %vm1768_vm5, %v1757_v22, %v1010_v2  ;;  %v2831_v22 = vld [vmem:[%s7304_s4 + $0x1d8] sm:$0xff] }
 0x1f4   : > { %767 = vrot.lane.b32.xlu1 %v5693_v0, %s4580_s8  ;;  %v1136_v56 = vpop.permute.xlu0 %1135  ;;  %v2813_v0 = vld [vmem:[%s7304_s4 + $0x148] sm:$0xff] }
 0x1f5   : > { %3154 = vmatpush1.msra.mxu0 %v2813_v0 }
 0x1f6   : > { %v1138_v17 = vpop.permute.xlu1 %1137  ;;  %1661 = vrot.lane.b32.xlu0 %v5805_v45, %s4586_s27  ;;  %3155 = vmatprep.subr.mxu0 %v5810_v7 }
 0x1f7   : > { %v1823_v48 = vsel %vm1801_vm6, %v1790_v39, %v1138_v17 }
 0x1f8   : > { %769 = vrot.lane.b32.xlu1 %v5695_v53, %s4580_s8  ;;  %v1264_v24 = vpop.permute.xlu0 %1263  ;;  %v2812_v53 = vld [vmem:[%s7304_s4 + $0x140] sm:$0xff] }
 0x1f9   : > { %3156 = vmatpush1.msra.mxu0 %v2812_v53 }
 0x1fa   : > { %v1266_v54 = vpop.permute.xlu1 %1265  ;;  %895 = vrot.lane.b32.xlu0 %v5704_v6, %s4579_s30  ;;  %v2491_v8 = vld [vmem:[#allocation3 + $0x60] sm:$0xff]  ;;  %v2811_v6 = vld [vmem:[%s7304_s4 + $0x138] sm:$0xff]  ;;  %3157 = vmatprep.subr.mxu0 %v5810_v7 }
 0x1fb   : > { %3021 = vmatmul.mubr.f32.gmra.mxu1 %v2491_v8  ;;  %v2492_v15 = vld [vmem:[#allocation3 + $0x68] sm:$0xff]  ;;  %3158 = vmatpush1.msra.mxu0 %v2811_v6  ;;  %v1856_v41 = vsel %vm1834_vm7, %v1823_v48, %v1266_v54  ;;  %v2804_v8 = vld [vmem:[%s7304_s4 + $0x100] sm:$0xff] }
 0x1fc   : > { %897 = vrot.lane.b32.xlu1 %v5710_v10, %s4579_s30  ;;  %v1392_v32 = vpop.permute.xlu0 %1391  ;;  %3025 = vmatprep.mubr.f32.mxu1 %v2382_v12  ;;  %v1756_v10 = vsel %vm1735_vm4, %v1723_v18, %v5771_v3  ;;  %v5890_v12 = vld [vmem:[#allocation2 + $0x188] sm:$0xff]  ;;  %v2835_v6 = vld [vmem:[%s7304_s4 + $0x1f8] sm:$0xff]  ;;  %v2828_v48 = vld [vmem:[%s7304_s4 + $0x1c0] sm:$0xff] }
 0x1fd   : > { %v1789_v30 = vsel %vm1768_vm5, %v1756_v10, %v1008_v37  ;;  %3159 = vmatprep.subr.mxu0 %v5810_v7 }
 0x1fe   : > { %v1394_v21 = vpop.permute.xlu1 %1393  ;;  %1023 = vrot.lane.b32.xlu0 %v5755_v25, %s4581_s9  ;;  %v1822_v23 = vsel %vm1801_vm6, %v1789_v30, %v1136_v56  ;;  %3160 = vmatpush1.msra.mxu0 %v2810_v19  ;;  %v2834_v30 = vld [vmem:[%s7304_s4 + $0x1f0] sm:$0xff] }
 0x1ff   : > { %3026 = vmatmul.mubr.f32.gmra.mxu1 %v2492_v15  ;;  %v1855_v33 = vsel %vm1834_vm7, %v1822_v23, %v1264_v24  ;;  %3161 = vmatprep.subr.mxu0 %v5810_v7  ;;  %v1889_v46 = vsel %vm1867_vm8, %v1856_v41, %v1394_v21  ;;  %v5926_v21 = vld [vmem:[#allocation2 + $0x182] sm:$0xff]  ;;  %v5932_v15 = vld [vmem:[#allocation2 + $0x18a] sm:$0xff] }
 0x200   : > { %1025 = vrot.lane.b32.xlu1 %v5758_v29, %s4581_s9  ;;  %v1520_v1 = vpop.permute.xlu0 %1519  ;;  %v1888_v38 = vsel %vm1867_vm8, %v1855_v33, %v1392_v32  ;;  %3162 = vmatpush1.msra.mxu0 %v2809_v27  ;;  %v2833_v23 = vld [vmem:[%s7304_s4 + $0x1e8] sm:$0xff]  ;;  %v2832_v27 = vld [vmem:[%s7304_s4 + $0x1e0] sm:$0xff] }
 0x201   : > { %v1921_v36 = vsel %vm1900_vm9, %v1888_v38, %v1520_v1  ;;  %3163 = vmatprep.subr.mxu0 %v5810_v7 }
 0x202   : > { %v1522_v20 = vpop.permute.xlu1 %1521  ;;  %1151 = vrot.lane.b32.xlu0 %v5769_v62, %s4582_s10  ;;  %3164 = vmatpush1.msra.mxu0 %v2808_v35 }
 0x203   : > { %v1922_v51 = vsel %vm1900_vm9, %v1889_v46, %v1522_v20  ;;  %3165 = vmatprep.subr.mxu0 %v5810_v7  ;;  %v2827_v46 = vld [vmem:[%s7304_s4 + $0x1b8] sm:$0xff] }
 0x204   : > { %1153 = vrot.lane.b32.xlu1 %v5773_v5, %s4582_s10  ;;  %v1648_v34 = vpop.permute.xlu0 %1647  ;;  %3166 = vmatpush1.msra.mxu0 %v2807_v63 }
 0x205   : > { %v1954_v59 = vsel %vm1933_vm10, %v1921_v36, %v1648_v34  ;;  %3167 = vmatprep.subr.mxu0 %v5810_v7  ;;  %v2829_v36 = vld [vmem:[%s7304_s4 + $0x1c8] sm:$0xff] }
 0x206   : > { %v5874_v3 = vpop.permute.xlu1 %755  ;;  %1279 = vrot.lane.b32.xlu0 %v5791_v16, %s4583_s11  ;;  %4413 = vmatprep.mubr.msk.f32.mxu0 %vm1971_vm11, %v1954_v59 }
 0x207   : > { %3168 = vmatpush1.msra.mxu0 %v2806_v14 }
 0x208   : > { %1281 = vrot.lane.b32.xlu1 %v5805_v45, %s4583_s11  ;;  %v1650_v58 = vpop.permute.xlu0 %1649  ;;  %3169 = vmatprep.subr.mxu0 %v5810_v7 }
 0x209   : > { %v1955_v13 = vsel %vm1933_vm10, %v1922_v51, %v1650_v58  ;;  %3170 = vmatpush1.msra.mxu0 %v2805_v9  ;;  %v613_v9 = vld [vmem:[#allocation2 + $0x198] sm:$0xff] }
 0x20a   : > { %v5894_v37 = vpop.permute.xlu1 %757  ;;  %1407 = vrot.lane.b32.xlu0 %v5887_v47, %s4584_s18  ;;  %v4397_v57 = vpop.f32.mrf.mxu0  ;;  %4414 = vmatmul.mubr.msk.f32.gmra.mxu0 %vm1971_vm11, %v1955_v13 }
 0x20b   : > { %v2313_v2 = vmul.f32 %v4397_v57, %v5541_v52  ;;  %3171 = vmatprep.subr.mxu0 %v5810_v7  ;;  %v1726_v41 = vsel %vm279_vm0, %v5470_v44, %v5894_v37  ;;  %v2826_v57 = vld [vmem:[%s7304_s4 + $0x1b0] sm:$0xff] }
 0x20c   : > { %1409 = vrot.lane.b32.xlu1 %v5890_v12, %s4584_s18  ;;  %v884_v56 = vpop.permute.xlu0 %883  ;;  %v2178_v17 = vpop.f32.mrf.mxu0  ;;  %3172 = vmatpush1.msra.mxu0 %v2804_v8 }
 0x20d   : > { %v2352_v0 = vadd.f32 %v5549_v50, %v2313_v2  ;;  %v2312_v54 = vmul.f32 %v5541_v52, %v2178_v17  ;;  %3173 = vmatprep.subr.mxu0 %v5810_v7 }
 0x20e   : > { %v5914_v24 = vpop.permute.xlu1 %885  ;;  %1535 = vrot.lane.b32.xlu0 %v5905_v43, %s4585_s21  ;;  %3174 = vmatpush2.msra.mxu0 %v2835_v6 }
 0x20f   : > { %v2384_v53 = vmax.f32 %v2352_v0, 0.0  ;;  %v2351_v32 = vadd.f32 %v5549_v50, %v2312_v54  ;;  %3175 = vmatprep.subr.mxu0 %v5810_v7  ;;  %v2825_v0 = vld [vmem:[%s7304_s4 + $0x1a8] sm:$0xff] }
 0x210   : > { %1537 = vrot.lane.b32.xlu1 %v5911_v55, %s4585_s21  ;;  %v1012_v18 = vpop.permute.xlu0 %1011  ;;  %3176 = vmatpush2.msra.mxu0 %v2834_v30 }
 0x211   : > { %2460 = vst [vmem:[#allocation3 + $0x81] sm:$0xff] %v2384_v53  ;;  %v2383_v10 = vmax.f32 %v2351_v32, 0.0  ;;  %3177 = vmatprep.subr.mxu0 %v5810_v7 }
 0x212   : > { %v1014_v19 = vpop.permute.xlu1 %1013  ;;  %1663 = vrot.lane.b32.xlu0 %v5926_v21, %s4586_s27  ;;  %3178 = vmatpush2.msra.mxu0 %v2833_v23  ;;  %v2822_v23 = vld [vmem:[%s7304_s4 + $0x190] sm:$0xff] }
 0x213   : > { %2459 = vst [vmem:[#allocation3 + $0x79] sm:$0xff] %v2383_v10  ;;  %3030 = vmatprep.mubr.f32.mxu1 %v2383_v10  ;;  %3179 = vmatprep.subr.mxu0 %v5810_v7  ;;  %v2823_v10 = vld [vmem:[%s7304_s4 + $0x198] sm:$0xff] }
 0x214   : > { %1665 = vrot.lane.b32.xlu1 %v5932_v15, %s4586_s27  ;;  %v1140_v1 = vpop.permute.xlu0 %1139  ;;  %3180 = vmatpush2.msra.mxu0 %v2832_v27 }
 0x215   : > { %3181 = vmatprep.subr.mxu0 %v5810_v7 }
 0x216   : > { %v1142_v20 = vpop.permute.xlu1 %1141  ;;  %771 = vrot.lane.b32.xlu0 %v5769_v62, %s4580_s8  ;;  %3182 = vmatpush2.msra.mxu0 %v2831_v22  ;;  %v678_v22 = vld [vmem:[#allocation2 + $0x1a2] sm:$0xff] }
 0x217   : > { %3183 = vmatprep.subr.mxu0 %v5810_v7 }
 0x218   : > { %773 = vrot.lane.b32.xlu1 %v5773_v5, %s4580_s8  ;;  %v1268_v42 = vpop.permute.xlu0 %1267  ;;  %v2830_v5 = vld [vmem:[%s7304_s4 + $0x1d0] sm:$0xff] }
 0x219   : > { %3184 = vmatpush2.msra.mxu0 %v2830_v5 }
 0x21a   : > { %v1270_v33 = vpop.permute.xlu1 %1269  ;;  %899 = vrot.lane.b32.xlu0 %v5791_v16, %s4579_s30  ;;  %v5960_v62 = vld [vmem:[#allocation3 + $0x78] sm:$0xff]  ;;  %v1725_v16 = vsel %vm279_vm0, %v5467_v60, %v5874_v3  ;;  %3185 = vmatprep.subr.mxu0 %v5810_v7 }
 0x21b   : > { %3031 = vmatmul.mubr.f32.gmra.mxu1 %v5960_v62  ;;  %v1758_v34 = vsel %vm1735_vm4, %v1725_v16, %v884_v56  ;;  %3186 = vmatpush2.msra.mxu0 %v2829_v36 }
 0x21c   : > { %901 = vrot.lane.b32.xlu1 %v5805_v45, %s4579_s30  ;;  %v1396_v38 = vpop.permute.xlu0 %1395  ;;  %3035 = vmatprep.mubr.f32.mxu1 %v2384_v53  ;;  %v5975_v45 = vld [vmem:[#allocation3 + $0x80] sm:$0xff]  ;;  %v1791_v35 = vsel %vm1768_vm5, %v1758_v34, %v1012_v18  ;;  %v2824_v53 = vld [vmem:[%s7304_s4 + $0x1a0] sm:$0xff] }
 0x21d   : > { %v1824_v59 = vsel %vm1801_vm6, %v1791_v35, %v1140_v1  ;;  %3187 = vmatprep.subr.mxu0 %v5810_v7 }
 0x21e   : > { %v1398_v39 = vpop.permute.xlu1 %1397  ;;  %1027 = vrot.lane.b32.xlu0 %v5887_v47, %s4581_s9  ;;  %v1857_v63 = vsel %vm1834_vm7, %v1824_v59, %v1268_v42  ;;  %v1759_v47 = vsel %vm1735_vm4, %v1726_v41, %v5914_v24  ;;  %3188 = vmatpush2.msra.mxu0 %v2828_v48  ;;  %v677_v42 = vld [vmem:[#allocation2 + $0x19a] sm:$0xff] }
 0x21f   : > { %3036 = vmatmul.mubr.f32.gmra.mxu1 %v5975_v45  ;;  %v1890_v51 = vsel %vm1867_vm8, %v1857_v63, %v1396_v38  ;;  %v1792_v44 = vsel %vm1768_vm5, %v1759_v47, %v1014_v19  ;;  %3189 = vmatprep.subr.mxu0 %v5810_v7  ;;  %v2821_v38 = vld [vmem:[%s7304_s4 + $0x188] sm:$0xff] }
 0x220   : > { %1029 = vrot.lane.b32.xlu1 %v5890_v12, %s4581_s9  ;;  %v1524_v60 = vpop.permute.xlu0 %1523  ;;  %v1825_v13 = vsel %vm1801_vm6, %v1792_v44, %v1142_v20  ;;  %3190 = vmatpush2.msra.mxu0 %v2827_v46 }
 0x221   : > { %v1923_v58 = vsel %vm1900_vm9, %v1890_v51, %v1524_v60  ;;  %v1858_v2 = vsel %vm1834_vm7, %v1825_v13, %v1270_v33  ;;  %3191 = vmatprep.subr.mxu0 %v5810_v7 }
 0x222   : > { %v1526_v3 = vpop.permute.xlu1 %1525  ;;  %1155 = vrot.lane.b32.xlu0 %v5905_v43, %s4582_s10  ;;  %v1891_v43 = vsel %vm1867_vm8, %v1858_v2, %v1398_v39  ;;  %3192 = vmatpush2.msra.mxu0 %v2826_v57 }
 0x223   : > { %v1924_v56 = vsel %vm1900_vm9, %v1891_v43, %v1526_v3  ;;  %3193 = vmatprep.subr.mxu0 %v5810_v7 }
 0x224   : > { %1157 = vrot.lane.b32.xlu1 %v5911_v55, %s4582_s10  ;;  %v1652_v12 = vpop.permute.xlu0 %1651  ;;  %v614_v55 = vld [vmem:[#allocation2 + $0x1a0] sm:$0xff]  ;;  %3194 = vmatpush2.msra.mxu0 %v2825_v0 }
 0x225   : > { %v1956_v37 = vsel %vm1933_vm10, %v1923_v58, %v1652_v12  ;;  %3195 = vmatprep.subr.mxu0 %v5810_v7 }
 0x226   : > { %v6010_v14 = vpop.permute.xlu1 %759  ;;  %1283 = vrot.lane.b32.xlu0 %v5926_v21, %s4583_s11  ;;  %4416 = vmatprep.mubr.msk.f32.mxu0 %vm1971_vm11, %v1956_v37  ;;  %v645_v21 = vld [vmem:[#allocation2 + $0x199] sm:$0xff] }
 0x227   : > { %3196 = vmatpush2.msra.mxu0 %v2824_v53  ;;  %v1727_v59 = vsel %vm279_vm0, %v5535_v49, %v6010_v14 }
 0x228   : > { %1285 = vrot.lane.b32.xlu1 %v5932_v15, %s4583_s11  ;;  %v1654_v17 = vpop.permute.xlu0 %1653  ;;  %v646_v15 = vld [vmem:[#allocation2 + $0x1a1] sm:$0xff]  ;;  %3197 = vmatprep.subr.mxu0 %v5810_v7 }
 0x229   : > { %v1957_v24 = vsel %vm1933_vm10, %v1924_v56, %v1654_v17  ;;  %3198 = vmatpush2.msra.mxu0 %v2823_v10 }
 0x22a   : > { %v6028_v54 = vpop.permute.xlu1 %761  ;;  %1411 = vrot.lane.b32.xlu0 %v613_v9, %s4584_s18  ;;  %v4400_v8 = vpop.f32.mrf.mxu0  ;;  %4417 = vmatmul.mubr.msk.f32.gmra.mxu0 %vm1971_vm11, %v1957_v24 }
 0x22b   : > { %v2315_v32 = vmul.f32 %v4400_v8, %v5541_v52  ;;  %3199 = vmatprep.subr.mxu0 %v5810_v7  ;;  %v1728_v44 = vsel %vm279_vm0, %v5543_v61, %v6028_v54  ;;  %v6094_v54 = vld [vmem:[%s7302_s2] ss:$0 sm:$0xff] }
 0x22c   : > { %1413 = vrot.lane.b32.xlu1 %v614_v55, %s4584_s18  ;;  %v888_v6 = vpop.permute.xlu0 %887  ;;  %v2188_v18 = vpop.f32.mrf.mxu0  ;;  %3200 = vmatpush2.msra.mxu0 %v2822_v23  ;;  %s7150_s18 = scalar_lea.vmem %s7307_s7, %s4286_s26 }
 0x22d   : > { %v2354_v19 = vadd.f32 %v5549_v50, %v2315_v32  ;;  %v2314_v1 = vmul.f32 %v5541_v52, %v2188_v18  ;;  %3201 = vmatprep.subr.mxu0 %v5810_v7  ;;  %v1760_v41 = vsel %vm1735_vm4, %v1727_v59, %v888_v6 }
 0x22e   : > { %v890_v30 = vpop.permute.xlu1 %889  ;;  %1539 = vrot.lane.b32.xlu0 %v645_v21, %s4585_s21  ;;  %3202 = vmatpush2.msra.mxu0 %v2821_v38  ;;  %v6100_v21 = vld [vmem:[%s7303_s3] ss:$0 sm:$0xff] }
 0x22f   : > { %v2386_v20 = vmax.f32 %v2354_v19, 0.0  ;;  %v2353_v27 = vadd.f32 %v5549_v50, %v2314_v1  ;;  %v2820_v50 = vld [vmem:[%s7304_s4 + $0x180] sm:$0xff]  ;;  %3203 = vmatprep.subr.mxu0 %v5810_v7  ;;  %v1761_v49 = vsel %vm1735_vm4, %v1728_v44, %v890_v30 }
 0x230   : > { %1541 = vrot.lane.b32.xlu1 %v646_v15, %s4585_s21  ;;  %v1016_v33 = vpop.permute.xlu0 %1015  ;;  %3204 = vmatpush2.msra.mxu0 %v2820_v50 }
 0x231   : > { %2462 = vst [vmem:[#allocation3 + $0x99] sm:$0xff] %v2386_v20  ;;  %v2385_v52 = vmax.f32 %v2353_v27, 0.0  ;;  %3591 = vmatprep.subr.mxu0 %v5810_v7  ;;  %v1793_v63 = vsel %vm1768_vm5, %v1760_v41, %v1016_v33 }
 0x232   : > { %v1018_v5 = vpop.permute.xlu1 %1017  ;;  %1667 = vrot.lane.b32.xlu0 %v677_v42, %s4586_s27 }
 0x233   : > { %2461 = vst [vmem:[#allocation3 + $0x91] sm:$0xff] %v2385_v52  ;;  %3040 = vmatprep.mubr.f32.mxu1 %v2385_v52  ;;  %v1794_v13 = vsel %vm1768_vm5, %v1761_v49, %v1018_v5 }
 0x234   : > { %1669 = vrot.lane.b32.xlu1 %v678_v22, %s4586_s27  ;;  %v1144_v39 = vpop.permute.xlu0 %1143 }
 0x235   : > { %v1826_v47 = vsel %vm1801_vm6, %v1793_v63, %v1144_v39 }
 0x236   : > { %v1146_v16 = vpop.permute.xlu1 %1145 }
 0x237   : > { %v1827_v57 = vsel %vm1801_vm6, %v1794_v13, %v1146_v16 }
 0x238   : > { %v1272_v36 = vpop.permute.xlu0 %1271 }
 0x239   : > { %v1859_v58 = vsel %vm1834_vm7, %v1826_v47, %v1272_v36 }
 0x23a   : > { %v1274_v34 = vpop.permute.xlu1 %1273  ;;  %v6063_v35 = vld [vmem:[#allocation3 + $0x90] sm:$0xff]  ;;  %v6069_v3 = vld [vmem:[#allocation3 + $0x98] sm:$0xff] }
 0x23b   : > { %3041 = vmatmul.mubr.f32.gmra.mxu1 %v6063_v35  ;;  %v1860_v9 = vsel %vm1834_vm7, %v1827_v57, %v1274_v34 }
 0x23c   : > { %v1400_v60 = vpop.permute.xlu0 %1399  ;;  %3045 = vmatprep.mubr.f32.mxu1 %v2386_v20 }
 0x23d   : > { %v1892_v12 = vsel %vm1867_vm8, %v1859_v58, %v1400_v60 }
 0x23e   : > { %v1402_v48 = vpop.permute.xlu1 %1401 }
 0x23f   : > { %3046 = vmatmul.mubr.f32.gmra.mxu1 %v6069_v3  ;;  %v1893_v61 = vsel %vm1867_vm8, %v1860_v9, %v1402_v48 }
 0x240   : > { %v1528_v46 = vpop.permute.xlu0 %1527 }
 0x241   : > { %v1925_v37 = vsel %vm1900_vm9, %v1892_v12, %v1528_v46 }
 0x242   : > { %v1530_v51 = vpop.permute.xlu1 %1529 }
 0x243   : > { %v1926_v56 = vsel %vm1900_vm9, %v1893_v61, %v1530_v51 }
 0x244   : > { %v1656_v14 = vpop.permute.xlu0 %1655 }
 0x245   : > { %v1958_v2 = vsel %vm1933_vm10, %v1925_v37, %v1656_v14 }
 0x246   : > { %v764_v43 = vpop.permute.xlu1 %763  ;;  %4419 = vmatprep.mubr.msk.f32.mxu0 %vm1971_vm11, %v1958_v2 }
 0x247   : > { %v1729_v39 = vsel %vm279_vm0, %v5613_v31, %v764_v43 }
 0x248   : > { %v1658_v17 = vpop.permute.xlu0 %1657 }
 0x249   : > { %v1959_v55 = vsel %vm1933_vm10, %v1926_v56, %v1658_v17 }
 0x24a   : > { %v766_v0 = vpop.permute.xlu1 %765  ;;  %v4403_v24 = vpop.f32.mrf.mxu0  ;;  %4420 = vmatmul.mubr.msk.f32.gmra.mxu0 %vm1971_vm11, %v1959_v55 }
 0x24b   : > { %v2317_v8 = vmul.f32 %v6094_v54, %v4403_v24  ;;  %v1730_v46 = vsel %vm279_vm0, %v5616_v40, %v766_v0 }
 0x24c   : > { %v892_v53 = vpop.permute.xlu0 %891  ;;  %v2198_v32 = vpop.f32.mrf.mxu0 }
 0x24d   : > { %v2356_v6 = vadd.f32 %v6100_v21, %v2317_v8  ;;  %v2316_v15 = vmul.f32 %v6094_v54, %v2198_v32  ;;  %v1762_v36 = vsel %vm1735_vm4, %v1729_v39, %v892_v53 }
 0x24e   : > { %v894_v18 = vpop.permute.xlu1 %893 }
 0x24f   : > { %v2388_v10 = vmax.f32 %v2356_v6, 0.0  ;;  %v2355_v19 = vadd.f32 %v6100_v21, %v2316_v15  ;;  %v1763_v47 = vsel %vm1735_vm4, %v1730_v46, %v894_v18 }
 0x250   : > { %v1020_v30 = vpop.permute.xlu0 %1019 }
 0x251   : > { %2464 = vst [vmem:[#allocation3 + $0xb1] sm:$0xff] %v2388_v10  ;;  %v2387_v1 = vmax.f32 %v2355_v19, 0.0  ;;  %v1795_v60 = vsel %vm1768_vm5, %v1762_v36, %v1020_v30  ;;  %v2850_v30 = vld [vmem:[%s7304_s4 + $0x270] sm:$0xff] }
 0x252   : > { %v1022_v23 = vpop.permute.xlu1 %1021 }
 0x253   : > { %2463 = vst [vmem:[#allocation3 + $0xa9] sm:$0xff] %v2387_v1  ;;  %3050 = vmatprep.mubr.f32.mxu1 %v2387_v1  ;;  %v1796_v44 = vsel %vm1768_vm5, %v1763_v47, %v1022_v23 }
 0x254   : > { %v1148_v20 = vpop.permute.xlu0 %1147 }
 0x255   : > { %v1828_v59 = vsel %vm1801_vm6, %v1795_v60, %v1148_v20  ;;  %v2849_v20 = vld [vmem:[%s7304_s4 + $0x268] sm:$0xff] }
 0x256   : > { %v1150_v27 = vpop.permute.xlu1 %1149 }
 0x257   : > { %v1829_v12 = vsel %vm1801_vm6, %v1796_v44, %v1150_v27 }
 0x258   : > { %v1276_v42 = vpop.permute.xlu0 %1275 }
 0x259   : > { %v1861_v31 = vsel %vm1834_vm7, %v1828_v59, %v1276_v42 }
 0x25a   : > { %v1278_v33 = vpop.permute.xlu1 %1277  ;;  %v6105_v22 = vld [vmem:[#allocation3 + $0xa8] sm:$0xff]  ;;  %v6112_v16 = vld [vmem:[#allocation3 + $0xb0] sm:$0xff] }
 0x25b   : > { %v6107_v52 = vpop.f32.mrf.mxu1  ;;  %3051 = vmatmul.mubr.f32.gmra.mxu1 %v6105_v22  ;;  %v1862_v14 = vsel %vm1834_vm7, %v1829_v12, %v1278_v33 }
 0x25c   : > { %v1404_v5 = vpop.permute.xlu0 %1403  ;;  %3055 = vmatprep.mubr.f32.mxu1 %v2388_v10  ;;  %v2851_v10 = vld [vmem:[%s7304_s4 + $0x278] sm:$0xff] }
 0x25d   : > { %v2994_v50 = vpop.f32.mrf.mxu1  ;;  %v1894_v51 = vsel %vm1867_vm8, %v1861_v31, %v1404_v5  ;;  %3367 = vmatpush1.msra.mxu1 %v2851_v10 }
 0x25e   : > { %v1406_v38 = vpop.permute.xlu1 %1405  ;;  %3368 = vmatprep.subr.mxu1 %v5810_v7 }
 0x25f   : > { %v6115_v34 = vpop.f32.mrf.mxu1  ;;  %3056 = vmatmul.mubr.f32.gmra.mxu1 %v6112_v16  ;;  %v1895_v40 = vsel %vm1867_vm8, %v1862_v14, %v1406_v38  ;;  %v2848_v38 = vld [vmem:[%s7304_s4 + $0x260] sm:$0xff] }
 0x260   : > { %v1532_v48 = vpop.permute.xlu0 %1531  ;;  %3369 = vmatpush1.msra.mxu1 %v2850_v30 }
 0x261   : > { %v2999_v63 = vpop.f32.mrf.mxu1  ;;  %v1927_v58 = vsel %vm1900_vm9, %v1894_v51, %v1532_v48  ;;  %3370 = vmatprep.subr.mxu1 %v5810_v7 }
 0x262   : > { %v1534_v41 = vpop.permute.xlu1 %1533  ;;  %3371 = vmatpush1.msra.mxu1 %v2849_v20  ;;  %v2843_v20 = vld [vmem:[%s7304_s4 + $0x238] sm:$0xff] }
 0x263   : > { %v1928_v57 = vsel %vm1900_vm9, %v1895_v40, %v1534_v41  ;;  %3372 = vmatprep.subr.mxu1 %v5810_v7 }
 0x264   : > { %v1660_v49 = vpop.permute.xlu0 %1659  ;;  %3373 = vmatpush1.msra.mxu1 %v2848_v38  ;;  %v2842_v38 = vld [vmem:[%s7304_s4 + $0x230] sm:$0xff] }
 0x265   : > { %v1960_v13 = vsel %vm1933_vm10, %v1927_v58, %v1660_v49  ;;  %3374 = vmatprep.subr.mxu1 %v5810_v7 }
 0x266   : > { %v768_v37 = vpop.permute.xlu1 %767  ;;  %4422 = vmatprep.mubr.msk.f32.mxu0 %vm1971_vm11, %v1960_v13 }
 0x267   : > { %v1731_v36 = vsel %vm279_vm0, %v5681_v26, %v768_v37  ;;  %v2847_v26 = vld [vmem:[%s7304_s4 + $0x258] sm:$0xff] }
 0x268   : > { %v1662_v2 = vpop.permute.xlu0 %1661  ;;  %3375 = vmatpush1.msra.mxu1 %v2847_v26  ;;  %v2840_v26 = vld [vmem:[%s7304_s4 + $0x220] sm:$0xff] }
 0x269   : > { %v1961_v43 = vsel %vm1933_vm10, %v1928_v57, %v1662_v2  ;;  %3376 = vmatprep.subr.mxu1 %v5810_v7  ;;  %v2846_v57 = vld [vmem:[%s7304_s4 + $0x250] sm:$0xff] }
 0x26a   : > { %v770_v9 = vpop.permute.xlu1 %769  ;;  %v4406_v61 = vpop.f32.mrf.mxu0  ;;  %4423 = vmatmul.mubr.msk.f32.gmra.mxu0 %vm1971_vm11, %v1961_v43  ;;  %3377 = vmatpush1.msra.mxu1 %v2846_v57  ;;  %v2838_v57 = vld [vmem:[%s7304_s4 + $0x210] sm:$0xff] }
 0x26b   : > { %v2319_v56 = vmul.f32 %v6094_v54, %v4406_v61  ;;  %v1732_v48 = vsel %vm279_vm0, %v5684_v28, %v770_v9  ;;  %3378 = vmatprep.subr.mxu1 %v5810_v7 }
 0x26c   : > { %v896_v17 = vpop.permute.xlu0 %895  ;;  %v2208_v55 = vpop.f32.mrf.mxu0 }
 0x26d   : > { %v2358_v0 = vadd.f32 %v6100_v21, %v2319_v56  ;;  %v2318_v8 = vmul.f32 %v6094_v54, %v2208_v55  ;;  %v1764_v59 = vsel %vm1735_vm4, %v1731_v36, %v896_v17  ;;  %v2845_v56 = vld [vmem:[%s7304_s4 + $0x248] sm:$0xff] }
 0x26e   : > { %v898_v24 = vpop.permute.xlu1 %897  ;;  %3379 = vmatpush1.msra.mxu1 %v2845_v56 }
 0x26f   : > { %v2390_v53 = vmax.f32 %v2358_v0, 0.0  ;;  %v2357_v32 = vadd.f32 %v6100_v21, %v2318_v8  ;;  %v1765_v63 = vsel %vm1735_vm4, %v1732_v48, %v898_v24  ;;  %3380 = vmatprep.subr.mxu1 %v5810_v7 }
 0x270   : > { %v1024_v6 = vpop.permute.xlu0 %1023 }
 0x271   : > { %2466 = vst [vmem:[#allocation3 + $0xc9] sm:$0xff] %v2390_v53  ;;  %v2389_v18 = vmax.f32 %v2357_v32, 0.0  ;;  %v1797_v46 = vsel %vm1768_vm5, %v1764_v59, %v1024_v6 }
 0x272   : > { %v1026_v15 = vpop.permute.xlu1 %1025 }
 0x273   : > { %2465 = vst [vmem:[#allocation3 + $0xc1] sm:$0xff] %v2389_v18  ;;  %3060 = vmatprep.mubr.f32.mxu1 %v2389_v18  ;;  %v1798_v47 = vsel %vm1768_vm5, %v1765_v63, %v1026_v15 }
 0x274   : > { %v1152_v19 = vpop.permute.xlu0 %1151 }
 0x275   : > { %v1830_v51 = vsel %vm1801_vm6, %v1797_v46, %v1152_v19 }
 0x276   : > { %v1154_v1 = vpop.permute.xlu1 %1153 }
 0x277   : > { %v1831_v58 = vsel %vm1801_vm6, %v1798_v47, %v1154_v1 }
 0x278   : > { %v1280_v23 = vpop.permute.xlu0 %1279 }
 0x279   : > { %v1863_v49 = vsel %vm1834_vm7, %v1830_v51, %v1280_v23  ;;  %v2844_v23 = vld [vmem:[%s7304_s4 + $0x240] sm:$0xff] }
 0x27a   : > { %v1282_v27 = vpop.permute.xlu1 %1281  ;;  %v6150_v42 = vld [vmem:[#allocation3 + $0xc0] sm:$0xff]  ;;  %v6161_v60 = vld [vmem:[#allocation3 + $0xc8] sm:$0xff]  ;;  %3381 = vmatpush1.msra.mxu1 %v2844_v23 }
 0x27b   : > { %v6153_v33 = vpop.f32.mrf.mxu1  ;;  %3061 = vmatmul.mubr.f32.gmra.mxu1 %v6150_v42  ;;  %v1864_v12 = vsel %vm1834_vm7, %v1831_v58, %v1282_v27  ;;  %3382 = vmatprep.subr.mxu1 %v5810_v7 }
 0x27c   : > { %7308 = vst [vmem:[#allocation4_spill] sm:$0xff] %v6153_v33  ;;  %v1408_v5 = vpop.permute.xlu0 %1407  ;;  %3065 = vmatprep.mubr.f32.mxu1 %v2390_v53  ;;  %3383 = vmatpush1.msra.mxu1 %v2843_v20  ;;  %v2548_v20 = vld [vmem:[#allocation3 + $0xa] sm:$0xff] }
 0x27d   : > { %v3004_v39 = vpop.f32.mrf.mxu1  ;;  %v1896_v13 = vsel %vm1867_vm8, %v1863_v49, %v1408_v5  ;;  %3384 = vmatprep.subr.mxu1 %v5810_v7 }
 0x27e   : > { %v1410_v50 = vpop.permute.xlu1 %1409  ;;  %3385 = vmatpush1.msra.mxu1 %v2842_v38  ;;  %v2881_v38 = vld [vmem:[%s7304_s4 + $0x368] sm:$0xff] }
 0x27f   : > { %v6167_v41 = vpop.f32.mrf.mxu1  ;;  %3066 = vmatmul.mubr.f32.gmra.mxu1 %v6161_v60  ;;  %v1897_v37 = vsel %vm1867_vm8, %v1864_v12, %v1410_v50  ;;  %v2841_v50 = vld [vmem:[%s7304_s4 + $0x228] sm:$0xff]  ;;  %3386 = vmatprep.subr.mxu1 %v5810_v7 }
 0x280   : > { %7309 = vst [vmem:[#allocation5_spill] sm:$0xff] %v6167_v41  ;;  %v1536_v31 = vpop.permute.xlu0 %1535  ;;  %3387 = vmatpush1.msra.mxu1 %v2841_v50 }
 0x281   : > { %v3009_v44 = vpop.f32.mrf.mxu1  ;;  %v1929_v14 = vsel %vm1900_vm9, %v1896_v13, %v1536_v31  ;;  %3388 = vmatprep.subr.mxu1 %v5810_v7 }
 0x282   : > { %v1538_v28 = vpop.permute.xlu1 %1537  ;;  %3389 = vmatpush1.msra.mxu1 %v2840_v26  ;;  %v2879_v26 = vld [vmem:[%s7304_s4 + $0x358] sm:$0xff] }
 0x283   : > { %v1930_v2 = vsel %vm1900_vm9, %v1897_v37, %v1538_v28  ;;  %3390 = vmatprep.subr.mxu1 %v5810_v7 }
 0x284   : > { %v1664_v40 = vpop.permute.xlu0 %1663 }
 0x285   : > { %v1962_v43 = vsel %vm1933_vm10, %v1929_v14, %v1664_v40 }
 0x286   : > { %v1666_v9 = vpop.permute.xlu1 %1665  ;;  %4425 = vmatprep.mubr.msk.f32.mxu0 %vm1971_vm11, %v1962_v43 }
 0x287   : > { %v1963_v61 = vsel %vm1933_vm10, %v1930_v2, %v1666_v9  ;;  %v2837_v9 = vld [vmem:[%s7304_s4 + $0x208] sm:$0xff] }
 0x288   : > { %4426 = vmatmul.mubr.msk.f32.gmra.mxu0 %vm1971_vm11, %v1963_v61  ;;  %v772_v17 = vpop.permute.xlu0 %771 }
 0x289   : > { %v1733_v47 = vsel %vm279_vm0, %v5755_v25, %v772_v17  ;;  %v2839_v25 = vld [vmem:[%s7304_s4 + $0x218] sm:$0xff] }
 0x28a   : > { %v774_v55 = vpop.permute.xlu1 %773  ;;  %v4409_v0 = vpop.f32.mrf.mxu0  ;;  %3391 = vmatpush1.msra.mxu1 %v2839_v25  ;;  %v2877_v25 = vld [vmem:[%s7304_s4 + $0x348] sm:$0xff] }
 0x28b   : > { %v2321_v24 = vmul.f32 %v6094_v54, %v4409_v0  ;;  %v1734_v28 = vsel %vm279_vm0, %v5758_v29, %v774_v55  ;;  %3392 = vmatprep.subr.mxu1 %v5810_v7 }
 0x28c   : > { %v900_v8 = vpop.permute.xlu0 %899  ;;  %v2218_v53 = vpop.f32.mrf.mxu0  ;;  %3393 = vmatpush1.msra.mxu1 %v2838_v57  ;;  %v2584_v57 = vld [vmem:[#allocation3 + $0x50] sm:$0xff] }
 0x28d   : > { %v2360_v32 = vadd.f32 %v6100_v21, %v2321_v24  ;;  %v2320_v18 = vmul.f32 %v6094_v54, %v2218_v53  ;;  %v1766_v44 = vsel %vm1735_vm4, %v1733_v47, %v900_v8  ;;  %3394 = vmatprep.subr.mxu1 %v5810_v7  ;;  %v2582_v47 = vld [vmem:[#allocation3 + $0x38] sm:$0xff] }
 0x28e   : > { %v902_v6 = vpop.permute.xlu1 %901  ;;  %3395 = vmatpush1.msra.mxu1 %v2837_v9 }
 0x28f   : > { %v2392_v15 = vmax.f32 %v2360_v32, 0.0  ;;  %v2359_v10 = vadd.f32 %v6100_v21, %v2320_v18  ;;  %v1767_v49 = vsel %vm1735_vm4, %v1734_v28, %v902_v6  ;;  %3396 = vmatprep.subr.mxu1 %v5810_v7  ;;  %v2579_v6 = vld [vmem:[#allocation3 + $0x18] sm:$0xff]  ;;  %v2547_v18 = vld [vmem:[#allocation3 + $0x2] sm:$0xff]  ;;  %v2836_v28 = vld [vmem:[%s7304_s4 + $0x200] sm:$0xff] }
 0x290   : > { %v1028_v19 = vpop.permute.xlu0 %1027  ;;  %3397 = vmatpush1.msra.mxu1 %v2836_v28  ;;  %v2899_v28 = vld [vmem:[%s7304_s4 + $0x3f8] sm:$0xff] }
 0x291   : > { %2468 = vst [vmem:[#allocation3 + $0xe1] sm:$0xff] %v2392_v15  ;;  %v2391_v30 = vmax.f32 %v2359_v10, 0.0  ;;  %v1799_v12 = vsel %vm1768_vm5, %v1766_v44, %v1028_v19  ;;  %v2867_v44 = vld [vmem:[%s7304_s4 + $0x2f8] sm:$0xff]  ;;  %3398 = vmatprep.subr.mxu1 %v5810_v7 }
 0x292   : > { %v1030_v1 = vpop.permute.xlu1 %1029  ;;  %3399 = vmatpush2.msra.mxu1 %v2867_v44  ;;  %v2860_v44 = vld [vmem:[%s7304_s4 + $0x2c0] sm:$0xff] }
 0x293   : > { %2467 = vst [vmem:[#allocation3 + $0xd9] sm:$0xff] %v2391_v30  ;;  %3070 = vmatprep.mubr.f32.mxu1 %v2391_v30  ;;  %v1800_v37 = vsel %vm1768_vm5, %v1767_v49, %v1030_v1  ;;  %v2580_v30 = vld [vmem:[#allocation3 + $0x20] sm:$0xff] }
 0x294   : > { %v1156_v27 = vpop.permute.xlu0 %1155  ;;  %v2882_v1 = vld [vmem:[%s7304_s4 + $0x370] sm:$0xff] }
 0x295   : > { %v1832_v29 = vsel %vm1801_vm6, %v1799_v12, %v1156_v27  ;;  %v2878_v49 = vld [vmem:[%s7304_s4 + $0x350] sm:$0xff] }
 0x296   : > { %v1158_v5 = vpop.permute.xlu1 %1157  ;;  %v6301_v12 = vld [vmem:[#allocation3 + $0x22] sm:$0xff] }
 0x297   : > { %v1833_v2 = vsel %vm1801_vm6, %v1800_v37, %v1158_v5  ;;  %v2866_v37 = vld [vmem:[%s7304_s4 + $0x2f0] sm:$0xff] }
 0x298   : > { %v1284_v39 = vpop.permute.xlu0 %1283 }
 0x299   : > { %v1865_v43 = vsel %vm1834_vm7, %v1832_v29, %v1284_v39  ;;  %v6312_v29 = vld [vmem:[#allocation3 + $0x8] sm:$0xff] }
 0x29a   : > { %v1286_v36 = vpop.permute.xlu1 %1285  ;;  %v6216_v48 = vld [vmem:[#allocation3 + $0xd8] sm:$0xff]  ;;  %v6227_v51 = vld [vmem:[#allocation3 + $0xe0] sm:$0xff]  ;;  %3400 = vmatprep.subr.mxu1 %v6312_v29 }
 0x29b   : > { %v6218_v59 = vpop.f32.mrf.mxu1  ;;  %3071 = vmatmul.mubr.f32.gmra.mxu1 %v6216_v48  ;;  %v1866_v61 = vsel %vm1834_vm7, %v1833_v2, %v1286_v36  ;;  %v6277_v36 = vld [vmem:[#allocation3 + $0x30] sm:$0xff] }
 0x29c   : > { %7310 = vst [vmem:[#allocation6_spill] sm:$0xff] %v6218_v59  ;;  %v1412_v63 = vpop.permute.xlu0 %1411  ;;  %3075 = vmatprep.mubr.f32.mxu1 %v2392_v15  ;;  %v2883_v15 = vld [vmem:[%s7304_s4 + $0x378] sm:$0xff]  ;;  %3401 = vmatpush2.msra.mxu1 %v2866_v37  ;;  %v2876_v2 = vld [vmem:[%s7304_s4 + $0x340] sm:$0xff]  ;;  %v2897_v37 = vld [vmem:[%s7304_s4 + $0x3e8] sm:$0xff] }
 0x29d   : > { %v3014_v31 = vpop.f32.mrf.mxu1  ;;  %v1898_v56 = vsel %vm1867_vm8, %v1865_v43, %v1412_v63  ;;  %v2880_v63 = vld [vmem:[%s7304_s4 + $0x360] sm:$0xff]  ;;  %v2865_v43 = vld [vmem:[%s7304_s4 + $0x2e8] sm:$0xff]  ;;  %3402 = vmatprep.subr.mxu1 %v6312_v29 }
 0x29e   : > { %v1414_v46 = vpop.permute.xlu1 %1413  ;;  %v6285_v31 = vld [vmem:[#allocation3 + $0x1a] sm:$0xff]  ;;  %3403 = vmatpush2.msra.mxu1 %v2865_v43  ;;  %v6443_v43 = vld [vmem:[#allocation3 + $0x92] sm:$0xff] }
 0x29f   : > { %v6232_v58 = vpop.f32.mrf.mxu1  ;;  %3076 = vmatmul.mubr.f32.gmra.mxu1 %v6227_v51  ;;  %v1899_v17 = vsel %vm1867_vm8, %v1866_v61, %v1414_v46  ;;  %v6332_v61 = vld [vmem:[#allocation3 + $0x3a] sm:$0xff]  ;;  %3404 = vmatprep.subr.mxu1 %v6312_v29 }
 0x2a0   : > { %7311 = vst [vmem:[#allocation7_spill] sm:$0xff] %v6232_v58  ;;  %v1540_v13 = vpop.permute.xlu0 %1539 }
 0x2a1   : > { %v3019_v40 = vpop.f32.mrf.mxu1  ;;  %v1931_v55 = vsel %vm1900_vm9, %v1898_v56, %v1540_v13  ;;  %v2583_v13 = vld [vmem:[#allocation3 + $0x48] sm:$0xff] }
 0x2a2   : > { %v1542_v14 = vpop.permute.xlu1 %1541 }
 0x2a3   : > { %v1932_v24 = vsel %vm1900_vm9, %v1899_v17, %v1542_v14  ;;  %v2875_v17 = vld [vmem:[%s7304_s4 + $0x338] sm:$0xff] }
 0x2a4   : > { %v1668_v0 = vpop.permute.xlu0 %1667 }
 0x2a5   : > { %v1964_v8 = vsel %vm1933_vm10, %v1931_v55, %v1668_v0  ;;  %v2864_v0 = vld [vmem:[%s7304_s4 + $0x2e0] sm:$0xff] }
 0x2a6   : > { %v1670_v53 = vpop.permute.xlu1 %1669  ;;  %4428 = vmatprep.mubr.msk.f32.mxu0 %vm1971_vm11, %v1964_v8  ;;  %3405 = vmatpush2.msra.mxu1 %v2864_v0 }
 0x2a7   : > { %v1965_v32 = vsel %vm1933_vm10, %v1932_v24, %v1670_v53  ;;  %v4565_v24 = vld [vmem:[#allocation3 + $0x60] sm:$0xff]  ;;  %3406 = vmatprep.subr.mxu1 %v6312_v29 }
 0x2a8   : > { %4429 = vmatmul.mubr.msk.f32.gmra.mxu0 %vm1971_vm11, %v1965_v32  ;;  %v2874_v53 = vld [vmem:[%s7304_s4 + $0x330] sm:$0xff]  ;;  %v6351_v32 = vld [vmem:[#allocation3 + $0x4a] sm:$0xff] }
 0x2a9   : > { %3205 = vmatprep.mubr.f32.mxu0 %v2579_v6  ;;  %v2863_v6 = vld [vmem:[%s7304_s4 + $0x2d8] sm:$0xff] }
 0x2aa   : > { %v4412_v10 = vpop.f32.mrf.mxu0  ;;  %3407 = vmatpush2.msra.mxu1 %v2863_v6  ;;  %v2894_v6 = vld [vmem:[%s7304_s4 + $0x3d0] sm:$0xff] }
 0x2ab   : > { %v2323_v19 = vmul.f32 %v6094_v54, %v4412_v10  ;;  %v2872_v10 = vld [vmem:[%s7304_s4 + $0x320] sm:$0xff]  ;;  %3408 = vmatprep.subr.mxu1 %v6312_v29 }
 0x2ac   : > { %3206 = vmatmul.mubr.f32.vlgmr.msra.gmra.mxu0 %v2547_v18  ;;  %v2228_v23 = vpop.f32.mrf.mxu0  ;;  %v2873_v18 = vld [vmem:[%s7304_s4 + $0x328] sm:$0xff] }
 0x2ad   : > { %3210 = vmatprep.mubr.f32.mxu0 %v2580_v30  ;;  %3592 = vmatpush1.msra.mxu0 %v2883_v15  ;;  %v2362_v27 = vadd.f32 %v6100_v21, %v2323_v19  ;;  %v2322_v5 = vmul.f32 %v6094_v54, %v2228_v23  ;;  %v4566_v15 = vld [vmem:[#allocation3 + $0x68] sm:$0xff]  ;;  %v6366_v19 = vld [vmem:[#allocation3 + $0x52] sm:$0xff]  ;;  %v2862_v30 = vld [vmem:[%s7304_s4 + $0x2d0] sm:$0xff] }
 0x2ae   : > { %3593 = vmatprep.subr.mxu0 %v5810_v7  ;;  %v2870_v23 = vld [vmem:[%s7304_s4 + $0x310] sm:$0xff]  ;;  %3409 = vmatpush2.msra.mxu1 %v2862_v30  ;;  %v2893_v30 = vld [vmem:[%s7304_s4 + $0x3c8] sm:$0xff] }
 0x2af   : > { %3594 = vmatpush1.msra.mxu0 %v2882_v1  ;;  %v2394_v50 = vmax.f32 %v2362_v27, 0.0  ;;  %v2361_v39 = vadd.f32 %v6100_v21, %v2322_v5  ;;  %v2871_v1 = vld [vmem:[%s7304_s4 + $0x318] sm:$0xff]  ;;  %3410 = vmatprep.subr.mxu1 %v6312_v29 }
 0x2b0   : > { %3211 = vmatmul.mubr.f32.gmra.mxu0 %v2548_v20  ;;  %3595 = vmatprep.subr.mxu0 %v5810_v7  ;;  %v6382_v27 = vld [vmem:[#allocation3 + $0x62] sm:$0xff] }
 0x2b1   : > { %3215 = vmatprep.mubr.f32.mxu0 %v6277_v36  ;;  %3596 = vmatpush1.msra.mxu0 %v2881_v38  ;;  %2470 = vst [vmem:[#allocation3 + $0xf9] sm:$0xff] %v2394_v50  ;;  %v2393_v46 = vmax.f32 %v2361_v39, 0.0 }
 0x2b2   : > { %3597 = vmatprep.subr.mxu0 %v5810_v7 }
 0x2b3   : > { %3598 = vmatpush1.msra.mxu0 %v2880_v63  ;;  %2469 = vst [vmem:[#allocation3 + $0xf1] sm:$0xff] %v2393_v46  ;;  %3080 = vmatprep.mubr.f32.mxu1 %v2393_v46  ;;  %v2868_v63 = vld [vmem:[%s7304_s4 + $0x300] sm:$0xff]  ;;  %v2861_v46 = vld [vmem:[%s7304_s4 + $0x2c8] sm:$0xff] }
 0x2b4   : > { %3216 = vmatmul.mubr.f32.gmra.mxu0 %v6285_v31  ;;  %3599 = vmatprep.subr.mxu0 %v5810_v7 }
 0x2b5   : > { %3220 = vmatprep.mubr.f32.mxu0 %v2582_v47  ;;  %3600 = vmatpush1.msra.mxu0 %v2879_v26  ;;  %v6401_v26 = vld [vmem:[#allocation3 + $0x6a] sm:$0xff] }
 0x2b6   : > { %3601 = vmatprep.subr.mxu0 %v5810_v7  ;;  %v6316_v7 = vld [vmem:[#allocation3 + $0x32] sm:$0xff]  ;;  %3411 = vmatpush2.msra.mxu1 %v2861_v46 }
 0x2b7   : > { %3602 = vmatpush1.msra.mxu0 %v2878_v49  ;;  %3412 = vmatprep.subr.mxu1 %v6312_v29 }
 0x2b8   : > { %3221 = vmatmul.mubr.f32.gmra.mxu0 %v6301_v12  ;;  %3603 = vmatprep.subr.mxu0 %v6312_v29 }
 0x2b9   : > { %3225 = vmatprep.mubr.f32.mxu0 %v2583_v13  ;;  %3604 = vmatpush1.msra.mxu0 %v2877_v25  ;;  %v6415_v13 = vld [vmem:[#allocation3 + $0x7a] sm:$0xff] }
 0x2ba   : > { %v6318_v14 = vld [vmem:[#allocation3 + $0xf0] sm:$0xff]  ;;  %3605 = vmatprep.subr.mxu0 %v6312_v29  ;;  %v6334_v56 = vld [vmem:[#allocation3 + $0xf8] sm:$0xff]  ;;  %v2898_v25 = vld [vmem:[%s7304_s4 + $0x3f0] sm:$0xff]  ;;  %3413 = vmatpush2.msra.mxu1 %v2860_v44 }
 0x2bb   : > { %v6321_v40 = vpop.f32.mrf.mxu1  ;;  %3081 = vmatmul.mubr.f32.gmra.mxu1 %v6318_v14  ;;  %3606 = vmatpush1.msra.mxu0 %v2876_v2  ;;  %v2858_v2 = vld [vmem:[%s7304_s4 + $0x2b0] sm:$0xff] }
 0x2bc   : > { %3226 = vmatmul.mubr.f32.gmra.mxu0 %v6316_v7  ;;  %7312 = vst [vmem:[#allocation8_spill] sm:$0xff] %v6321_v40  ;;  %3085 = vmatprep.mubr.f32.mxu1 %v2394_v50 }
 0x2bd   : > { %3230 = vmatprep.mubr.f32.mxu0 %v2584_v57  ;;  %v3024_v9 = vpop.f32.mrf.mxu1  ;;  %3607 = vmatprep.subr.mxu0 %v6312_v29  ;;  %v6430_v57 = vld [vmem:[#allocation3 + $0x82] sm:$0xff] }
 0x2be   : > { %3608 = vmatpush1.msra.mxu0 %v2875_v17  ;;  %3414 = vmatprep.subr.mxu1 %v6312_v29  ;;  %v2857_v17 = vld [vmem:[%s7304_s4 + $0x2a8] sm:$0xff] }
 0x2bf   : > { %v6340_v55 = vpop.f32.mrf.mxu1  ;;  %3086 = vmatmul.mubr.f32.gmra.mxu1 %v6334_v56  ;;  %3609 = vmatprep.subr.mxu0 %v6312_v29 }
 0x2c0   : > { %3231 = vmatmul.mubr.f32.gmra.mxu0 %v6332_v61  ;;  %7313 = vst [vmem:[#allocation9_spill] sm:$0xff] %v6340_v55 }
 0x2c1   : > { %3235 = vmatprep.mubr.f32.mxu0 %v4565_v24  ;;  %v3029_v8 = vpop.f32.mrf.mxu1  ;;  %3610 = vmatpush1.msra.mxu0 %v2874_v53 }
 0x2c2   : > { %3611 = vmatprep.subr.mxu0 %v6312_v29  ;;  %v6459_v8 = vld [vmem:[#allocation3 + $0x9a] sm:$0xff] }
 0x2c3   : > { %3612 = vmatpush1.msra.mxu0 %v2873_v18 }
 0x2c4   : > { %3236 = vmatmul.mubr.f32.gmra.mxu0 %v6351_v32  ;;  %3613 = vmatprep.subr.mxu0 %v6312_v29 }
 0x2c5   : > { %3240 = vmatprep.mubr.f32.mxu0 %v4566_v15  ;;  %3614 = vmatpush1.msra.mxu0 %v2872_v10  ;;  %v2855_v15 = vld [vmem:[%s7304_s4 + $0x298] sm:$0xff] }
 0x2c6   : > { %3615 = vmatprep.subr.mxu0 %v6312_v29 }
 0x2c7   : > { %3616 = vmatpush1.msra.mxu0 %v2871_v1  ;;  %v6483_v1 = vld [vmem:[#allocation3 + $0xaa] sm:$0xff] }
 0x2c8   : > { %3241 = vmatmul.mubr.f32.gmra.mxu0 %v6366_v19  ;;  %3617 = vmatprep.subr.mxu0 %v6312_v29 }
 0x2c9   : > { %3245 = vmatprep.mubr.f32.mxu0 %v5960_v62  ;;  %v2869_v62 = vld [vmem:[%s7304_s4 + $0x308] sm:$0xff]  ;;  %3618 = vmatpush1.msra.mxu0 %v2870_v23  ;;  %v2892_v23 = vld [vmem:[%s7304_s4 + $0x3c0] sm:$0xff] }
 0x2ca   : > { %v4415_v20 = vpop.f32.mrf.mxu0  ;;  %3619 = vmatprep.subr.mxu0 %v6312_v29 }
 0x2cb   : > { %v2325_v5 = vmul.f32 %v6094_v54, %v4415_v20  ;;  %3620 = vmatpush1.msra.mxu0 %v2869_v62  ;;  %v2853_v20 = vld [vmem:[%s7304_s4 + $0x288] sm:$0xff]  ;;  %v2891_v62 = vld [vmem:[%s7304_s4 + $0x3b8] sm:$0xff] }
 0x2cc   : > { %3246 = vmatmul.mubr.f32.gmra.mxu0 %v6382_v27  ;;  %v2238_v38 = vpop.f32.mrf.mxu0  ;;  %3621 = vmatprep.subr.mxu0 %v6312_v29 }
 0x2cd   : > { %3250 = vmatprep.mubr.f32.mxu0 %v5975_v45  ;;  %v2364_v50 = vadd.f32 %v6100_v21, %v2325_v5  ;;  %v2324_v39 = vmul.f32 %v6094_v54, %v2238_v38  ;;  %3622 = vmatpush1.msra.mxu0 %v2868_v63  ;;  %v6500_v5 = vld [vmem:[#allocation3 + $0xb2] sm:$0xff]  ;;  %v2890_v38 = vld [vmem:[%s7304_s4 + $0x3b0] sm:$0xff] }
 0x2ce   : > { %3623 = vmatprep.subr.mxu0 %v6312_v29 }
 0x2cf   : > { %v2396_v45 = vmax.f32 %v2364_v50, 0.0  ;;  %v2363_v47 = vadd.f32 %v6100_v21, %v2324_v39  ;;  %3624 = vmatpush2.msra.mxu0 %v2899_v28  ;;  %v6516_v39 = vld [vmem:[#allocation3 + $0xc2] sm:$0xff] }
 0x2d0   : > { %3251 = vmatmul.mubr.f32.gmra.mxu0 %v6401_v26  ;;  %3625 = vmatprep.subr.mxu0 %v6312_v29 }
 0x2d1   : > { %3255 = vmatprep.mubr.f32.mxu0 %v6063_v35  ;;  %2472 = vst [vmem:[#allocation3 + $0x111] sm:$0xff] %v2396_v45  ;;  %v2395_v49 = vmax.f32 %v2363_v47, 0.0  ;;  %v2859_v35 = vld [vmem:[%s7304_s4 + $0x2b8] sm:$0xff]  ;;  %3626 = vmatpush2.msra.mxu0 %v2898_v25 }
 0x2d2   : > { %3627 = vmatprep.subr.mxu0 %v6312_v29  ;;  %3415 = vmatpush2.msra.mxu1 %v2859_v35  ;;  %v6525_v47 = vld [vmem:[#allocation3 + $0xca] sm:$0xff] }
 0x2d3   : > { %2471 = vst [vmem:[#allocation3 + $0x109] sm:$0xff] %v2395_v49  ;;  %3090 = vmatprep.mubr.f32.mxu1 %v2395_v49  ;;  %3416 = vmatprep.subr.mxu1 %v6312_v29  ;;  %v6536_v49 = vld [vmem:[%s7304_s4 + $0x478] sm:$0xff]  ;;  %v2888_v35 = vld [vmem:[%s7304_s4 + $0x3a0] sm:$0xff] }
 0x2d4   : > { %3256 = vmatmul.mubr.f32.gmra.mxu0 %v6415_v13  ;;  %3417 = vmatpush2.msra.mxu1 %v2858_v2  ;;  %v2886_v2 = vld [vmem:[%s7304_s4 + $0x390] sm:$0xff] }
 0x2d5   : > { %3260 = vmatprep.mubr.f32.mxu0 %v6069_v3  ;;  %v2896_v3 = vld [vmem:[%s7304_s4 + $0x3e0] sm:$0xff]  ;;  %3628 = vmatpush2.msra.mxu0 %v2897_v37  ;;  %v6542_v37 = vld [vmem:[#allocation3 + $0xda] sm:$0xff] }
 0x2d6   : > { %3629 = vmatprep.subr.mxu0 %v6312_v29  ;;  %3418 = vmatprep.subr.mxu1 %v6312_v29 }
 0x2d7   : > { %3630 = vmatpush2.msra.mxu0 %v2896_v3  ;;  %3419 = vmatpush2.msra.mxu1 %v2857_v17  ;;  %v6554_v3 = vld [vmem:[#allocation3 + $0xe2] sm:$0xff]  ;;  %v6563_v17 = vld [vmem:[#allocation3 + $0xf2] sm:$0xff] }
 0x2d8   : > { %3261 = vmatmul.mubr.f32.gmra.mxu0 %v6430_v57  ;;  %3631 = vmatprep.subr.mxu0 %v6312_v29 }
 0x2d9   : > { %3265 = vmatprep.mubr.f32.mxu0 %v6105_v22  ;;  %v2895_v22 = vld [vmem:[%s7304_s4 + $0x3d8] sm:$0xff]  ;;  %3420 = vmatprep.subr.mxu1 %v6312_v29 }
 0x2da   : > { %v6445_v9 = vld [vmem:[#allocation3 + $0x108] sm:$0xff]  ;;  %v6462_v53 = vld [vmem:[#allocation3 + $0x110] sm:$0xff]  ;;  %3632 = vmatpush2.msra.mxu0 %v2895_v22 }
 0x2db   : > { %v6452_v0 = vpop.f32.mrf.mxu1  ;;  %3091 = vmatmul.mubr.f32.gmra.mxu1 %v6445_v9  ;;  %3633 = vmatprep.subr.mxu0 %v6312_v29 }
 0x2dc   : > { %3266 = vmatmul.mubr.f32.gmra.mxu0 %v6443_v43  ;;  %7314 = vst [vmem:[#allocation10_spill] sm:$0xff] %v6452_v0  ;;  %3095 = vmatprep.mubr.f32.mxu1 %v2396_v45  ;;  %v6786_v0 = vld [vmem:[%s7304_s4 + $0x410] sm:$0xff] }
 0x2dd   : > { %3270 = vmatprep.mubr.f32.mxu0 %v6112_v16  ;;  %v3034_v24 = vpop.f32.mrf.mxu1  ;;  %v2856_v16 = vld [vmem:[%s7304_s4 + $0x2a0] sm:$0xff]  ;;  %3634 = vmatpush2.msra.mxu0 %v2894_v6 }
 0x2de   : > { %3421 = vmatpush2.msra.mxu1 %v2856_v16  ;;  %3635 = vmatprep.subr.mxu0 %v6312_v29  ;;  %v2884_v6 = vld [vmem:[%s7304_s4 + $0x380] sm:$0xff]  ;;  %v2568_v16 = vld [vmem:[#allocation3 + $0xfa] sm:$0xff] }
 0x2df   : > { %v6472_v18 = vpop.f32.mrf.mxu1  ;;  %3096 = vmatmul.mubr.f32.gmra.mxu1 %v6462_v53  ;;  %3422 = vmatprep.subr.mxu1 %v6312_v29 }
 0x2e0   : > { %3271 = vmatmul.mubr.f32.gmra.mxu0 %v6459_v8  ;;  %7315 = vst [vmem:[#allocation11_spill] sm:$0xff] %v6472_v18  ;;  %3423 = vmatpush2.msra.mxu1 %v2855_v15 }
 0x2e1   : > { %3275 = vmatprep.mubr.f32.mxu0 %v6150_v42  ;;  %v3039_v10 = vpop.f32.mrf.mxu1  ;;  %v2854_v42 = vld [vmem:[%s7304_s4 + $0x290] sm:$0xff]  ;;  %3636 = vmatpush2.msra.mxu0 %v2893_v30 }
 0x2e2   : > { %3424 = vmatprep.subr.mxu1 %v6312_v29  ;;  %3637 = vmatprep.subr.mxu0 %v6312_v29 }
 0x2e3   : > { %3425 = vmatpush2.msra.mxu1 %v2854_v42  ;;  %3638 = vmatpush2.msra.mxu0 %v2892_v23 }
 0x2e4   : > { %3276 = vmatmul.mubr.f32.gmra.mxu0 %v6483_v1  ;;  %3426 = vmatprep.subr.mxu1 %v6312_v29 }
 0x2e5   : > { %3280 = vmatprep.mubr.f32.mxu0 %v6161_v60  ;;  %v2852_v60 = vld [vmem:[%s7304_s4 + $0x280] sm:$0xff]  ;;  %3427 = vmatpush2.msra.mxu1 %v2853_v20 }
 0x2e6   : > { %3428 = vmatprep.subr.mxu1 %v6312_v29  ;;  %3639 = vmatprep.subr.mxu0 %v6312_v29 }
 0x2e7   : > { %3429 = vmatpush2.msra.mxu1 %v2852_v60  ;;  %3640 = vmatpush2.msra.mxu0 %v2891_v62 }
 0x2e8   : > { %3281 = vmatmul.mubr.f32.gmra.mxu0 %v6500_v5  ;;  %3641 = vmatprep.subr.mxu0 %v6312_v29 }
 0x2e9   : > { %3285 = vmatprep.mubr.f32.mxu0 %v6216_v48  ;;  %3642 = vmatpush2.msra.mxu0 %v2890_v38 }
 0x2ea   : > { %v4418_v50 = vpop.f32.mrf.mxu0  ;;  %3643 = vmatprep.subr.mxu0 %v6312_v29  ;;  %4511 = vmatprep.subr.mxu1 %v6536_v49 }
 0x2eb   : > { %v2327_v63 = vmul.f32 %v6094_v54, %v4418_v50 }
 0x2ec   : > { %3286 = vmatmul.mubr.f32.gmra.mxu0 %v6516_v39  ;;  %v2248_v48 = vpop.f32.mrf.mxu0 }
 0x2ed   : > { %3290 = vmatprep.mubr.f32.mxu0 %v6227_v51  ;;  %v2366_v46 = vadd.f32 %v6100_v21, %v2327_v63  ;;  %v2326_v45 = vmul.f32 %v6094_v54, %v2248_v48  ;;  %v2889_v51 = vld [vmem:[%s7304_s4 + $0x3a8] sm:$0xff] }
 0x2ee   : > { %3644 = vmatpush2.msra.mxu0 %v2889_v51 }
 0x2ef   : > { %v2398_v28 = vmax.f32 %v2366_v46, 0.0  ;;  %v2365_v44 = vadd.f32 %v6100_v21, %v2326_v45  ;;  %3645 = vmatprep.subr.mxu0 %v6312_v29 }
 0x2f0   : > { %3291 = vmatmul.mubr.f32.gmra.mxu0 %v6525_v47 }
 0x2f1   : > { %3295 = vmatprep.mubr.f32.mxu0 %v6318_v14  ;;  %2474 = vst [vmem:[#allocation3 + $0x129] sm:$0xff] %v2398_v28  ;;  %v2397_v25 = vmax.f32 %v2365_v44, 0.0  ;;  %v2887_v14 = vld [vmem:[%s7304_s4 + $0x398] sm:$0xff]  ;;  %3646 = vmatpush2.msra.mxu0 %v2888_v35  ;;  %v6596_v35 = vld [vmem:[%s7302_s2] ss:$0 sm:$0xff] }
 0x2f2   : > { %3647 = vmatprep.subr.mxu0 %v6312_v29 }
 0x2f3   : > { %2473 = vst [vmem:[#allocation3 + $0x121] sm:$0xff] %v2397_v25  ;;  %3100 = vmatprep.mubr.f32.mxu1 %v2397_v25  ;;  %3648 = vmatpush2.msra.mxu0 %v2887_v14 }
 0x2f4   : > { %3296 = vmatmul.mubr.f32.gmra.mxu0 %v6542_v37  ;;  %3649 = vmatprep.subr.mxu0 %v6312_v29 }
 0x2f5   : > { %3300 = vmatprep.mubr.f32.mxu0 %v6334_v56  ;;  %3650 = vmatpush2.msra.mxu0 %v2886_v2  ;;  %v2885_v56 = vld [vmem:[%s7304_s4 + $0x388] sm:$0xff] }
 0x2f6   : > { %3651 = vmatprep.subr.mxu0 %v6312_v29 }
 0x2f7   : > { %3652 = vmatpush2.msra.mxu0 %v2885_v56  ;;  %v6602_v56 = vld [vmem:[%s7303_s3] ss:$0 sm:$0xff] }
 0x2f8   : > { %3301 = vmatmul.mubr.f32.gmra.mxu0 %v6554_v3  ;;  %3653 = vmatprep.subr.mxu0 %v6312_v29  ;;  %v2570_v29 = vld [vmem:[#allocation3 + $0x112] sm:$0xff] }
 0x2f9   : > { %3305 = vmatprep.mubr.f32.mxu0 %v6445_v9  ;;  %3654 = vmatpush2.msra.mxu0 %v2884_v6 }
 0x2fa   : > { %v2507_v22 = vld [vmem:[#allocation3 + $0x120] sm:$0xff]  ;;  %v2508_v15 = vld [vmem:[#allocation3 + $0x128] sm:$0xff]  ;;  %4431 = vmatprep.subr.mxu0 %v6536_v49 }
 0x2fb   : > { %v6566_v24 = vpop.f32.mrf.mxu1  ;;  %3101 = vmatmul.mubr.f32.gmra.mxu1 %v2507_v22  ;;  %v6585_v45 = vld [vmem:[#allocation3 + $0x122] sm:$0xff] }
 0x2fc   : > { %3306 = vmatmul.mubr.f32.gmra.mxu0 %v6563_v17  ;;  %7316 = vst [vmem:[#allocation12_spill] sm:$0xff] %v6566_v24  ;;  %3105 = vmatprep.mubr.f32.mxu1 %v2398_v28  ;;  %v6773_v24 = vld [vmem:[%s7304_s4 + $0x418] sm:$0xff] }
 0x2fd   : > { %3310 = vmatprep.mubr.f32.mxu0 %v6462_v53  ;;  %v3044_v9 = vpop.f32.mrf.mxu1  ;;  %v6576_v53 = vld [vmem:[#allocation3 + $0x10a] sm:$0xff] }
 0x2ff   : > { %v6573_v10 = vpop.f32.mrf.mxu1  ;;  %3106 = vmatmul.mubr.f32.gmra.mxu1 %v2508_v15 }
 0x300   : > { %3311 = vmatmul.mubr.f32.gmra.mxu0 %v2568_v16  ;;  %7317 = vst [vmem:[#allocation13_spill] sm:$0xff] %v6573_v10  ;;  %v6767_v10 = vld [vmem:[#allocation3 + $0x61] sm:$0xff] }
 0x301   : > { %3315 = vmatprep.mubr.f32.mxu0 %v2507_v22  ;;  %v3049_v30 = vpop.f32.mrf.mxu1 }
 0x304   : > { %3316 = vmatmul.mubr.f32.gmra.mxu0 %v6576_v53 }
 0x305   : > { %3320 = vmatprep.mubr.f32.mxu0 %v2508_v15 }
 0x308   : > { %3321 = vmatmul.mubr.f32.gmra.mxu0 %v2570_v29 }
 0x30a   : > { %v4421_v42 = vpop.f32.mrf.mxu0 }
 0x30b   : > { %v2329_v23 = vmul.f32 %v6094_v54, %v4421_v42 }
 0x30c   : > { %v2258_v20 = vpop.f32.mrf.mxu0 }
 0x30d   : > { %v2368_v60 = vadd.f32 %v6100_v21, %v2329_v23  ;;  %v2328_v62 = vmul.f32 %v6094_v54, %v2258_v20 }
 0x30f   : > { %v2400_v38 = vmax.f32 %v2368_v60, 0.0  ;;  %v2367_v50 = vadd.f32 %v6100_v21, %v2328_v62  ;;  %v6590_v21 = vld [vmem:[#allocation3 + $0x12a] sm:$0xff] }
 0x311   : > { %2476 = vst [vmem:[#allocation3 + $0x141] sm:$0xff] %v2400_v38  ;;  %v2399_v63 = vmax.f32 %v2367_v50, 0.0 }
 0x313   : > { %2475 = vst [vmem:[#allocation3 + $0x139] sm:$0xff] %v2399_v63  ;;  %3110 = vmatprep.mubr.f32.mxu1 %v2399_v63 }
 0x318   : > { %v6618_v62 = vld [vmem:[#allocation3 + $0x142] sm:$0xff] }
 0x31a   : > { %v2603_v48 = vld [vmem:[#allocation3 + $0x138] sm:$0xff]  ;;  %v2604_v28 = vld [vmem:[#allocation3 + $0x140] sm:$0xff] }
 0x31b   : > { %3325 = vmatprep.mubr.f32.mxu0 %v2603_v48  ;;  %v6583_v46 = vpop.f32.mrf.mxu1  ;;  %3111 = vmatmul.mubr.f32.gmra.mxu1 %v2603_v48  ;;  %v6613_v42 = vld [vmem:[#allocation3 + $0x13a] sm:$0xff] }
 0x31c   : > { %7318 = vst [vmem:[#allocation14_spill] sm:$0xff] %v6583_v46  ;;  %3326 = vmatmul.mubr.f32.gmra.mxu0 %v6585_v45  ;;  %3115 = vmatprep.mubr.f32.mxu1 %v2400_v38 }
 0x31d   : > { %3330 = vmatprep.mubr.f32.mxu0 %v2604_v28  ;;  %v3054_v54 = vpop.f32.mrf.mxu1 }
 0x31f   : > { %v6588_v44 = vpop.f32.mrf.mxu1  ;;  %3116 = vmatmul.mubr.f32.gmra.mxu1 %v2604_v28 }
 0x320   : > { %7319 = vst [vmem:[#allocation15_spill] sm:$0xff] %v6588_v44  ;;  %3331 = vmatmul.mubr.f32.gmra.mxu0 %v6590_v21 }
 0x321   : > { %v3059_v51 = vpop.f32.mrf.mxu1 }
 0x32a   : > { %v4424_v25 = vpop.f32.mrf.mxu0 }
 0x32b   : > { %v2331_v14 = vmul.f32 %v6596_v35, %v4424_v25 }
 0x32c   : > { %v2268_v2 = vpop.f32.mrf.mxu0 }
 0x32d   : > { %v2370_v22 = vadd.f32 %v6602_v56, %v2331_v14  ;;  %v2330_v9 = vmul.f32 %v6596_v35, %v2268_v2 }
 0x32f   : > { %v2402_v6 = vmax.f32 %v2370_v22, 0.0  ;;  %v2369_v16 = vadd.f32 %v6602_v56, %v2330_v9 }
 0x331   : > { %2478 = vst [vmem:[#allocation3 + $0x159] sm:$0xff] %v2402_v6  ;;  %v6607_v15 = vmax.f32 %v2369_v16, 0.0 }
 0x333   : > { %2477 = vst [vmem:[#allocation3 + $0x151] sm:$0xff] %v6607_v15  ;;  %3120 = vmatprep.mubr.f32.mxu1 %v6607_v15 }
 0x338   : > { %v6646_v16 = vld [vmem:[#allocation3 + $0x15a] sm:$0xff] }
 0x33a   : > { %v2605_v30 = vld [vmem:[#allocation3 + $0x150] sm:$0xff]  ;;  %v2606_v23 = vld [vmem:[#allocation3 + $0x158] sm:$0xff] }
 0x33b   : > { %3335 = vmatprep.mubr.f32.mxu0 %v2605_v30  ;;  %v6611_v29 = vpop.f32.mrf.mxu1  ;;  %3121 = vmatmul.mubr.f32.gmra.mxu1 %v2605_v30  ;;  %v6636_v22 = vld [vmem:[#allocation3 + $0x152] sm:$0xff] }
 0x33c   : > { %7320 = vst [vmem:[#allocation16_spill] sm:$0xff] %v6611_v29  ;;  %3336 = vmatmul.mubr.f32.gmra.mxu0 %v6613_v42  ;;  %3125 = vmatprep.mubr.f32.mxu1 %v2402_v6  ;;  %v6750_v29 = vld [vmem:[#allocation3 + $0x51] sm:$0xff] }
 0x33d   : > { %3340 = vmatprep.mubr.f32.mxu0 %v2606_v23  ;;  %v3064_v20 = vpop.f32.mrf.mxu1 }
 0x33e   : > { %v2611_v20 = vld [vmem:[#allocation3 + $0x19] sm:$0xff] }
 0x33f   : > { %v6616_v60 = vpop.f32.mrf.mxu1  ;;  %3126 = vmatmul.mubr.f32.gmra.mxu1 %v2606_v23 }
 0x340   : > { %7321 = vst [vmem:[#allocation17_spill] sm:$0xff] %v6616_v60  ;;  %3341 = vmatmul.mubr.f32.gmra.mxu0 %v6618_v62 }
 0x341   : > { %v3069_v38 = vpop.f32.mrf.mxu1 }
 0x342   : > { %v6655_v38 = vld [vmem:[%s7304_s4 + $0x470] sm:$0xff] }
 0x348   : > { %v4427_v50 = vpop.f32.mrf.mxu0 }
 0x349   : > { %v2333_v63 = vmul.f32 %v6596_v35, %v4427_v50 }
 0x34a   : > { %v2278_v48 = vpop.f32.mrf.mxu0 }
 0x34b   : > { %v2372_v28 = vadd.f32 %v6602_v56, %v2333_v63  ;;  %v2332_v54 = vmul.f32 %v6596_v35, %v2278_v48  ;;  %v6662_v63 = vld [vmem:[%s7304_s4 + $0x468] sm:$0xff]  ;;  %v6669_v48 = vld [vmem:[%s7304_s4 + $0x460] sm:$0xff] }
 0x34d   : > { %v6624_v51 = vmax.f32 %v2372_v28, 0.0  ;;  %v2371_v25 = vadd.f32 %v6602_v56, %v2332_v54  ;;  %v6680_v54 = vld [vmem:[#allocation3 + $0x31] sm:$0xff] }
 0x34f   : > { %2480 = vst [vmem:[#allocation3 + $0x171] sm:$0xff] %v6624_v51  ;;  %v6628_v14 = vmax.f32 %v2371_v25, 0.0  ;;  %v6686_v25 = vld [vmem:[%s7304_s4 + $0x450] sm:$0xff] }
 0x351   : > { %2479 = vst [vmem:[#allocation3 + $0x169] sm:$0xff] %v6628_v14  ;;  %3130 = vmatprep.mubr.f32.mxu1 %v6628_v14 }
 0x356   : > { %v6797_v58 = vld [vmem:[#allocation3 + $0x172] sm:$0xff] }
 0x358   : > { %v6632_v2 = vld [vmem:[#allocation3 + $0x168] sm:$0xff]  ;;  %v6640_v9 = vld [vmem:[#allocation3 + $0x170] sm:$0xff] }
 0x359   : > { %3345 = vmatprep.mubr.f32.mxu0 %v6632_v2  ;;  %3131 = vmatmul.mubr.f32.gmra.mxu1 %v6632_v2 }
 0x35a   : > { %3346 = vmatmul.mubr.f32.gmra.mxu0 %v6636_v22  ;;  %3135 = vmatprep.mubr.f32.mxu1 %v6624_v51 }
 0x35b   : > { %3350 = vmatprep.mubr.f32.mxu0 %v6640_v9  ;;  %v6643_v6 = vpop.f32.mrf.mxu1 }
 0x35c   : > { %7322 = vst [vmem:[#allocation18_spill] sm:$0xff] %v6643_v6 }
 0x35d   : > { %3136 = vmatmul.mubr.f32.gmra.mxu1 %v6640_v9  ;;  %v3074_v30 = vpop.f32.mrf.mxu1 }
 0x35e   : > { %3351 = vmatmul.mubr.f32.gmra.mxu0 %v6646_v16  ;;  %3430 = vmatprep.mubr.f32.mxu1 %v6285_v31  ;;  %v2612_v31 = vld [vmem:[#allocation3 + $0x21] sm:$0xff] }
 0x35f   : > { %v6650_v23 = vpop.f32.mrf.mxu1 }
 0x360   : > { %7323 = vst [vmem:[#allocation19_spill] sm:$0xff] %v6650_v23  ;;  %v6703_v23 = vld [vmem:[#allocation3 + $0x39] sm:$0xff] }
 0x361   : > { %3431 = vmatmul.mubr.f32.vlgmr.msra.gmra.mxu1 %v2611_v20  ;;  %v3079_v50 = vpop.f32.mrf.mxu1  ;;  %v6696_v20 = vld [vmem:[%s7304_s4 + $0x448] sm:$0xff] }
 0x362   : > { %3435 = vmatprep.mubr.f32.mxu1 %v6301_v12  ;;  %4527 = vmatpush3.msra.mxu1 %v6536_v49  ;;  %v6677_v12 = vld [vmem:[%s7304_s4 + $0x458] sm:$0xff] }
 0x363   : > { %4512 = vmatprep.subr.mxu1 %v6655_v38 }
 0x364   : > { %4528 = vmatpush3.msra.mxu1 %v6655_v38 }
 0x365   : > { %3436 = vmatmul.mubr.f32.gmra.mxu1 %v2612_v31  ;;  %4513 = vmatprep.subr.mxu1 %v6662_v63 }
 0x366   : > { %3440 = vmatprep.mubr.f32.mxu1 %v6316_v7  ;;  %4529 = vmatpush3.msra.mxu1 %v6662_v63 }
 0x367   : > { %4514 = vmatprep.subr.mxu1 %v6669_v48 }
 0x368   : > { %v4430_v28 = vpop.f32.mrf.mxu0  ;;  %4530 = vmatpush3.msra.mxu1 %v6669_v48 }
 0x369   : > { %v2335_v7 = vmul.f32 %v6596_v35, %v4430_v28  ;;  %3441 = vmatmul.mubr.f32.gmra.mxu1 %v6680_v54  ;;  %4515 = vmatprep.subr.mxu1 %v6677_v12 }
 0x36a   : > { %v2288_v30 = vpop.f32.mrf.mxu0  ;;  %3445 = vmatprep.mubr.f32.mxu1 %v6332_v61  ;;  %4531 = vmatpush3.msra.mxu1 %v6677_v12  ;;  %v6709_v61 = vld [vmem:[%s7304_s4 + $0x440] sm:$0xff] }
 0x36b   : > { %v2374_v50 = vadd.f32 %v6602_v56, %v2335_v7  ;;  %v2334_v31 = vmul.f32 %v6596_v35, %v2288_v30  ;;  %4516 = vmatprep.subr.mxu1 %v6686_v25  ;;  %v6721_v7 = vld [vmem:[%s7304_s4 + $0x438] sm:$0xff] }
 0x36c   : > { %v6701_v28 = vpop.f32.mrf.mxu0  ;;  %4532 = vmatpush3.msra.mxu1 %v6686_v25 }
 0x36d   : > { %v6711_v6 = vmax.f32 %v2374_v50, 0.0  ;;  %v2373_v60 = vadd.f32 %v6602_v56, %v2334_v31  ;;  %3446 = vmatmul.mubr.f32.gmra.mxu1 %v6703_v23  ;;  %4517 = vmatprep.subr.mxu1 %v6696_v20  ;;  %v6729_v50 = vld [vmem:[#allocation3 + $0x49] sm:$0xff]  ;;  %v6745_v31 = vld [vmem:[%s7304_s4 + $0x428] sm:$0xff] }
 0x36e   : > { %v3209_v35 = vpop.f32.mrf.mxu0  ;;  %3450 = vmatprep.mubr.f32.mxu1 %v6351_v32  ;;  %4533 = vmatpush3.msra.mxu1 %v6696_v20  ;;  %v6735_v32 = vld [vmem:[%s7304_s4 + $0x430] sm:$0xff] }
 0x36f   : > { %2482 = vst [vmem:[#allocation3 + $0x189] sm:$0xff] %v6711_v6  ;;  %v6724_v30 = vmax.f32 %v2373_v60, 0.0  ;;  %4518 = vmatprep.subr.mxu1 %v6709_v61 }
 0x370   : > { %v6727_v56 = vpop.f32.mrf.mxu0  ;;  %4534 = vmatpush3.msra.mxu1 %v6709_v61 }
 0x371   : > { %2481 = vst [vmem:[#allocation3 + $0x181] sm:$0xff] %v6724_v30  ;;  %3451 = vmatmul.mubr.f32.gmra.mxu1 %v6729_v50  ;;  %4519 = vmatprep.subr.mxu1 %v6721_v7 }
 0x372   : > { %v3214_v60 = vpop.f32.mrf.mxu0  ;;  %3455 = vmatprep.mubr.f32.mxu1 %v6366_v19  ;;  %4535 = vmatpush3.msra.mxu1 %v6721_v7 }
 0x373   : > { %4520 = vmatprep.subr.mxu1 %v6735_v32  ;;  %v6756_v60 = vld [vmem:[%s7304_s4 + $0x420] sm:$0xff] }
 0x374   : > { %v6748_v35 = vpop.f32.mrf.mxu0  ;;  %4536 = vmatpush3.msra.mxu1 %v6735_v32 }
 0x375   : > { %3456 = vmatmul.mubr.f32.gmra.mxu1 %v6750_v29  ;;  %4521 = vmatprep.subr.mxu1 %v6745_v31 }
 0x376   : > { %v3219_v19 = vpop.f32.mrf.mxu0  ;;  %3460 = vmatprep.mubr.f32.mxu1 %v6382_v27  ;;  %4537 = vmatpush3.msra.mxu1 %v6745_v31  ;;  %v6776_v27 = vld [vmem:[#allocation3 + $0x16a] sm:$0xff] }
 0x377   : > { %4522 = vmatprep.subr.mxu1 %v6756_v60 }
 0x378   : > { %v6763_v44 = vpop.f32.mrf.mxu0  ;;  %v6765_v46 = vld [vmem:[#allocation3 + $0x180] sm:$0xff]  ;;  %4538 = vmatpush3.msra.mxu1 %v6756_v60  ;;  %v6780_v18 = vld [vmem:[#allocation3 + $0x188] sm:$0xff] }
 0x379   : > { %7324 = vst [vmem:[#allocation20_spill] sm:$0xff] %v6763_v44  ;;  %3355 = vmatprep.mubr.f32.mxu0 %v6765_v46  ;;  %3461 = vmatmul.mubr.f32.gmra.mxu1 %v6767_v10  ;;  %v6814_v44 = vld [vmem:[#allocation3 + $0x79] sm:$0xff] }
 0x37a   : > { %v3224_v19 = vpop.f32.mrf.mxu0  ;;  %3356 = vmatmul.mubr.f32.gmra.mxu0 %v6776_v27  ;;  %3465 = vmatprep.mubr.f32.mxu1 %v6401_v26  ;;  %v6804_v26 = vld [vmem:[%s7304_s4 + $0x408] sm:$0xff] }
 0x37b   : > { %3360 = vmatprep.mubr.f32.mxu0 %v6780_v18  ;;  %4523 = vmatprep.subr.mxu1 %v6773_v24  ;;  %v6792_v40 = vpop.f32.mrf.mxu1  ;;  %v6794_v19 = vld [vmem:[#allocation3 + $0x69] sm:$0xff] }
 0x37c   : > { %v6790_v55 = vpop.f32.mrf.mxu0  ;;  %4539 = vmatpush3.msra.mxu1 %v6773_v24 }
 0x37d   : > { %7325 = vst [vmem:[#allocation21_spill] sm:$0xff] %v6790_v55  ;;  %3466 = vmatmul.mubr.f32.gmra.mxu1 %v6794_v19  ;;  %4524 = vmatprep.subr.mxu1 %v6786_v0  ;;  %v3084_v41 = vpop.f32.mrf.mxu1 }
 0x37e   : > { %v3229_v59 = vpop.f32.mrf.mxu0  ;;  %3361 = vmatmul.mubr.f32.gmra.mxu0 %v6797_v58  ;;  %3470 = vmatprep.mubr.f32.mxu1 %v6415_v13 }
 0x37f   : > { %3655 = vmatprep.mubr.f32.mxu0 %v6680_v54  ;;  %4540 = vmatpush3.msra.mxu1 %v6786_v0  ;;  %v6812_v33 = vpop.f32.mrf.mxu1  ;;  %v6824_v54 = vld [vmem:[#allocation3 + $0x81] sm:$0xff] }
 0x380   : > { %v6810_v55 = vpop.f32.mrf.mxu0  ;;  %4525 = vmatprep.subr.mxu1 %v6804_v26 }
 0x381   : > { %3471 = vmatmul.mubr.f32.gmra.mxu1 %v6814_v44  ;;  %v3089_v41 = vpop.f32.mrf.mxu1 }
 0x382   : > { %v3234_v59 = vpop.f32.mrf.mxu0  ;;  %3656 = vmatmul.mubr.f32.vlgmr.msra.gmra.mxu0 %v6277_v36  ;;  %3475 = vmatprep.mubr.f32.mxu1 %v6430_v57  ;;  %v6833_v36 = vld [vmem:[%s7304_s4 + $0x400] sm:$0xff] }
 0x383   : > { %4432 = vmatpush3.msra.mxu0 %v6536_v49  ;;  %3660 = vmatprep.mubr.f32.mxu0 %v6703_v23  ;;  %v2677_v59 = vld [vmem:[#allocation3 + $0x38] sm:$0xff] }
 0x384   : > { %v6822_v13 = vpop.f32.mrf.mxu0  ;;  %4433 = vmatprep.subr.mxu0 %v6655_v38  ;;  %4541 = vmatpush3.msra.mxu1 %v6804_v26  ;;  %v6840_v23 = vld [vmem:[#allocation3 + $0x91] sm:$0xff] }
 0x385   : > { %3476 = vmatmul.mubr.f32.gmra.mxu1 %v6824_v54  ;;  %4434 = vmatpush3.msra.mxu0 %v6655_v38  ;;  %v2678_v38 = vld [vmem:[#allocation3 + $0x48] sm:$0xff] }
 0x386   : > { %v3239_v57 = vpop.f32.mrf.mxu0  ;;  %3661 = vmatmul.mubr.f32.gmra.mxu0 %v2677_v59  ;;  %3480 = vmatprep.mubr.f32.mxu1 %v6443_v43 }
 0x387   : > { %3665 = vmatprep.mubr.f32.mxu0 %v6729_v50  ;;  %4435 = vmatprep.subr.mxu0 %v6662_v63  ;;  %v6851_v50 = vld [vmem:[#allocation3 + $0x99] sm:$0xff] }
 0x388   : > { %v6838_v49 = vpop.f32.mrf.mxu0  ;;  %4436 = vmatpush3.msra.mxu0 %v6662_v63  ;;  %4526 = vmatprep.subr.mxu1 %v6833_v36  ;;  %v2679_v63 = vld [vmem:[#allocation3 + $0x50] sm:$0xff] }
 0x389   : > { %3481 = vmatmul.mubr.f32.gmra.mxu1 %v6840_v23  ;;  %4437 = vmatprep.subr.mxu0 %v6669_v48 }
 0x38a   : > { %v3244_v41 = vpop.f32.mrf.mxu0  ;;  %3666 = vmatmul.mubr.f32.gmra.mxu0 %v2678_v38  ;;  %3485 = vmatprep.mubr.f32.mxu1 %v6459_v8  ;;  %v2626_v38 = vld [vmem:[#allocation3 + $0xc9] sm:$0xff] }
 0x38b   : > { %3670 = vmatprep.mubr.f32.mxu0 %v6750_v29  ;;  %4438 = vmatpush3.msra.mxu0 %v6669_v48  ;;  %v6862_v29 = vld [vmem:[#allocation3 + $0xa9] sm:$0xff]  ;;  %v2680_v48 = vld [vmem:[#allocation3 + $0x60] sm:$0xff] }
 0x38c   : > { %v6849_v43 = vpop.f32.mrf.mxu0  ;;  %4439 = vmatprep.subr.mxu0 %v6677_v12  ;;  %4542 = vmatpush3.msra.mxu1 %v6833_v36 }
 0x38d   : > { %3486 = vmatmul.mubr.f32.gmra.mxu1 %v6851_v50  ;;  %4440 = vmatpush3.msra.mxu0 %v6677_v12 }
 0x38e   : > { %v3249_v59 = vpop.f32.mrf.mxu0  ;;  %3671 = vmatmul.mubr.f32.gmra.mxu0 %v2679_v63  ;;  %3490 = vmatprep.mubr.f32.mxu1 %v6483_v1 }
 0x38f   : > { %3675 = vmatprep.mubr.f32.mxu0 %v6767_v10  ;;  %4441 = vmatprep.subr.mxu0 %v6686_v25  ;;  %v6872_v10 = vld [vmem:[#allocation3 + $0xb1] sm:$0xff] }
 0x390   : > { %v6860_v8 = vpop.f32.mrf.mxu0  ;;  %4442 = vmatpush3.msra.mxu0 %v6686_v25  ;;  %v2681_v25 = vld [vmem:[#allocation3 + $0x68] sm:$0xff]  ;;  %v2684_v59 = vld [vmem:[#allocation3 + $0x90] sm:$0xff] }
 0x391   : > { %3491 = vmatmul.mubr.f32.gmra.mxu1 %v6862_v29  ;;  %4443 = vmatprep.subr.mxu0 %v6696_v20 }
 0x392   : > { %v3254_v12 = vpop.f32.mrf.mxu0  ;;  %3676 = vmatmul.mubr.f32.gmra.mxu0 %v2680_v48  ;;  %3495 = vmatprep.mubr.f32.mxu1 %v6500_v5 }
 0x393   : > { %3680 = vmatprep.mubr.f32.mxu0 %v6794_v19  ;;  %4444 = vmatpush3.msra.mxu0 %v6696_v20  ;;  %v6882_v20 = vld [vmem:[#allocation3 + $0xc1] sm:$0xff]  ;;  %v2682_v19 = vld [vmem:[#allocation3 + $0x78] sm:$0xff] }
 0x394   : > { %v6870_v1 = vpop.f32.mrf.mxu0  ;;  %4445 = vmatprep.subr.mxu0 %v6709_v61 }
 0x395   : > { %3496 = vmatmul.mubr.f32.gmra.mxu1 %v6872_v10  ;;  %4446 = vmatpush3.msra.mxu0 %v6709_v61 }
 0x396   : > { %v3259_v57 = vpop.f32.mrf.mxu0  ;;  %3681 = vmatmul.mubr.f32.gmra.mxu0 %v2681_v25  ;;  %3500 = vmatprep.mubr.f32.mxu1 %v6516_v39  ;;  %v6918_v25 = vld [vmem:[#allocation3 + $0xfa] sm:$0xff] }
 0x397   : > { %3685 = vmatprep.mubr.f32.mxu0 %v6814_v44  ;;  %4447 = vmatprep.subr.mxu0 %v6721_v7  ;;  %v2687_v57 = vld [vmem:[#allocation3 + $0xb0] sm:$0xff] }
 0x398   : > { %v6880_v5 = vpop.f32.mrf.mxu0  ;;  %4448 = vmatpush3.msra.mxu0 %v6721_v7  ;;  %v2683_v7 = vld [vmem:[#allocation3 + $0x80] sm:$0xff] }
 0x399   : > { %3501 = vmatmul.mubr.f32.gmra.mxu1 %v6882_v20  ;;  %4449 = vmatprep.subr.mxu0 %v6735_v32 }
 0x39a   : > { %v3264_v61 = vpop.f32.mrf.mxu0  ;;  %3686 = vmatmul.mubr.f32.gmra.mxu0 %v2682_v19  ;;  %3505 = vmatprep.mubr.f32.mxu1 %v6525_v47 }
 0x39b   : > { %3690 = vmatprep.mubr.f32.mxu0 %v6824_v54  ;;  %4450 = vmatpush3.msra.mxu0 %v6735_v32  ;;  %v6892_v44 = vpop.f32.mrf.mxu1  ;;  %v2627_v54 = vld [vmem:[#allocation3 + $0xd9] sm:$0xff]  ;;  %v2631_v61 = vld [vmem:[#allocation3 + $0x109] sm:$0xff] }
 0x39c   : > { %v6890_v39 = vpop.f32.mrf.mxu0  ;;  %4451 = vmatprep.subr.mxu0 %v6745_v31 }
 0x39d   : > { %3506 = vmatmul.mubr.f32.gmra.mxu1 %v2626_v38  ;;  %4452 = vmatpush3.msra.mxu0 %v6745_v31  ;;  %v3094_v63 = vpop.f32.mrf.mxu1 }
 0x39e   : > { %v3269_v41 = vpop.f32.mrf.mxu0  ;;  %3691 = vmatmul.mubr.f32.gmra.mxu0 %v2683_v7  ;;  %3510 = vmatprep.mubr.f32.mxu1 %v6542_v37  ;;  %v2688_v7 = vld [vmem:[#allocation3 + $0xc0] sm:$0xff]  ;;  %v2632_v63 = vld [vmem:[#allocation3 + $0x111] sm:$0xff] }
 0x39f   : > { %3695 = vmatprep.mubr.f32.mxu0 %v6840_v23  ;;  %4453 = vmatprep.subr.mxu0 %v6756_v60  ;;  %v6901_v32 = vpop.f32.mrf.mxu1  ;;  %v2628_v23 = vld [vmem:[#allocation3 + $0xe1] sm:$0xff]  ;;  %v6930_v41 = vld [vmem:[#allocation3 + $0x112] sm:$0xff] }
 0x3a0   : > { %v6899_v47 = vpop.f32.mrf.mxu0  ;;  %4454 = vmatpush3.msra.mxu0 %v6756_v60  ;;  %v2685_v60 = vld [vmem:[#allocation3 + $0x98] sm:$0xff] }
 0x3a1   : > { %3511 = vmatmul.mubr.f32.gmra.mxu1 %v2627_v54  ;;  %4455 = vmatprep.subr.mxu0 %v6773_v24  ;;  %v3099_v48 = vpop.f32.mrf.mxu1 }
 0x3a2   : > { %v3274_v31 = vpop.f32.mrf.mxu0  ;;  %3696 = vmatmul.mubr.f32.gmra.mxu0 %v2684_v59  ;;  %3515 = vmatprep.mubr.f32.mxu1 %v6554_v3  ;;  %v2689_v59 = vld [vmem:[#allocation3 + $0xc8] sm:$0xff]  ;;  %v2690_v48 = vld [vmem:[#allocation3 + $0xd8] sm:$0xff] }
 0x3a3   : > { %3700 = vmatprep.mubr.f32.mxu0 %v6851_v50  ;;  %4456 = vmatpush3.msra.mxu0 %v6773_v24  ;;  %v2629_v24 = vld [vmem:[#allocation3 + $0xf1] sm:$0xff]  ;;  %v2686_v50 = vld [vmem:[#allocation3 + $0xa8] sm:$0xff] }
 0x3a4   : > { %v6908_v37 = vpop.f32.mrf.mxu0  ;;  %4457 = vmatprep.subr.mxu0 %v6786_v0  ;;  %v2633_v31 = vld [vmem:[#allocation3 + $0x121] sm:$0xff] }
 0x3a5   : > { %3516 = vmatmul.mubr.f32.gmra.mxu1 %v2628_v23  ;;  %4458 = vmatpush3.msra.mxu0 %v6786_v0 }
 0x3a6   : > { %v3279_v12 = vpop.f32.mrf.mxu0  ;;  %3701 = vmatmul.mubr.f32.gmra.mxu0 %v2685_v60  ;;  %3520 = vmatprep.mubr.f32.mxu1 %v6563_v17 }
 0x3a7   : > { %3705 = vmatprep.mubr.f32.mxu0 %v6862_v29  ;;  %4459 = vmatprep.subr.mxu0 %v6804_v26  ;;  %v2630_v29 = vld [vmem:[#allocation3 + $0xf9] sm:$0xff] }
 0x3a8   : > { %v6915_v3 = vpop.f32.mrf.mxu0  ;;  %4460 = vmatpush3.msra.mxu0 %v6804_v26 }
 0x3a9   : > { %3521 = vmatmul.mubr.f32.gmra.mxu1 %v2629_v24  ;;  %4461 = vmatprep.subr.mxu0 %v6833_v36 }
 0x3aa   : > { %v3284_v0 = vpop.f32.mrf.mxu0  ;;  %3706 = vmatmul.mubr.f32.gmra.mxu0 %v2686_v50  ;;  %3525 = vmatprep.mubr.f32.mxu1 %v6918_v25  ;;  %v2634_v50 = vld [vmem:[#allocation3 + $0x129] sm:$0xff] }
 0x3ab   : > { %3710 = vmatprep.mubr.f32.mxu0 %v6872_v10  ;;  %4462 = vmatpush3.msra.mxu0 %v6833_v36 }
 0x3ac   : > { %v6924_v17 = vpop.f32.mrf.mxu0 }
 0x3ad   : > { %3526 = vmatmul.mubr.f32.gmra.mxu1 %v2630_v29 }
 0x3ae   : > { %v3289_v26 = vpop.f32.mrf.mxu0  ;;  %3711 = vmatmul.mubr.f32.gmra.mxu0 %v2687_v57  ;;  %3530 = vmatprep.mubr.f32.mxu1 %v6576_v53 }
 0x3af   : > { %3715 = vmatprep.mubr.f32.mxu0 %v6882_v20 }
 0x3b0   : > { %v6928_v19 = vpop.f32.mrf.mxu0 }
 0x3b1   : > { %3531 = vmatmul.mubr.f32.gmra.mxu1 %v2631_v61 }
 0x3b2   : > { %v3294_v10 = vpop.f32.mrf.mxu0  ;;  %3716 = vmatmul.mubr.f32.gmra.mxu0 %v2688_v7  ;;  %3535 = vmatprep.mubr.f32.mxu1 %v6930_v41 }
 0x3b3   : > { %3720 = vmatprep.mubr.f32.mxu0 %v2626_v38  ;;  %v2692_v10 = vld [vmem:[#allocation3 + $0xf0] sm:$0xff] }
 0x3b4   : > { %v6933_v36 = vpop.f32.mrf.mxu0 }
 0x3b5   : > { %3536 = vmatmul.mubr.f32.gmra.mxu1 %v2632_v63 }
 0x3b6   : > { %v3299_v53 = vpop.f32.mrf.mxu0  ;;  %3721 = vmatmul.mubr.f32.gmra.mxu0 %v2689_v59  ;;  %3540 = vmatprep.mubr.f32.mxu1 %v6585_v45  ;;  %v2691_v45 = vld [vmem:[#allocation3 + $0xe0] sm:$0xff] }
 0x3b7   : > { %3725 = vmatprep.mubr.f32.mxu0 %v2627_v54 }
 0x3b8   : > { %v6936_v20 = vpop.f32.mrf.mxu0 }
 0x3b9   : > { %3541 = vmatmul.mubr.f32.gmra.mxu1 %v2633_v31 }
 0x3ba   : > { %v3304_v60 = vpop.f32.mrf.mxu0  ;;  %3726 = vmatmul.mubr.f32.gmra.mxu0 %v2690_v48  ;;  %3545 = vmatprep.mubr.f32.mxu1 %v6590_v21  ;;  %v2635_v21 = vld [vmem:[#allocation3 + $0x139] sm:$0xff]  ;;  %v2636_v48 = vld [vmem:[#allocation3 + $0x141] sm:$0xff] }
 0x3bb   : > { %3730 = vmatprep.mubr.f32.mxu0 %v2628_v23  ;;  %v6939_v12 = vpop.f32.mrf.mxu1 }
 0x3bc   : > { %v3307_v38 = vpop.f32.mrf.mxu0 }
 0x3bd   : > { %v6942_v0 = vadd.f32 %v3307_v38, %v6792_v40  ;;  %3546 = vmatmul.mubr.f32.gmra.mxu1 %v2634_v50  ;;  %v3104_v57 = vpop.f32.mrf.mxu1 }
 0x3be   : > { %v3309_v54 = vpop.f32.mrf.mxu0  ;;  %3731 = vmatmul.mubr.f32.gmra.mxu0 %v2691_v45  ;;  %3550 = vmatprep.mubr.f32.mxu1 %v6613_v42  ;;  %v2695_v45 = vld [vmem:[#allocation3 + $0x110] sm:$0xff] }
 0x3bf   : > { %3735 = vmatprep.mubr.f32.mxu0 %v2629_v24  ;;  %v6945_v7 = vpop.f32.mrf.mxu1  ;;  %v2693_v24 = vld [vmem:[#allocation3 + $0xf8] sm:$0xff] }
 0x3c0   : > { %v3312_v26 = vpop.f32.mrf.mxu0 }
 0x3c1   : > { %v6948_v23 = vadd.f32 %v3312_v26, %v6812_v33  ;;  %3551 = vmatmul.mubr.f32.gmra.mxu1 %v2635_v21  ;;  %v3109_v40 = vpop.f32.mrf.mxu1  ;;  %v2732_v26 = vld [vmem:[#allocation3 + $0x151] sm:$0xff] }
 0x3c2   : > { %v3314_v59 = vpop.f32.mrf.mxu0  ;;  %3736 = vmatmul.mubr.f32.gmra.mxu0 %v2692_v10  ;;  %3555 = vmatprep.mubr.f32.mxu1 %v6618_v62  ;;  %v2694_v62 = vld [vmem:[#allocation3 + $0x108] sm:$0xff] }
 0x3c3   : > { %3740 = vmatprep.mubr.f32.mxu0 %v2630_v29  ;;  %v2753_v59 = vld [vmem:[#allocation3 + $0xca] sm:$0xff] }
 0x3c4   : > { %v3317_v53 = vpop.f32.mrf.mxu0 }
 0x3c5   : > { %v6952_v42 = vadd.f32 %v3317_v53, %v6892_v44  ;;  %3556 = vmatmul.mubr.f32.gmra.mxu1 %v2636_v48  ;;  %v2638_v44 = vld [vmem:[#allocation3 + $0x159] sm:$0xff]  ;;  %v2700_v53 = vld [vmem:[#allocation3 + $0x150] sm:$0xff] }
 0x3c6   : > { %v3319_v60 = vpop.f32.mrf.mxu0  ;;  %3741 = vmatmul.mubr.f32.gmra.mxu0 %v2693_v24  ;;  %3560 = vmatprep.mubr.f32.mxu1 %v6636_v22  ;;  %v2696_v22 = vld [vmem:[#allocation3 + $0x120] sm:$0xff] }
 0x3c7   : > { %3745 = vmatprep.mubr.f32.mxu0 %v2631_v61  ;;  %v2698_v61 = vld [vmem:[#allocation3 + $0x138] sm:$0xff] }
 0x3c8   : > { %v3322_v33 = vpop.f32.mrf.mxu0 }
 0x3c9   : > { %v6956_v38 = vadd.f32 %v3322_v33, %v6901_v32  ;;  %3561 = vmatmul.mubr.f32.gmra.mxu1 %v6607_v15  ;;  %v2697_v15 = vld [vmem:[#allocation3 + $0x128] sm:$0xff] }
 0x3ca   : > { %v3324_v29 = vpop.f32.mrf.mxu0  ;;  %3746 = vmatmul.mubr.f32.gmra.mxu0 %v2694_v62  ;;  %3565 = vmatprep.mubr.f32.mxu1 %v6646_v16  ;;  %v6964_v32 = vld [vmem:[#allocation3 + $0x182] sm:$0xff]  ;;  %v2701_v62 = vld [vmem:[#allocation3 + $0x158] sm:$0xff] }
 0x3cb   : > { %3750 = vmatprep.mubr.f32.mxu0 %v2632_v63  ;;  %v6968_v63 = vld [vmem:[#allocation3 + $0x18a] sm:$0xff]  ;;  %v2755_v33 = vld [vmem:[#allocation3 + $0xe2] sm:$0xff]  ;;  %v2756_v29 = vld [vmem:[#allocation3 + $0xf2] sm:$0xff] }
 0x3cd   : > { %3566 = vmatmul.mubr.f32.gmra.mxu1 %v2638_v44 }
 0x3ce   : > { %3751 = vmatmul.mubr.f32.gmra.mxu0 %v2695_v45  ;;  %3570 = vmatprep.mubr.f32.mxu1 %v6776_v27  ;;  %v2734_v45 = vld [vmem:[#allocation3 + $0x169] sm:$0xff] }
 0x3cf   : > { %3755 = vmatprep.mubr.f32.mxu0 %v2633_v31 }
 0x3d1   : > { %3571 = vmatmul.mubr.f32.gmra.mxu1 %v6628_v14 }
 0x3d2   : > { %3756 = vmatmul.mubr.f32.gmra.mxu0 %v2696_v22  ;;  %3575 = vmatprep.mubr.f32.mxu1 %v6797_v58  ;;  %v2758_v22 = vld [vmem:[#allocation3 + $0x10a] sm:$0xff] }
 0x3d3   : > { %3760 = vmatprep.mubr.f32.mxu0 %v2634_v50  ;;  %v2752_v50 = vld [vmem:[#allocation3 + $0xc2] sm:$0xff] }
 0x3d5   : > { %3576 = vmatmul.mubr.f32.gmra.mxu1 %v6624_v51  ;;  %v2699_v51 = vld [vmem:[#allocation3 + $0x140] sm:$0xff] }
 0x3d6   : > { %3761 = vmatmul.mubr.f32.gmra.mxu0 %v2697_v15  ;;  %3580 = vmatprep.mubr.f32.mxu1 %v6964_v32  ;;  %v2760_v15 = vld [vmem:[#allocation3 + $0x122] sm:$0xff] }
 0x3d7   : > { %3765 = vmatprep.mubr.f32.mxu0 %v2635_v21 }
 0x3d9   : > { %3581 = vmatmul.mubr.f32.gmra.mxu1 %v6724_v30 }
 0x3da   : > { %3766 = vmatmul.mubr.f32.gmra.mxu0 %v2698_v61  ;;  %3585 = vmatprep.mubr.f32.mxu1 %v6968_v63  ;;  %v2762_v61 = vld [vmem:[#allocation3 + $0x13a] sm:$0xff] }
 0x3db   : > { %3770 = vmatprep.mubr.f32.mxu0 %v2636_v48  ;;  %v6971_v14 = vpop.f32.mrf.mxu1  ;;  %v2754_v48 = vld [vmem:[#allocation3 + $0xda] sm:$0xff] }
 0x3dc   : > { %v3327_v31 = vpop.f32.mrf.mxu0 }
 0x3dd   : > { %3586 = vmatmul.mubr.f32.gmra.mxu1 %v6711_v6  ;;  %v6975_v54 = vadd.f32 %v3327_v31, %v6939_v12  ;;  %v3114_v57 = vpop.f32.mrf.mxu1  ;;  %v2764_v31 = vld [vmem:[#allocation3 + $0x152] sm:$0xff] }
 0x3de   : > { %3771 = vmatmul.mubr.f32.gmra.mxu0 %v2699_v51  ;;  %4481 = vmatprep.mubr.f32.mxu1 %v2752_v50  ;;  %v3329_v21 = vpop.f32.mrf.mxu0  ;;  %v4569_v51 = vld [vmem:[#allocation3 + $0x8] sm:$0xff]  ;;  %v2740_v50 = vld [vmem:[#allocation3 + $0x32] sm:$0xff] }
 0x3df   : > { %3775 = vmatprep.mubr.f32.mxu0 %v2732_v26  ;;  %v6977_v10 = vpop.f32.mrf.mxu1 }
 0x3e0   : > { %v3332_v40 = vpop.f32.mrf.mxu0 }
 0x3e1   : > { %4482 = vmatmul.mubr.f32.vlgmr.msra.gmra.mxu1 %v2753_v59  ;;  %v6980_v24 = vadd.f32 %v3332_v40, %v6945_v7  ;;  %v3119_v60 = vpop.f32.mrf.mxu1  ;;  %v2735_v7 = vld [vmem:[#allocation3 + $0x171] sm:$0xff]  ;;  %v2771_v40 = vld [vmem:[#allocation3 + $0x1a2] sm:$0xff] }
 0x3e2   : > { %3776 = vmatmul.mubr.f32.gmra.mxu0 %v2700_v53  ;;  %4484 = vmatprep.mubr.f32.mxu1 %v2754_v48  ;;  %v3334_v12 = vpop.f32.mrf.mxu0  ;;  %v2743_v48 = vld [vmem:[#allocation3 + $0x52] sm:$0xff]  ;;  %v2745_v60 = vld [vmem:[#allocation3 + $0x6a] sm:$0xff] }
 0x3e3   : > { %3780 = vmatprep.mubr.f32.mxu0 %v2638_v44  ;;  %v2761_v44 = vld [vmem:[#allocation3 + $0x12a] sm:$0xff]  ;;  %v2746_v12 = vld [vmem:[#allocation3 + $0x7a] sm:$0xff] }
 0x3e5   : > { %4485 = vmatmul.mubr.f32.gmra.mxu1 %v2755_v33  ;;  %v2749_v33 = vld [vmem:[#allocation3 + $0x9a] sm:$0xff] }
 0x3e6   : > { %3781 = vmatmul.mubr.f32.gmra.mxu0 %v2701_v62  ;;  %4487 = vmatprep.mubr.f32.mxu1 %v2756_v29  ;;  %v2750_v62 = vld [vmem:[#allocation3 + $0xaa] sm:$0xff]  ;;  %v2751_v29 = vld [vmem:[#allocation3 + $0xb2] sm:$0xff] }
 0x3e7   : > { %3785 = vmatprep.mubr.f32.mxu0 %v2734_v45 }
 0x3e9   : > { %4488 = vmatmul.mubr.f32.gmra.mxu1 %v6918_v25  ;;  %v2738_v25 = vld [vmem:[#allocation3 + $0x199] sm:$0xff] }
 0x3ea   : > { %3786 = vmatmul.mubr.f32.gmra.mxu0 %v6632_v2  ;;  %4490 = vmatprep.mubr.f32.mxu1 %v2758_v22  ;;  %v2763_v2 = vld [vmem:[#allocation3 + $0x142] sm:$0xff] }
 0x3eb   : > { %3790 = vmatprep.mubr.f32.mxu0 %v2735_v7 }
 0x3ed   : > { %4491 = vmatmul.mubr.f32.gmra.mxu1 %v6930_v41  ;;  %v2739_v41 = vld [vmem:[#allocation3 + $0x1a1] sm:$0xff] }
 0x3ee   : > { %3791 = vmatmul.mubr.f32.gmra.mxu0 %v6640_v9  ;;  %4493 = vmatprep.mubr.f32.mxu1 %v2760_v15  ;;  %v2706_v9 = vld [vmem:[#allocation3 + $0x198] sm:$0xff] }
 0x3ef   : > { %3795 = vmatprep.mubr.f32.mxu0 %v6724_v30 }
 0x3f1   : > { %4494 = vmatmul.mubr.f32.gmra.mxu1 %v2761_v44 }
 0x3f2   : > { %3796 = vmatmul.mubr.f32.gmra.mxu0 %v6765_v46  ;;  %4496 = vmatprep.mubr.f32.mxu1 %v2762_v61 }
 0x3f3   : > { %3800 = vmatprep.mubr.f32.mxu0 %v6711_v6 }
 0x3f5   : > { %4497 = vmatmul.mubr.f32.gmra.mxu1 %v2763_v2 }
 0x3f6   : > { %3801 = vmatmul.mubr.f32.gmra.mxu0 %v6780_v18  ;;  %4499 = vmatprep.mubr.f32.mxu1 %v2764_v31 }
 0x3f7   : > { %3805 = vmatprep.mubr.f32.mxu0 %v2738_v25 }
 0x3f9   : > { %4500 = vmatmul.mubr.f32.gmra.mxu1 %v6646_v16  ;;  %v2770_v16 = vld [vmem:[#allocation3 + $0x19a] sm:$0xff] }
 0x3fa   : > { %3806 = vmatmul.mubr.f32.gmra.mxu0 %v2706_v9  ;;  %4502 = vmatprep.mubr.f32.mxu1 %v6776_v27  ;;  %v2741_v27 = vld [vmem:[#allocation3 + $0x3a] sm:$0xff]  ;;  %v3208_v9 = vadd.f32 %v6701_v28, %v5712_v11 }
 0x3fb   : > { %3810 = vmatprep.mubr.f32.mxu0 %v2739_v41  ;;  %v3122_v46 = vpop.f32.mrf.mxu1 }
 0x3fc   : > { %v3337_v30 = vpop.f32.mrf.mxu0 }
 0x3fd   : > { %4503 = vmatmul.mubr.f32.gmra.mxu1 %v6797_v58  ;;  %v6994_v6 = vadd.f32 %v3337_v30, %v6971_v14  ;;  %v3124_v18 = vpop.f32.mrf.mxu1  ;;  %v2742_v14 = vld [vmem:[#allocation3 + $0x4a] sm:$0xff] }
 0x3fe   : > { %3811 = vmatmul.mubr.f32.gmra.mxu0 %v4569_v51  ;;  %4505 = vmatprep.mubr.f32.mxu1 %v6964_v32  ;;  %v3339_v57 = vpop.f32.mrf.mxu0  ;;  %v2744_v32 = vld [vmem:[#allocation3 + $0x62] sm:$0xff] }
 0x3ff   : > { %4463 = vmatprep.mubr.f32.mxu0 %v2740_v50  ;;  %v3127_v26 = vpop.f32.mrf.mxu1  ;;  %v3213_v50 = vadd.f32 %v6727_v56, %v5718_v4 }
 0x400   : > { %v3342_v21 = vpop.f32.mrf.mxu0 }
 0x401   : > { %4506 = vmatmul.mubr.f32.gmra.mxu1 %v6968_v63  ;;  %v6999_v59 = vadd.f32 %v3342_v21, %v6977_v10  ;;  %v3129_v58 = vpop.f32.mrf.mxu1  ;;  %v2747_v63 = vld [vmem:[#allocation3 + $0x82] sm:$0xff]  ;;  %v2748_v10 = vld [vmem:[#allocation3 + $0x92] sm:$0xff]  ;;  %v3218_v21 = vadd.f32 %v6748_v35, %v6107_v52 }
 0x402   : > { %4464 = vmatmul.mubr.f32.vlgmr.msra.gmra.mxu0 %v2741_v27  ;;  %4508 = vmatprep.mubr.f32.mxu1 %v2770_v16  ;;  %v3344_v53 = vpop.f32.mrf.mxu0 }
 0x403   : > { %4466 = vmatprep.mubr.f32.mxu0 %v2742_v14  ;;  %v7326_v14 = vld [vmem:[#allocation20_spill] sm:$0xff] }
 0x405   : > { %4509 = vmatmul.mubr.f32.gmra.mxu1 %v2771_v40  ;;  %v3223_v40 = vadd.f32 %v7326_v14, %v6115_v34 }
 0x406   : > { %4467 = vmatmul.mubr.f32.gmra.mxu0 %v2743_v48  ;;  %v7327_v48 = vld [vmem:[#allocation4_spill] sm:$0xff] }
 0x407   : > { %4469 = vmatprep.mubr.f32.mxu0 %v2744_v32  ;;  %v7328_v32 = vld [vmem:[#allocation21_spill] sm:$0xff] }
 0x40a   : > { %4470 = vmatmul.mubr.f32.gmra.mxu0 %v2745_v60  ;;  %v3228_v60 = vadd.f32 %v7328_v32, %v7327_v48 }
 0x40b   : > { %4472 = vmatprep.mubr.f32.mxu0 %v2746_v12 }
 0x40e   : > { %4473 = vmatmul.mubr.f32.gmra.mxu0 %v2747_v63  ;;  %v7329_v63 = vld [vmem:[#allocation5_spill] sm:$0xff] }
 0x40f   : > { %4475 = vmatprep.mubr.f32.mxu0 %v2748_v10  ;;  %v3233_v10 = vadd.f32 %v6810_v55, %v7329_v63 }
 0x412   : > { %4476 = vmatmul.mubr.f32.gmra.mxu0 %v2749_v33 }
 0x413   : > { %4478 = vmatprep.mubr.f32.mxu0 %v2750_v62  ;;  %v7330_v62 = vld [vmem:[#allocation6_spill] sm:$0xff] }
 0x416   : > { %4479 = vmatmul.mubr.f32.gmra.mxu0 %v2751_v29  ;;  %v3238_v29 = vadd.f32 %v6822_v13, %v7330_v62 }
 0x419   : > { %v3132_v45 = vpop.f32.mrf.mxu1 }
 0x41a   : > { %v3347_v22 = vpop.f32.mrf.mxu0 }
 0x41b   : > { %v7001_v7 = vadd.f32 %v3347_v22, %v3122_v46  ;;  %v3134_v15 = vpop.f32.mrf.mxu1 }
 0x41c   : > { %v3349_v44 = vpop.f32.mrf.mxu0 }
 0x41d   : > { %v3137_v61 = vpop.f32.mrf.mxu1 }
 0x41e   : > { %v3352_v2 = vpop.f32.mrf.mxu0 }
 0x41f   : > { %v7003_v25 = vadd.f32 %v3352_v2, %v3127_v26  ;;  %v3139_v31 = vpop.f32.mrf.mxu1 }
 0x420   : > { %v3354_v41 = vpop.f32.mrf.mxu0  ;;  %v7331_v31 = vld [vmem:[#allocation7_spill] sm:$0xff] }
 0x421   : > { %v3432_v30 = vpop.f32.mrf.mxu1 }
 0x422   : > { %v3433_v51 = vadd.f32 %v3432_v30, %v3208_v9  ;;  %v3243_v9 = vadd.f32 %v6838_v49, %v7331_v31 }
 0x423   : > { %v3434_v18 = vpop.f32.mrf.mxu1 }
 0x425   : > { %v3437_v57 = vpop.f32.mrf.mxu1 }
 0x426   : > { %v3438_v46 = vadd.f32 %v3437_v57, %v3213_v50 }
 0x427   : > { %v3439_v16 = vpop.f32.mrf.mxu1 }
 0x428   : > { %v7332_v16 = vld [vmem:[#allocation8_spill] sm:$0xff] }
 0x429   : > { %v3442_v27 = vpop.f32.mrf.mxu1 }
 0x42a   : > { %v3443_v26 = vadd.f32 %v3442_v27, %v3218_v21  ;;  %v3248_v21 = vadd.f32 %v6849_v43, %v7332_v16 }
 0x42b   : > { %v3444_v58 = vpop.f32.mrf.mxu1 }
 0x42d   : > { %v3447_v11 = vpop.f32.mrf.mxu1 }
 0x42e   : > { %v3448_v28 = vadd.f32 %v3447_v11, %v3223_v40  ;;  %v7333_v11 = vld [vmem:[#allocation9_spill] sm:$0xff] }
 0x42f   : > { %v3449_v53 = vpop.f32.mrf.mxu1  ;;  %v3253_v49 = vadd.f32 %v6860_v8, %v7333_v11 }
 0x431   : > { %v3452_v12 = vpop.f32.mrf.mxu1 }
 0x432   : > { %v3453_v4 = vadd.f32 %v3452_v12, %v3228_v60 }
 0x433   : > { %v3454_v56 = vpop.f32.mrf.mxu1 }
 0x434   : > { %v7334_v56 = vld [vmem:[#allocation10_spill] sm:$0xff] }
 0x435   : > { %v3457_v33 = vpop.f32.mrf.mxu1  ;;  %v3258_v43 = vadd.f32 %v6870_v1, %v7334_v56 }
 0x436   : > { %v3458_v52 = vadd.f32 %v3457_v33, %v3233_v10 }
 0x437   : > { %v3459_v35 = vpop.f32.mrf.mxu1 }
 0x439   : > { %v3462_v22 = vpop.f32.mrf.mxu1 }
 0x43a   : > { %v3357_v34 = vpop.f32.mrf.mxu0  ;;  %v3463_v15 = vadd.f32 %v3462_v22, %v3238_v29  ;;  %v7335_v29 = vld [vmem:[#allocation11_spill] sm:$0xff] }
 0x43b   : > { %v7019_v44 = vadd.f32 %v3357_v34, %v3132_v45  ;;  %v3464_v2 = vpop.f32.mrf.mxu1  ;;  %v3263_v8 = vadd.f32 %v6880_v5, %v7335_v29 }
 0x43c   : > { %v3359_v41 = vpop.f32.mrf.mxu0 }
 0x43d   : > { %v3467_v30 = vpop.f32.mrf.mxu1  ;;  %v7336_v41 = vld [vmem:[#allocation12_spill] sm:$0xff] }
 0x43e   : > { %v3362_v18 = vpop.f32.mrf.mxu0  ;;  %v3468_v50 = vadd.f32 %v3467_v30, %v3243_v9  ;;  %v3268_v1 = vadd.f32 %v6890_v39, %v7336_v41  ;;  %v7340_v39 = vld [vmem:[#allocation14_spill] sm:$0xff] }
 0x43f   : > { %v7023_v55 = vadd.f32 %v3362_v18, %v3137_v61  ;;  %v3469_v57 = vpop.f32.mrf.mxu1 }
 0x440   : > { %v3364_v13 = vpop.f32.mrf.mxu0 }
 0x441   : > { %v3472_v27 = vpop.f32.mrf.mxu1  ;;  %v7338_v13 = vld [vmem:[#allocation13_spill] sm:$0xff] }
 0x442   : > { %v3473_v58 = vadd.f32 %v3472_v27, %v3248_v21  ;;  %v3657_v14 = vpop.f32.mrf.mxu0  ;;  %v3273_v5 = vadd.f32 %v6899_v47, %v7338_v13  ;;  %v7342_v47 = vld [vmem:[#allocation15_spill] sm:$0xff] }
 0x443   : > { %v7027_v45 = vadd.f32 %v3657_v14, %v3433_v51  ;;  %v3474_v40 = vpop.f32.mrf.mxu1 }
 0x444   : > { %v3659_v53 = vpop.f32.mrf.mxu0 }
 0x445   : > { %v3477_v48 = vpop.f32.mrf.mxu1  ;;  %v3278_v53 = vadd.f32 %v6908_v37, %v7340_v39  ;;  %v7344_v37 = vld [vmem:[#allocation16_spill] sm:$0xff] }
 0x446   : > { %v3478_v32 = vadd.f32 %v3477_v48, %v3253_v49  ;;  %v3662_v60 = vpop.f32.mrf.mxu0 }
 0x447   : > { %v7031_v61 = vadd.f32 %v3662_v60, %v3438_v46  ;;  %v3479_v12 = vpop.f32.mrf.mxu1 }
 0x448   : > { %v3664_v63 = vpop.f32.mrf.mxu0 }
 0x449   : > { %v3482_v10 = vpop.f32.mrf.mxu1  ;;  %v3283_v63 = vadd.f32 %v6915_v3, %v7342_v47  ;;  %v7346_v3 = vld [vmem:[#allocation17_spill] sm:$0xff] }
 0x44a   : > { %v3483_v33 = vadd.f32 %v3482_v10, %v3258_v43  ;;  %v3667_v35 = vpop.f32.mrf.mxu0 }
 0x44b   : > { %v7035_v51 = vadd.f32 %v3667_v35, %v3443_v26  ;;  %v3484_v62 = vpop.f32.mrf.mxu1 }
 0x44c   : > { %v3669_v22 = vpop.f32.mrf.mxu0 }
 0x44d   : > { %v3487_v34 = vpop.f32.mrf.mxu1  ;;  %v3288_v22 = vadd.f32 %v6924_v17, %v7344_v37  ;;  %v7348_v17 = vld [vmem:[#allocation18_spill] sm:$0xff] }
 0x44e   : > { %v3488_v2 = vadd.f32 %v3487_v34, %v3263_v8  ;;  %v3672_v31 = vpop.f32.mrf.mxu0 }
 0x44f   : > { %v7039_v46 = vadd.f32 %v3672_v31, %v3448_v28  ;;  %v3489_v9 = vpop.f32.mrf.mxu1 }
 0x450   : > { %v3674_v30 = vpop.f32.mrf.mxu0 }
 0x451   : > { %v3492_v18 = vpop.f32.mrf.mxu1  ;;  %v3293_v30 = vadd.f32 %v6928_v19, %v7346_v3 }
 0x452   : > { %v7043_v57 = vadd.f32 %v3492_v18, %v3268_v1  ;;  %v3677_v26 = vpop.f32.mrf.mxu0 }
 0x453   : > { %v7045_v16 = vadd.f32 %v3677_v26, %v3453_v4  ;;  %v3494_v21 = vpop.f32.mrf.mxu1 }
 0x454   : > { %v3679_v27 = vpop.f32.mrf.mxu0 }
 0x455   : > { %7337 = vst [vmem:[#allocation20_spill] sm:$0xff] %v7045_v16  ;;  %v3497_v14 = vpop.f32.mrf.mxu1  ;;  %v3298_v27 = vadd.f32 %v6933_v36, %v7348_v17 }
 0x456   : > { %v7049_v40 = vadd.f32 %v3497_v14, %v3273_v5  ;;  %v3682_v28 = vpop.f32.mrf.mxu0 }
 0x457   : > { %v7051_v11 = vadd.f32 %v3682_v28, %v3458_v52  ;;  %v3499_v49 = vpop.f32.mrf.mxu1 }
 0x458   : > { %v3684_v48 = vpop.f32.mrf.mxu0 }
 0x459   : > { %7339 = vst [vmem:[#allocation4_spill] sm:$0xff] %v7051_v11  ;;  %v3502_v60 = vpop.f32.mrf.mxu1 }
 0x45a   : > { %v7055_v12 = vadd.f32 %v3502_v60, %v3278_v53  ;;  %v3687_v4 = vpop.f32.mrf.mxu0 }
 0x45b   : > { %v7057_v56 = vadd.f32 %v3687_v4, %v3463_v15  ;;  %v3504_v43 = vpop.f32.mrf.mxu1 }
 0x45c   : > { %v3689_v10 = vpop.f32.mrf.mxu0 }
 0x45d   : > { %7341 = vst [vmem:[#allocation21_spill] sm:$0xff] %v7057_v56  ;;  %v3507_v35 = vpop.f32.mrf.mxu1 }
 0x45e   : > { %v7061_v62 = vadd.f32 %v3507_v35, %v3283_v63  ;;  %v3692_v52 = vpop.f32.mrf.mxu0 }
 0x45f   : > { %v7063_v29 = vadd.f32 %v3692_v52, %v3468_v50  ;;  %v3509_v8 = vpop.f32.mrf.mxu1 }
 0x460   : > { %v3694_v34 = vpop.f32.mrf.mxu0 }
 0x461   : > { %7343 = vst [vmem:[#allocation5_spill] sm:$0xff] %v7063_v29  ;;  %v3512_v31 = vpop.f32.mrf.mxu1  ;;  %v7351_v29 = vld [vmem:[#allocation19_spill] sm:$0xff] }
 0x462   : > { %v7067_v9 = vadd.f32 %v3512_v31, %v3288_v22  ;;  %v3697_v15 = vpop.f32.mrf.mxu0  ;;  %v3303_v16 = vadd.f32 %v6936_v20, %v7351_v29 }
 0x463   : > { %v7069_v41 = vadd.f32 %v3697_v15, %v3473_v58  ;;  %v3514_v1 = vpop.f32.mrf.mxu1 }
 0x464   : > { %v3699_v18 = vpop.f32.mrf.mxu0 }
 0x465   : > { %7345 = vst [vmem:[#allocation6_spill] sm:$0xff] %v7069_v41  ;;  %v3517_v26 = vpop.f32.mrf.mxu1 }
 0x466   : > { %v7073_v21 = vadd.f32 %v3517_v26, %v3293_v30  ;;  %v3702_v50 = vpop.f32.mrf.mxu0 }
 0x467   : > { %v7075_v13 = vadd.f32 %v3702_v50, %v3478_v32  ;;  %v3519_v5 = vpop.f32.mrf.mxu1 }
 0x468   : > { %v3704_v14 = vpop.f32.mrf.mxu0 }
 0x469   : > { %7347 = vst [vmem:[#allocation7_spill] sm:$0xff] %v7075_v13  ;;  %v3522_v28 = vpop.f32.mrf.mxu1 }
 0x46a   : > { %v7079_v49 = vadd.f32 %v3522_v28, %v3298_v27  ;;  %v3707_v58 = vpop.f32.mrf.mxu0 }
 0x46b   : > { %v7081_v39 = vadd.f32 %v3707_v58, %v3483_v33  ;;  %v3524_v53 = vpop.f32.mrf.mxu1 }
 0x46c   : > { %v3709_v19 = vpop.f32.mrf.mxu0 }
 0x46d   : > { %7349 = vst [vmem:[#allocation8_spill] sm:$0xff] %v7081_v39  ;;  %v7083_v48 = vpop.f32.mrf.mxu1 }
 0x46e   : > { %v3712_v60 = vpop.f32.mrf.mxu0  ;;  %v3528_v20 = vadd.f32 %v7083_v48, %v3303_v16 }
 0x46f   : > { %v7085_v4 = vadd.f32 %v3712_v60, %v3488_v2  ;;  %v3529_v32 = vpop.f32.mrf.mxu1 }
 0x470   : > { %v3714_v43 = vpop.f32.mrf.mxu0 }
 0x471   : > { %7350 = vst [vmem:[#allocation9_spill] sm:$0xff] %v7085_v4  ;;  %v7087_v47 = vpop.f32.mrf.mxu1 }
 0x472   : > { %v3717_v63 = vpop.f32.mrf.mxu0 }
 0x473   : > { %v3534_v36 = vpop.f32.mrf.mxu1 }
 0x474   : > { %v3719_v10 = vpop.f32.mrf.mxu0 }
 0x475   : > { %v7089_v35 = vpop.f32.mrf.mxu1 }
 0x476   : > { %v3722_v52 = vpop.f32.mrf.mxu0 }
 0x477   : > { %v3539_v8 = vpop.f32.mrf.mxu1 }
 0x478   : > { %v3724_v33 = vpop.f32.mrf.mxu0 }
 0x479   : > { %v7091_v37 = vpop.f32.mrf.mxu1 }
 0x47a   : > { %v3727_v22 = vpop.f32.mrf.mxu0 }
 0x47b   : > { %v3544_v34 = vpop.f32.mrf.mxu1  ;;  %v3728_v56 = vadd.f32 %v3727_v22, %v7055_v12 }
 0x47c   : > { %v3729_v31 = vpop.f32.mrf.mxu0 }
 0x47d   : > { %v7093_v15 = vpop.f32.mrf.mxu1 }
 0x47e   : > { %v3732_v2 = vpop.f32.mrf.mxu0 }
 0x47f   : > { %v3549_v1 = vpop.f32.mrf.mxu1 }
 0x480   : > { %v3734_v3 = vpop.f32.mrf.mxu0 }
 0x481   : > { %v7095_v30 = vpop.f32.mrf.mxu1 }
 0x482   : > { %v3737_v18 = vpop.f32.mrf.mxu0 }
 0x483   : > { %v3554_v26 = vpop.f32.mrf.mxu1  ;;  %v3738_v29 = vadd.f32 %v3737_v18, %v7067_v9  ;;  %v3538_v18 = vadd.f32 %v7089_v35, %v6948_v23 }
 0x484   : > { %v3739_v50 = vpop.f32.mrf.mxu0 }
 0x485   : > { %v7097_v5 = vpop.f32.mrf.mxu1 }
 0x486   : > { %v3742_v17 = vpop.f32.mrf.mxu0 }
 0x487   : > { %v3559_v27 = vpop.f32.mrf.mxu1  ;;  %v3743_v11 = vadd.f32 %v3742_v17, %v7073_v21 }
 0x488   : > { %v3744_v14 = vpop.f32.mrf.mxu0 }
 0x489   : > { %v7099_v28 = vpop.f32.mrf.mxu1 }
 0x48a   : > { %v7101_v58 = vpop.f32.mrf.mxu0 }
 0x48b   : > { %v3564_v53 = vpop.f32.mrf.mxu1 }
 0x48c   : > { %v3749_v19 = vpop.f32.mrf.mxu0 }
 0x48d   : > { %v7103_v60 = vpop.f32.mrf.mxu1 }
 0x48e   : > { %v3752_v32 = vpop.f32.mrf.mxu0 }
 0x48f   : > { %v3569_v43 = vpop.f32.mrf.mxu1 }
 0x490   : > { %v3754_v36 = vpop.f32.mrf.mxu0 }
 0x491   : > { %v7105_v10 = vpop.f32.mrf.mxu1 }
 0x492   : > { %v7107_v8 = vpop.f32.mrf.mxu0 }
 0x493   : > { %v3574_v33 = vpop.f32.mrf.mxu1 }
 0x494   : > { %v3759_v34 = vpop.f32.mrf.mxu0  ;;  %v3723_v33 = vadd.f32 %v3722_v52, %v7049_v40  ;;  %v3733_v40 = vadd.f32 %v3732_v2, %v7061_v62 }
 0x495   : > { %v7109_v31 = vpop.f32.mrf.mxu1 }
 0x496   : > { %v7111_v1 = vpop.f32.mrf.mxu0 }
 0x497   : > { %v3579_v3 = vpop.f32.mrf.mxu1 }
 0x498   : > { %v3764_v26 = vpop.f32.mrf.mxu0  ;;  %v7125_v3 = vld [vmem:[%s7305_s5] ss:$0 sm:$0xff] }
 0x499   : > { %v7113_v50 = vpop.f32.mrf.mxu1  ;;  %v3718_v26 = vadd.f32 %v3717_v63, %v7043_v57 }
 0x49a   : > { %v7115_v27 = vpop.f32.mrf.mxu0 }
 0x49b   : > { %v3584_v14 = vpop.f32.mrf.mxu1 }
 0x49c   : > { %v3769_v53 = vpop.f32.mrf.mxu0 }
 0x49d   : > { %v7117_v19 = vpop.f32.mrf.mxu1  ;;  %v7133_v53 = vld [vmem:[%s7306_s6] ss:$0 sm:$0xff] }
 0x49e   : > { %v7119_v43 = vpop.f32.mrf.mxu0 }
 0x49f   : > { %v3589_v36 = vpop.f32.mrf.mxu1 }
 0x4a0   : > { %v3774_v34 = vpop.f32.mrf.mxu0 }
 0x4a1   : > { %v4483_v39 = vpop.f32.mrf.mxu1 }
 0x4a2   : > { %v7128_v4 = vpop.f32.mrf.mxu0  ;;  %v3948_v14 = vadd.f32 %v4483_v39, %v3723_v33 }
 0x4a3   : > { %v3942_v36 = vpop.f32.mrf.mxu1 }
 0x4a4   : > { %v4061_v52 = vmul.f32 %v7125_v3, %v3948_v14  ;;  %v3779_v34 = vpop.f32.mrf.mxu0  ;;  %v3943_v41 = vadd.f32 %v3942_v36, %v3718_v26 }
 0x4a5   : > { %v4486_v13 = vpop.f32.mrf.mxu1 }
 0x4a6   : > { %v4100_v57 = vadd.f32 %v7133_v53, %v4061_v52  ;;  %v4060_v63 = vmul.f32 %v7125_v3, %v3943_v41  ;;  %v7140_v39 = vpop.f32.mrf.mxu0  ;;  %v3958_v33 = vadd.f32 %v4486_v13, %v3733_v40  ;;  %v3753_v52 = vadd.f32 %v3752_v32, %v3528_v20 }
 0x4a7   : > { %v3952_v12 = vpop.f32.mrf.mxu1 }
 0x4a8   : > { %v4132_v62 = vmax.f32 %v4100_v57, 0.0  ;;  %v4099_v41 = vadd.f32 %v7133_v53, %v4060_v63  ;;  %v4063_v22 = vmul.f32 %v7125_v3, %v3958_v33  ;;  %v3784_v13 = vpop.f32.mrf.mxu0  ;;  %v3953_v2 = vadd.f32 %v3952_v12, %v3728_v56 }
 0x4a9   : > { %v4489_v21 = vpop.f32.mrf.mxu1  ;;  %v3748_v63 = vadd.f32 %v7101_v58, %v7079_v49  ;;  %v3763_v13 = vadd.f32 %v7111_v1, %v3538_v18 }
 0x4aa   : > { %4164 = vst [vmem:[%s7150_s18 + $0x68] sm:$0xff] %v4132_v62  ;;  %v4131_v17 = vmax.f32 %v4099_v41, 0.0  ;;  %v4102_v26 = vadd.f32 %v7133_v53, %v4063_v22  ;;  %v4062_v14 = vmul.f32 %v7125_v3, %v3953_v2  ;;  %v7159_v36 = vpop.f32.mrf.mxu0  ;;  %v3968_v40 = vadd.f32 %v4489_v21, %v3743_v11 }
 0x4ab   : > { %v3962_v34 = vpop.f32.mrf.mxu1  ;;  %v3533_v22 = vadd.f32 %v7087_v47, %v6942_v0 }
 0x4ac   : > { %4163 = vst [vmem:[%s7150_s18 + $0x60] sm:$0xff] %v4131_v17  ;;  %v4134_v57 = vmax.f32 %v4102_v26, 0.0  ;;  %v4101_v56 = vadd.f32 %v7133_v53, %v4062_v14  ;;  %v4065_v16 = vmul.f32 %v7125_v3, %v3968_v40  ;;  %v3789_v9 = vpop.f32.mrf.mxu0  ;;  %v3963_v48 = vadd.f32 %v3962_v34, %v3738_v29 }
 0x4ad   : > { %v4492_v33 = vpop.f32.mrf.mxu1  ;;  %v3548_v29 = vadd.f32 %v7093_v15, %v6956_v38  ;;  %v3758_v21 = vadd.f32 %v7107_v8, %v3533_v22  ;;  %v3543_v40 = vadd.f32 %v7091_v37, %v6952_v42  ;;  %v3568_v22 = vadd.f32 %v7103_v60, %v6999_v59 }
 0x4ae   : > { %4166 = vst [vmem:[%s7150_s18 + $0x78] sm:$0xff] %v4134_v57  ;;  %v4133_v11 = vmax.f32 %v4101_v56, 0.0  ;;  %v4104_v32 = vadd.f32 %v7133_v53, %v4065_v16  ;;  %v4064_v12 = vmul.f32 %v7125_v3, %v3963_v48  ;;  %v3792_v62 = vpop.f32.mrf.mxu0  ;;  %v3978_v41 = vadd.f32 %v4492_v33, %v3753_v52 }
 0x4af   : > { %v3972_v2 = vpop.f32.mrf.mxu1  ;;  %v3773_v52 = vadd.f32 %v7119_v43, %v3548_v29  ;;  %v3558_v16 = vadd.f32 %v7097_v5, %v6980_v24  ;;  %v3768_v9 = vadd.f32 %v7115_v27, %v3543_v40  ;;  %v3553_v33 = vadd.f32 %v7095_v30, %v6975_v54 }
 0x4b0   : > { %4165 = vst [vmem:[%s7150_s18 + $0x70] sm:$0xff] %v4133_v11  ;;  %v4136_v23 = vmax.f32 %v4104_v32, 0.0  ;;  %v4103_v49 = vadd.f32 %v7133_v53, %v4064_v12  ;;  %v4067_v35 = vmul.f32 %v7125_v3, %v3978_v41  ;;  %v3794_v58 = vpop.f32.mrf.mxu0  ;;  %v3973_v20 = vadd.f32 %v3972_v2, %v3748_v63 }
 0x4b1   : > { %v4495_v17 = vpop.f32.mrf.mxu1  ;;  %v3783_v11 = vadd.f32 %v7140_v39, %v3558_v16  ;;  %v3793_v58 = vadd.f32 %v3792_v62, %v3568_v22  ;;  %v3573_v40 = vadd.f32 %v7105_v10, %v7001_v7 }
 0x4b2   : > { %4168 = vst [vmem:[%s7150_s18 + $0x88] sm:$0xff] %v4136_v23  ;;  %v4135_v0 = vmax.f32 %v4103_v49, 0.0  ;;  %v4106_v47 = vadd.f32 %v7133_v53, %v4067_v35  ;;  %v4066_v1 = vmul.f32 %v7125_v3, %v3973_v20  ;;  %v7183_v26 = vpop.f32.mrf.mxu0  ;;  %v3988_v14 = vadd.f32 %v4495_v17, %v3763_v13 }
 0x4b3   : > { %v3982_v34 = vpop.f32.mrf.mxu1  ;;  %v3778_v13 = vadd.f32 %v7128_v4, %v3553_v33  ;;  %v3563_v35 = vadd.f32 %v7099_v28, %v6994_v6  ;;  %v3578_v17 = vadd.f32 %v7109_v31, %v7003_v25 }
 0x4b4   : > { %4167 = vst [vmem:[%s7150_s18 + $0x80] sm:$0xff] %v4135_v0  ;;  %v4138_v38 = vmax.f32 %v4106_v47, 0.0  ;;  %v4105_v15 = vadd.f32 %v7133_v53, %v4066_v1  ;;  %v4069_v8 = vmul.f32 %v7125_v3, %v3988_v14  ;;  %v3799_v57 = vpop.f32.mrf.mxu0  ;;  %v3983_v56 = vadd.f32 %v3982_v34, %v3758_v21 }
 0x4b5   : > { %v4498_v48 = vpop.f32.mrf.mxu1  ;;  %v3788_v0 = vadd.f32 %v7159_v36, %v3563_v35  ;;  %v3798_v57 = vadd.f32 %v7183_v26, %v3573_v40  ;;  %v7353_v40 = vld [vmem:[#allocation20_spill] sm:$0xff] }
 0x4b6   : > { %4170 = vst [vmem:[%s7150_s18 + $0x98] sm:$0xff] %v4138_v38  ;;  %v4137_v42 = vmax.f32 %v4105_v15, 0.0  ;;  %v4108_v37 = vadd.f32 %v7133_v53, %v4069_v8  ;;  %v4068_v43 = vmul.f32 %v7125_v3, %v3983_v56  ;;  %v3802_v18 = vpop.f32.mrf.mxu0  ;;  %v3998_v63 = vadd.f32 %v4498_v48, %v3773_v52 }
 0x4b7   : > { %v3992_v32 = vpop.f32.mrf.mxu1  ;;  %v3803_v52 = vadd.f32 %v3802_v18, %v3578_v17  ;;  %v3588_v8 = vadd.f32 %v7117_v19, %v7023_v55 }
 0x4b8   : > { %4169 = vst [vmem:[%s7150_s18 + $0x90] sm:$0xff] %v4137_v42  ;;  %v4140_v24 = vmax.f32 %v4108_v37, 0.0  ;;  %v4107_v5 = vadd.f32 %v7133_v53, %v4068_v43  ;;  %v4071_v27 = vmul.f32 %v7125_v3, %v3998_v63  ;;  %v3804_v12 = vpop.f32.mrf.mxu0  ;;  %v3993_v41 = vadd.f32 %v3992_v32, %v3768_v9 }
 0x4b9   : > { %v4501_v2 = vpop.f32.mrf.mxu1  ;;  %v3583_v42 = vadd.f32 %v7113_v50, %v7019_v44 }
 0x4ba   : > { %4172 = vst [vmem:[%s7150_s18 + $0xa8] sm:$0xff] %v4140_v24  ;;  %v4139_v54 = vmax.f32 %v4107_v5, 0.0  ;;  %v4110_v30 = vadd.f32 %v7133_v53, %v4071_v27  ;;  %v4070_v39 = vmul.f32 %v7125_v3, %v3993_v41  ;;  %v3807_v23 = vpop.f32.mrf.mxu0  ;;  %v4008_v49 = vadd.f32 %v4501_v2, %v3783_v11 }
 0x4bb   : > { %v4002_v20 = vpop.f32.mrf.mxu1  ;;  %v3808_v11 = vadd.f32 %v3807_v23, %v3583_v42 }
 0x4bc   : > { %4171 = vst [vmem:[%s7150_s18 + $0xa0] sm:$0xff] %v4139_v54  ;;  %v4142_v29 = vmax.f32 %v4110_v30, 0.0  ;;  %v4109_v59 = vadd.f32 %v7133_v53, %v4070_v39  ;;  %v4073_v4 = vmul.f32 %v7125_v3, %v4008_v49  ;;  %v3809_v60 = vpop.f32.mrf.mxu0  ;;  %v4003_v21 = vadd.f32 %v4002_v20, %v3778_v13 }
 0x4bd   : > { %v4504_v47 = vpop.f32.mrf.mxu1 }
 0x4be   : > { %4174 = vst [vmem:[%s7150_s18 + $0xb8] sm:$0xff] %v4142_v29  ;;  %v4141_v1 = vmax.f32 %v4109_v59, 0.0  ;;  %v4112_v6 = vadd.f32 %v7133_v53, %v4073_v4  ;;  %v4072_v28 = vmul.f32 %v7125_v3, %v4003_v21  ;;  %v3812_v62 = vpop.f32.mrf.mxu0  ;;  %v4018_v14 = vadd.f32 %v4504_v47, %v3793_v58 }
 0x4bf   : > { %v4012_v34 = vpop.f32.mrf.mxu1  ;;  %v3813_v37 = vadd.f32 %v3812_v62, %v3588_v8 }
 0x4c0   : > { %4173 = vst [vmem:[%s7150_s18 + $0xb0] sm:$0xff] %v4141_v1  ;;  %v4144_v38 = vmax.f32 %v4112_v6, 0.0  ;;  %v4111_v25 = vadd.f32 %v7133_v53, %v4072_v28  ;;  %v4075_v31 = vmul.f32 %v7125_v3, %v4018_v14  ;;  %v3814_v36 = vpop.f32.mrf.mxu0  ;;  %v4013_v15 = vadd.f32 %v4012_v34, %v3788_v0  ;;  %v7352_v0 = vld [vmem:[#allocation4_spill] sm:$0xff] }
 0x4c1   : > { %v4507_v56 = vpop.f32.mrf.mxu1 }
 0x4c2   : > { %4176 = vst [vmem:[%s7150_s18 + $0xc8] sm:$0xff] %v4144_v38  ;;  %v4143_v16 = vmax.f32 %v4111_v25, 0.0  ;;  %v4114_v7 = vadd.f32 %v7133_v53, %v4075_v31  ;;  %v4074_v10 = vmul.f32 %v7125_v3, %v4013_v15  ;;  %v4465_v9 = vpop.f32.mrf.mxu0  ;;  %v4028_v48 = vadd.f32 %v4507_v56, %v3803_v52  ;;  %v7354_v15 = vld [vmem:[#allocation5_spill] sm:$0xff] }
 0x4c3   : > { %v3888_v43 = vadd.f32 %v4465_v9, %v7031_v61  ;;  %v4022_v18 = vpop.f32.mrf.mxu1 }
 0x4c4   : > { %4175 = vst [vmem:[%s7150_s18 + $0xc0] sm:$0xff] %v4143_v16  ;;  %v4146_v55 = vmax.f32 %v4114_v7, 0.0  ;;  %v4113_v19 = vadd.f32 %v7133_v53, %v4074_v10  ;;  %v4077_v26 = vmul.f32 %v7125_v3, %v4028_v48  ;;  %v3882_v63 = vpop.f32.mrf.mxu0  ;;  %v4023_v33 = vadd.f32 %v4022_v18, %v3798_v57  ;;  %v7355_v10 = vld [vmem:[#allocation21_spill] sm:$0xff]  ;;  %v7356_v18 = vld [vmem:[#allocation7_spill] sm:$0xff] }
 0x4c5   : > { %v4049_v32 = vmul.f32 %v7125_v3, %v3888_v43  ;;  %v3883_v24 = vadd.f32 %v3882_v63, %v7027_v45  ;;  %v4510_v5 = vpop.f32.mrf.mxu1 }
 0x4c6   : > { %4178 = vst [vmem:[%s7150_s18 + $0xd8] sm:$0xff] %v4146_v55  ;;  %v4145_v44 = vmax.f32 %v4113_v19, 0.0  ;;  %v4116_v61 = vadd.f32 %v7133_v53, %v4077_v26  ;;  %v4076_v50 = vmul.f32 %v7125_v3, %v4023_v33  ;;  %v4468_v27 = vpop.f32.mrf.mxu0  ;;  %v4038_v12 = vadd.f32 %v4510_v5, %v3813_v37 }
 0x4c7   : > { %v4088_v41 = vadd.f32 %v7133_v53, %v4049_v32  ;;  %v4048_v22 = vmul.f32 %v7125_v3, %v3883_v24  ;;  %v3898_v13 = vadd.f32 %v4468_v27, %v7039_v46  ;;  %v4032_v2 = vpop.f32.mrf.mxu1 }
 0x4c8   : > { %4177 = vst [vmem:[%s7150_s18 + $0xd0] sm:$0xff] %v4145_v44  ;;  %v4148_v45 = vmax.f32 %v4116_v61, 0.0  ;;  %v4115_v54 = vadd.f32 %v7133_v53, %v4076_v50  ;;  %v4079_v30 = vmul.f32 %v7125_v3, %v4038_v12  ;;  %v3892_v39 = vpop.f32.mrf.mxu0  ;;  %v4033_v23 = vadd.f32 %v4032_v2, %v3808_v11  ;;  %v7357_v11 = vld [vmem:[#allocation6_spill] sm:$0xff]  ;;  %v7358_v50 = vld [vmem:[#allocation9_spill] sm:$0xff]  ;;  %v7359_v2 = vld [vmem:[#allocation8_spill] sm:$0xff] }
 0x4c9   : > { %v4120_v49 = vmax.f32 %v4088_v41, 0.0  ;;  %v4087_v35 = vadd.f32 %v7133_v53, %v4048_v22  ;;  %v4051_v58 = vmul.f32 %v7125_v3, %v3898_v13  ;;  %v3893_v20 = vadd.f32 %v3892_v39, %v7035_v51 }
 0x4ca   : > { %4180 = vst [vmem:[%s7150_s18 + $0xe8] sm:$0xff] %v4148_v45  ;;  %v4147_v46 = vmax.f32 %v4115_v54, 0.0  ;;  %v4118_v29 = vadd.f32 %v7133_v53, %v4079_v30  ;;  %v4078_v59 = vmul.f32 %v7125_v3, %v4033_v23  ;;  %v4471_v4 = vpop.f32.mrf.mxu0 }
 0x4cb   : > { %4152 = vst [vmem:[%s7150_s18 + $0x8] sm:$0xff] %v4120_v49  ;;  %v4119_v60 = vmax.f32 %v4087_v35, 0.0  ;;  %v4090_v21 = vadd.f32 %v7133_v53, %v4051_v58  ;;  %v4050_v17 = vmul.f32 %v7125_v3, %v3893_v20  ;;  %v3908_v47 = vadd.f32 %v4471_v4, %v7352_v0 }
 0x4cc   : > { %4179 = vst [vmem:[%s7150_s18 + $0xe0] sm:$0xff] %v4147_v46  ;;  %v4150_v1 = vmax.f32 %v4118_v29, 0.0  ;;  %v4117_v51 = vadd.f32 %v7133_v53, %v4078_v59  ;;  %v3902_v6 = vpop.f32.mrf.mxu0 }
 0x4cd   : > { %4151 = vst [vmem:[%s7150_s18] sm:$0xff] %v4119_v60  ;;  %v4122_v28 = vmax.f32 %v4090_v21, 0.0  ;;  %v4089_v62 = vadd.f32 %v7133_v53, %v4050_v17  ;;  %v4053_v14 = vmul.f32 %v7125_v3, %v3908_v47  ;;  %v3903_v52 = vadd.f32 %v3902_v6, %v7353_v40 }
 0x4ce   : > { %4182 = vst [vmem:[%s7150_s18 + $0xf8] sm:$0xff] %v4150_v1  ;;  %v4149_v34 = vmax.f32 %v4117_v51, 0.0  ;;  %v4474_v38 = vpop.f32.mrf.mxu0 }
 0x4cf   : > { %4154 = vst [vmem:[%s7150_s18 + $0x18] sm:$0xff] %v4122_v28  ;;  %v4121_v25 = vmax.f32 %v4089_v62, 0.0  ;;  %v4092_v31 = vadd.f32 %v7133_v53, %v4053_v14  ;;  %v4052_v36 = vmul.f32 %v7125_v3, %v3903_v52  ;;  %v3918_v8 = vadd.f32 %v4474_v38, %v7354_v15 }
 0x4d0   : > { %4181 = vst [vmem:[%s7150_s18 + $0xf0] sm:$0xff] %v4149_v34  ;;  %v3912_v57 = vpop.f32.mrf.mxu0 }
 0x4d1   : > { %4153 = vst [vmem:[%s7150_s18 + $0x10] sm:$0xff] %v4121_v25  ;;  %v4124_v56 = vmax.f32 %v4092_v31, 0.0  ;;  %v4091_v16 = vadd.f32 %v7133_v53, %v4052_v36  ;;  %v4055_v7 = vmul.f32 %v7125_v3, %v3918_v8  ;;  %v3913_v9 = vadd.f32 %v3912_v57, %v7355_v10 }
 0x4d2   : > { %v4477_v48 = vpop.f32.mrf.mxu0 }
 0x4d3   : > { %4156 = vst [vmem:[%s7150_s18 + $0x28] sm:$0xff] %v4124_v56  ;;  %v4123_v42 = vmax.f32 %v4091_v16, 0.0  ;;  %v4094_v37 = vadd.f32 %v7133_v53, %v4055_v7  ;;  %v4054_v43 = vmul.f32 %v7125_v3, %v3913_v9  ;;  %v3928_v55 = vadd.f32 %v4477_v48, %v7356_v18 }
 0x4d4   : > { %v3922_v19 = vpop.f32.mrf.mxu0 }
 0x4d5   : > { %4155 = vst [vmem:[%s7150_s18 + $0x20] sm:$0xff] %v4123_v42  ;;  %v4126_v26 = vmax.f32 %v4094_v37, 0.0  ;;  %v4093_v63 = vadd.f32 %v7133_v53, %v4054_v43  ;;  %v4057_v33 = vmul.f32 %v7125_v3, %v3928_v55  ;;  %v3923_v32 = vadd.f32 %v3922_v19, %v7357_v11 }
 0x4d6   : > { %v4480_v24 = vpop.f32.mrf.mxu0 }
 0x4d7   : > { %4158 = vst [vmem:[%s7150_s18 + $0x38] sm:$0xff] %v4126_v26  ;;  %v4125_v5 = vmax.f32 %v4093_v63, 0.0  ;;  %v4096_v44 = vadd.f32 %v7133_v53, %v4057_v33  ;;  %v4056_v61 = vmul.f32 %v7125_v3, %v3923_v32  ;;  %v3938_v27 = vadd.f32 %v4480_v24, %v7358_v50 }
 0x4d8   : > { %v3932_v12 = vpop.f32.mrf.mxu0 }
 0x4d9   : > { %4157 = vst [vmem:[%s7150_s18 + $0x30] sm:$0xff] %v4125_v5  ;;  %v4128_v41 = vmax.f32 %v4096_v44, 0.0  ;;  %v4095_v22 = vadd.f32 %v7133_v53, %v4056_v61  ;;  %v4059_v13 = vmul.f32 %v7125_v3, %v3938_v27  ;;  %v3933_v45 = vadd.f32 %v3932_v12, %v7359_v2 }
 0x4db   : > { %4160 = vst [vmem:[%s7150_s18 + $0x48] sm:$0xff] %v4128_v41  ;;  %v4127_v54 = vmax.f32 %v4095_v22, 0.0  ;;  %v4098_v30 = vadd.f32 %v7133_v53, %v4059_v13  ;;  %v4058_v39 = vmul.f32 %v7125_v3, %v3933_v45 }
 0x4dd   : > { %4159 = vst [vmem:[%s7150_s18 + $0x40] sm:$0xff] %v4127_v54  ;;  %v4130_v23 = vmax.f32 %v4098_v30, 0.0  ;;  %v4097_v49 = vadd.f32 %v7133_v53, %v4058_v39 }
 0x4df   : > { %4162 = vst [vmem:[%s7150_s18 + $0x58] sm:$0xff] %v4130_v23  ;;  %v4129_v35 = vmax.f32 %v4097_v49, 0.0 }
 0x4e1   : > { %4161 = vst [vmem:[%s7150_s18 + $0x50] sm:$0xff] %v4129_v35 }
 0x4e2 PF: > { %s17_s24 = sadd.s32 1, %s4576_s24  }
 0x4e3   : > { %p14_p4 = scmp.ge.s32.totalorder %s17_s24, 4  }
 0x4e5   :  { %16 = sbr.rel (!%p14_p4) target bundleno = 1 (0x1), region = 84 }

</bundles_post_ra>
